<compile_context>
chip_gen: v7x
topology: tpu7x:2x2x1
jax: 0.10.0
libtpu: 0.0.40
codegen_flags: <defaults>
</compile_context>

<pallas_src>
import jax
import jax.numpy as jnp
from jax.experimental import pallas as pl
from jax.experimental.pallas import tpu as pltpu
import numpy as np


def _make_kernel(nf, fh):
    """Build the kernel with the static F-shard count / shard width baked in."""

    def kernel(x_ref, w0_ref, b0_ref, w1_ref, b1_ref, w2_ref, b2_ref,
               dw_ref, db_ref, out_ref, coefs_ref, acc_ref):
        # Refs (per grid step (f, t)):
        #   x_ref : [B, D]  f32        w0_ref: [D, F]  bf16     b0_ref: [1, F]  f32
        #   w1_ref: [F, H]  f32        b1_ref: [1, H]  f32
        #   w2_ref: [H, T]  f32        b2_ref: [1, T]  f32
        #   dw_ref: [1, D, F/NF] bf16  db_ref: [1, 1, F/NF] f32
        #   out_ref: [B, F/NF] f32
        #   coefs_ref (scratch): [B, T] f32      acc_ref (scratch): [B, F/NF] f32
        f = pl.program_id(0)
        t = pl.program_id(1)
        num_tasks = pl.num_programs(1)

        x = x_ref[...]                                            # [B, D] f32

        # ---- once per F-shard (first task step): base features, coefficients ----
        @pl.when(t == 0)
        def _init():
            x_bf = x.astype(jnp.bfloat16)
            base = jnp.dot(x_bf, w0_ref[...],
                           preferred_element_type=jnp.float32) + b0_ref[...]   # [B, F]
            h = jnp.dot(base, w1_ref[...],
                        preferred_element_type=jnp.float32) + b1_ref[...]      # [B, H]
            h = jnp.maximum(h, 0.0)
            coefs_ref[...] = jnp.dot(h, w2_ref[...],
                                     preferred_element_type=jnp.float32) + b2_ref[...]
            # Initialize the accumulator with this core's F-shard of the base output.
            # Static unroll over the (small) shard count avoids dynamic lane slicing.
            for ff in range(nf):
                @pl.when(f == ff)
                def _(ff=ff):
                    acc_ref[...] = base[:, ff * fh:(ff + 1) * fh]

        # ---- per task step: fused coefficient-weighted jvp contribution on MXU ----
        coefs = coefs_ref[...]                                    # [B, T]
        tcol = jax.lax.broadcasted_iota(jnp.int32, coefs.shape, 1)
        coef_t = jnp.sum(jnp.where(tcol == t, coefs, 0.0),
                         axis=1, keepdims=True)                   # [B, 1]

        xs = (coef_t * x).astype(jnp.bfloat16)                    # [B, D] (cheap VPU scale)
        dp = jnp.dot(xs, dw_ref[0],
                     preferred_element_type=jnp.float32)          # [B, F/NF] on MXU
        acc_ref[...] = acc_ref[...] + dp + coef_t * db_ref[0]

        # ---- finalize: lane-dense store of this F-shard ----
        @pl.when(t == num_tasks - 1)
        def _done():
            out_ref[...] = acc_ref[...].astype(out_ref.dtype)

    return kernel


def metanet_linearized_forward(x, w0, b0, w1, b1, w2, b2, dw, db, *, nf=2):
    """Flatten NCHW images and run the fused MetaNet-linearized forward pass."""
    batch = x.shape[0]
    x_flat = x.reshape(batch, -1).astype(jnp.float32)             # [B, D]
    d = x_flat.shape[1]
    feat = w0.shape[1]
    hid = w1.shape[1]
    num_tasks = dw.shape[0]
    assert feat % nf == 0 and (feat // nf) % 128 == 0, "F shard must be lane-aligned"
    fh = feat // nf

    # Stream the large weights in bf16 (f32 accumulation inside the kernel).
    w0_bf = w0.astype(jnp.bfloat16)
    dw_bf = dw.astype(jnp.bfloat16)
    b0 = b0.astype(jnp.float32)
    w1 = w1.astype(jnp.float32)
    b1 = b1.astype(jnp.float32)
    w2 = w2.astype(jnp.float32)
    b2 = b2.astype(jnp.float32)
    db = db.astype(jnp.float32)

    inputs = (x_flat, w0_bf, b0, w1, b1, w2, b2, dw_bf, db)
    flops = (2 * batch * d * feat * (1 + num_tasks)
             + 2 * batch * feat * hid + 2 * batch * hid * num_tasks)
    bytes_accessed = sum(int(a.size) * a.dtype.itemsize for a in inputs) \
        + batch * feat * 4

    grid_spec = pltpu.PrefetchScalarGridSpec(
        num_scalar_prefetch=0,
        grid=(nf, num_tasks),                     # (F shards: parallel, tasks: arbitrary)
        in_specs=[
            pl.BlockSpec((batch, d), lambda f, t: (0, 0)),          # x      (DMA'd once)
            pl.BlockSpec((d, feat), lambda f, t: (0, 0)),           # w0     (DMA'd once)
            pl.BlockSpec((1, feat), lambda f, t: (0, 0)),           # b0
            pl.BlockSpec((feat, hid), lambda f, t: (0, 0)),         # w1
            pl.BlockSpec((1, hid), lambda f, t: (0, 0)),            # b1
            pl.BlockSpec((hid, num_tasks), lambda f, t: (0, 0)),    # w2
            pl.BlockSpec((1, num_tasks), lambda f, t: (0, 0)),      # b2
            pl.BlockSpec((1, d, fh), lambda f, t: (t, 0, f)),       # dw (streamed per step)
            pl.BlockSpec((1, 1, fh), lambda f, t: (t, 0, f)),       # db (streamed per step)
        ],
        out_specs=pl.BlockSpec((batch, fh), lambda f, t: (0, f)),
        scratch_shapes=[
            pltpu.VMEM((batch, num_tasks), jnp.float32),            # coefs
            pltpu.VMEM((batch, fh), jnp.float32),                   # output accumulator
        ],
    )

    return pl.pallas_call(
        _make_kernel(nf, fh),
        out_shape=jax.ShapeDtypeStruct((batch, feat), jnp.float32),
        grid_spec=grid_spec,
        compiler_params=pltpu.CompilerParams(
            dimension_semantics=("parallel", "arbitrary")),
        cost_estimate=pl.CostEstimate(flops=flops, transcendentals=0,
                                      bytes_accessed=bytes_accessed),
    )(*inputs)


def reference_forward(x, w0, b0, w1, b1, w2, b2, dw, db):
    """Pure-JAX f32 reference mirroring the PyTorch per-sample loop (vectorized)."""
    x_flat = x.reshape(x.shape[0], -1).astype(jnp.float32)
    base = x_flat @ w0 + b0                                           # [B, F]
    h = jnp.maximum(base @ w1 + b1, 0.0)
    coefs = h @ w2 + b2                                               # [B, T]
    task_feats = jnp.einsum('bd,tdf->btf', x_flat, dw) + db[None, :, 0, :]
    dp = jnp.einsum('bt,btf->bf', coefs, task_feats)
    return base + dp


if __name__ == "__main__":
    # feat_dim is hard-coded to 768 in the module; 3x16x16 images give D = 768 too.
    B, C, H, W = 2, 3, 16, 16
    D = C * H * W                    # 768
    FEAT = 768                       # feat_dim in MetaNetLinearizedModel
    NUM_TASKS = 4                    # len(task_vectors)
    HID = max(FEAT // 4, NUM_TASKS)  # MetaNet hidden_dim = 192

    key = jax.random.PRNGKey(0)
    ks = jax.random.split(key, 10)

    x = jax.random.normal(ks[0], (B, C, H, W), dtype=jnp.float32)

    # Synthetic linear base model params0 = (W0, b0).
    w0 = 0.02 * jax.random.normal(ks[1], (D, FEAT), dtype=jnp.float32)
    b0 = 0.02 * jax.random.normal(ks[2], (1, FEAT), dtype=jnp.float32)

    # MetaNet: layer0 init normal(std=0.01) per the module; layer1 default-ish init.
    w1 = 0.01 * jax.random.normal(ks[3], (FEAT, HID), dtype=jnp.float32)
    b1 = 0.01 * jax.random.normal(ks[4], (1, HID), dtype=jnp.float32)
    bound2 = 1.0 / np.sqrt(HID)
    w2 = jax.random.uniform(ks[5], (HID, NUM_TASKS), dtype=jnp.float32,
                            minval=-bound2, maxval=bound2)
    b2 = jax.random.uniform(ks[6], (1, NUM_TASKS), dtype=jnp.float32,
                            minval=-bound2, maxval=bound2)

    # Task vectors: one (dW, db) pair per task (same pytree structure as params0).
    dw = 0.01 * jax.random.normal(ks[7], (NUM_TASKS, D, FEAT), dtype=jnp.float32)
    db = 0.01 * jax.random.normal(ks[8], (NUM_TASKS, 1, FEAT), dtype=jnp.float32)

    out = metanet_linearized_forward(x, w0, b0, w1, b1, w2, b2, dw, db)
    out = jax.block_until_ready(out)

    ref = jax.block_until_ready(
        reference_forward(x, w0, b0, w1, b1, w2, b2, dw, db))
    # Tolerance loosened vs. v1 because w0/dw (and the scaled x) are streamed in
    # bf16 inside the kernel; observed error vs. the pure-f32 reference is ~1e-3.
    np.testing.assert_allclose(np.asarray(out), np.asarray(ref),
                               rtol=2e-2, atol=2e-2)

    # TODO(synk): blockwise=True path (per-parameter-block coefficients) not
    # implemented; the module defaults to blockwise=False.
    print("KERNEL_OK")
</pallas_src>

<mosaic_0001>
module attributes {stable_mosaic.version = 11 : i64} {
  func.func @kernel(%arg0: i32, %arg1: i32, %arg2: memref<2x768xf32, #tpu.memory_space<vmem>>, %arg3: memref<768x768xbf16, #tpu.memory_space<vmem>>, %arg4: memref<1x768xf32, #tpu.memory_space<vmem>>, %arg5: memref<768x192xf32, #tpu.memory_space<vmem>>, %arg6: memref<1x192xf32, #tpu.memory_space<vmem>>, %arg7: memref<192x4xf32, #tpu.memory_space<vmem>>, %arg8: memref<1x4xf32, #tpu.memory_space<vmem>>, %arg9: memref<1x768x384xbf16, #tpu.memory_space<vmem>>, %arg10: memref<1x1x384xf32, #tpu.memory_space<vmem>>, %arg11: memref<2x384xf32, #tpu.memory_space<vmem>>, %arg12: memref<2x4xf32, #tpu.memory_space<vmem>>, %arg13: memref<2x384xf32, #tpu.memory_space<vmem>>) attributes {dimension_semantics = [#tpu.dimension_semantics<parallel>, #tpu.dimension_semantics<arbitrary>], iteration_bounds = array<i64: 2, 4>, scalar_prefetch = 0 : i64, scratch_operands = 2 : i64, tpu.core_type = #tpu.core_type<tc>, window_params = [{pipeline_mode = #tpu.pipeline_mode<synchronous>, transform_indices = @transform_0, window_bounds = array<i64: 2, 768>}, {pipeline_mode = #tpu.pipeline_mode<synchronous>, transform_indices = @transform_1, window_bounds = array<i64: 768, 768>}, {pipeline_mode = #tpu.pipeline_mode<synchronous>, transform_indices = @transform_2, window_bounds = array<i64: 1, 768>}, {pipeline_mode = #tpu.pipeline_mode<synchronous>, transform_indices = @transform_3, window_bounds = array<i64: 768, 192>}, {pipeline_mode = #tpu.pipeline_mode<synchronous>, transform_indices = @transform_4, window_bounds = array<i64: 1, 192>}, {pipeline_mode = #tpu.pipeline_mode<synchronous>, transform_indices = @transform_5, window_bounds = array<i64: 192, 4>}, {pipeline_mode = #tpu.pipeline_mode<synchronous>, transform_indices = @transform_6, window_bounds = array<i64: 1, 4>}, {transform_indices = @transform_7, window_bounds = array<i64: 1, 768, 384>}, {transform_indices = @transform_8, window_bounds = array<i64: 1, 1, 384>}, {transform_indices = @transform_9, window_bounds = array<i64: 2, 384>}]} {
    %c0 = arith.constant 0 : index
    %c0_0 = arith.constant 0 : index
    %0 = vector.load %arg2[%c0, %c0_0] : memref<2x768xf32, #tpu.memory_space<vmem>>, vector<2x768xf32>
    %c0_i32 = arith.constant 0 : i32
    %1 = arith.cmpi eq, %arg1, %c0_i32 : i32
    %2 = arith.extui %1 : i1 to i32
    %c0_i32_1 = arith.constant 0 : i32
    %3 = arith.cmpi ne, %2, %c0_i32_1 : i32
    scf.if %3 {
      %30 = arith.truncf %0 : vector<2x768xf32> to vector<2x768xbf16>
      %c0_17 = arith.constant 0 : index
      %c0_18 = arith.constant 0 : index
      %31 = vector.load %arg3[%c0_17, %c0_18] : memref<768x768xbf16, #tpu.memory_space<vmem>>, vector<768x768xbf16>
      %cst_19 = arith.constant dense<0.000000e+00> : vector<2x768xf32>
      %32 = tpu.matmul %30, %31, %cst_19 {dimension_numbers = #tpu.dot_dimension_numbers<[1], [0], [0], [1], [0, 0, 1, 1], [], []>} : vector<2x768xbf16>, vector<768x768xbf16>, vector<2x768xf32> -> vector<2x768xf32>
      %c0_20 = arith.constant 0 : index
      %c0_21 = arith.constant 0 : index
      %33 = vector.load %arg4[%c0_20, %c0_21] : memref<1x768xf32, #tpu.memory_space<vmem>>, vector<1x768xf32>
      %34 = vector.broadcast %33 : vector<1x768xf32> to vector<2x768xf32>
      %35 = arith.addf %32, %34 : vector<2x768xf32>
      %c0_22 = arith.constant 0 : index
      %c0_23 = arith.constant 0 : index
      %36 = vector.load %arg5[%c0_22, %c0_23] : memref<768x192xf32, #tpu.memory_space<vmem>>, vector<768x192xf32>
      %cst_24 = arith.constant dense<0.000000e+00> : vector<2x192xf32>
      %37 = tpu.matmul %35, %36, %cst_24 {dimension_numbers = #tpu.dot_dimension_numbers<[1], [0], [0], [1], [0, 0, 1, 1], [], []>} : vector<2x768xf32>, vector<768x192xf32>, vector<2x192xf32> -> vector<2x192xf32>
      %c0_25 = arith.constant 0 : index
      %c0_26 = arith.constant 0 : index
      %38 = vector.load %arg6[%c0_25, %c0_26] : memref<1x192xf32, #tpu.memory_space<vmem>>, vector<1x192xf32>
      %39 = vector.broadcast %38 : vector<1x192xf32> to vector<2x192xf32>
      %40 = arith.addf %37, %39 : vector<2x192xf32>
      %cst_27 = arith.constant 0.000000e+00 : f32
      %41 = vector.broadcast %cst_27 : f32 to vector<2x192xf32>
      %42 = arith.maximumf %40, %41 : vector<2x192xf32>
      %c0_28 = arith.constant 0 : index
      %c0_29 = arith.constant 0 : index
      %43 = vector.load %arg7[%c0_28, %c0_29] : memref<192x4xf32, #tpu.memory_space<vmem>>, vector<192x4xf32>
      %cst_30 = arith.constant dense<0.000000e+00> : vector<2x4xf32>
      %44 = tpu.matmul %42, %43, %cst_30 {dimension_numbers = #tpu.dot_dimension_numbers<[1], [0], [0], [1], [0, 0, 1, 1], [], []>} : vector<2x192xf32>, vector<192x4xf32>, vector<2x4xf32> -> vector<2x4xf32>
      %c0_31 = arith.constant 0 : index
      %c0_32 = arith.constant 0 : index
      %45 = vector.load %arg8[%c0_31, %c0_32] : memref<1x4xf32, #tpu.memory_space<vmem>>, vector<1x4xf32>
      %46 = vector.broadcast %45 : vector<1x4xf32> to vector<2x4xf32>
      %47 = arith.addf %44, %46 : vector<2x4xf32>
      %c0_33 = arith.constant 0 : index
      %c0_34 = arith.constant 0 : index
      %48 = vector.load %arg12[%c0_33, %c0_34] : memref<2x4xf32, #tpu.memory_space<vmem>>, vector<2x4xf32>
      tpu.vector_store %arg12[%c0_33, %c0_34], %47 {strides = array<i32>} : memref<2x4xf32, #tpu.memory_space<vmem>>, vector<2x4xf32>,
      %c0_i32_35 = arith.constant 0 : i32
      %49 = arith.cmpi eq, %arg0, %c0_i32_35 : i32
      %50 = arith.extui %49 : i1 to i32
      %c0_i32_36 = arith.constant 0 : i32
      %51 = arith.cmpi ne, %50, %c0_i32_36 : i32
      scf.if %51 {
        %55 = vector.extract_strided_slice %35 {offsets = [0, 0], sizes = [2, 384], strides = [1, 1]} : vector<2x768xf32> to vector<2x384xf32>
        %c0_38 = arith.constant 0 : index
        %c0_39 = arith.constant 0 : index
        %56 = vector.load %arg13[%c0_38, %c0_39] : memref<2x384xf32, #tpu.memory_space<vmem>>, vector<2x384xf32>
        tpu.vector_store %arg13[%c0_38, %c0_39], %55 {strides = array<i32>} : memref<2x384xf32, #tpu.memory_space<vmem>>, vector<2x384xf32>,
      } else {
      }
      %c1_i32 = arith.constant 1 : i32
      %52 = arith.cmpi eq, %arg0, %c1_i32 : i32
      %53 = arith.extui %52 : i1 to i32
      %c0_i32_37 = arith.constant 0 : i32
      %54 = arith.cmpi ne, %53, %c0_i32_37 : i32
      scf.if %54 {
        %55 = vector.extract_strided_slice %35 {offsets = [0, 384], sizes = [2, 384], strides = [1, 1]} : vector<2x768xf32> to vector<2x384xf32>
        %c0_38 = arith.constant 0 : index
        %c0_39 = arith.constant 0 : index
        %56 = vector.load %arg13[%c0_38, %c0_39] : memref<2x384xf32, #tpu.memory_space<vmem>>, vector<2x384xf32>
        tpu.vector_store %arg13[%c0_38, %c0_39], %55 {strides = array<i32>} : memref<2x384xf32, #tpu.memory_space<vmem>>, vector<2x384xf32>,
      } else {
      }
    } else {
    }
    %c0_2 = arith.constant 0 : index
    %c0_3 = arith.constant 0 : index
    %4 = vector.load %arg12[%c0_2, %c0_3] : memref<2x4xf32, #tpu.memory_space<vmem>>, vector<2x4xf32>
    %5 = tpu.iota {dimensions = array<i32: 1>} : vector<2x4xi32>
    %6 = vector.broadcast %arg1 : i32 to vector<2x4xi32>
    %7 = arith.cmpi eq, %5, %6 : vector<2x4xi32>
    %cst = arith.constant 0.000000e+00 : f32
    %8 = vector.broadcast %cst : f32 to vector<2x4xf32>
    %9 = arith.select %7, %4, %8 : vector<2x4xi1>, vector<2x4xf32>
    %cst_4 = arith.constant dense<0.000000e+00> : vector<2xf32>
    %10 = vector.multi_reduction <add>, %9, %cst_4 [1] : vector<2x4xf32> to vector<2xf32>
    %11 = vector.shape_cast %10 : vector<2xf32> to vector<2x1xf32>
    %12 = vector.broadcast %11 : vector<2x1xf32> to vector<2x768xf32>
    %13 = arith.mulf %12, %0 : vector<2x768xf32>
    %14 = arith.truncf %13 : vector<2x768xf32> to vector<2x768xbf16>
    %c0_5 = arith.constant 0 : index
    %c0_6 = arith.constant 0 : index
    %c0_7 = arith.constant 0 : index
    %15 = vector.load %arg9[%c0_5, %c0_6, %c0_7] : memref<1x768x384xbf16, #tpu.memory_space<vmem>>, vector<1x768x384xbf16>
    %16 = vector.shape_cast %15 : vector<1x768x384xbf16> to vector<768x384xbf16>
    %cst_8 = arith.constant dense<0.000000e+00> : vector<2x384xf32>
    %17 = tpu.matmul %14, %16, %cst_8 {dimension_numbers = #tpu.dot_dimension_numbers<[1], [0], [0], [1], [0, 0, 1, 1], [], []>} : vector<2x768xbf16>, vector<768x384xbf16>, vector<2x384xf32> -> vector<2x384xf32>
    %c0_9 = arith.constant 0 : index
    %c0_10 = arith.constant 0 : index
    %18 = vector.load %arg13[%c0_9, %c0_10] : memref<2x384xf32, #tpu.memory_space<vmem>>, vector<2x384xf32>
    %19 = arith.addf %18, %17 : vector<2x384xf32>
    %c0_11 = arith.constant 0 : index
    %c0_12 = arith.constant 0 : index
    %c0_13 = arith.constant 0 : index
    %20 = vector.load %arg10[%c0_11, %c0_12, %c0_13] : memref<1x1x384xf32, #tpu.memory_space<vmem>>, vector<1x1x384xf32>
    %21 = vector.shape_cast %20 : vector<1x1x384xf32> to vector<1x384xf32>
    %22 = vector.broadcast %11 : vector<2x1xf32> to vector<2x384xf32>
    %23 = vector.broadcast %21 : vector<1x384xf32> to vector<2x384xf32>
    %24 = arith.mulf %22, %23 : vector<2x384xf32>
    %25 = arith.addf %19, %24 : vector<2x384xf32>
    %c0_14 = arith.constant 0 : index
    %c0_15 = arith.constant 0 : index
    %26 = vector.load %arg13[%c0_14, %c0_15] : memref<2x384xf32, #tpu.memory_space<vmem>>, vector<2x384xf32>
    tpu.vector_store %arg13[%c0_14, %c0_15], %25 {strides = array<i32>} : memref<2x384xf32, #tpu.memory_space<vmem>>, vector<2x384xf32>,
    %c3_i32 = arith.constant 3 : i32
    %27 = arith.cmpi eq, %arg1, %c3_i32 : i32
    %28 = arith.extui %27 : i1 to i32
    %c0_i32_16 = arith.constant 0 : i32
    %29 = arith.cmpi ne, %28, %c0_i32_16 : i32
    scf.if %29 {
      %c0_17 = arith.constant 0 : index
      %c0_18 = arith.constant 0 : index
      %30 = vector.load %arg13[%c0_17, %c0_18] : memref<2x384xf32, #tpu.memory_space<vmem>>, vector<2x384xf32>
      %c0_19 = arith.constant 0 : index
      %c0_20 = arith.constant 0 : index
      %31 = vector.load %arg11[%c0_19, %c0_20] : memref<2x384xf32, #tpu.memory_space<vmem>>, vector<2x384xf32>
      tpu.vector_store %arg11[%c0_19, %c0_20], %30 {strides = array<i32>} : memref<2x384xf32, #tpu.memory_space<vmem>>, vector<2x384xf32>,
    } else {
    }
    return
  }
  func.func @transform_0(%arg0: i32, %arg1: i32) -> (i32, i32) {
    %c0_i32 = arith.constant 0 : i32
    %c0_i32_0 = arith.constant 0 : i32
    %c0_i32_1 = arith.constant 0 : i32
    return %c0_i32, %c0_i32_0 : i32, i32
  }
  func.func @transform_1(%arg0: i32, %arg1: i32) -> (i32, i32) {
    %c0_i32 = arith.constant 0 : i32
    %c0_i32_0 = arith.constant 0 : i32
    %c0_i32_1 = arith.constant 0 : i32
    return %c0_i32, %c0_i32_0 : i32, i32
  }
  func.func @transform_2(%arg0: i32, %arg1: i32) -> (i32, i32) {
    %c0_i32 = arith.constant 0 : i32
    %c0_i32_0 = arith.constant 0 : i32
    %c0_i32_1 = arith.constant 0 : i32
    return %c0_i32, %c0_i32_0 : i32, i32
  }
  func.func @transform_3(%arg0: i32, %arg1: i32) -> (i32, i32) {
    %c0_i32 = arith.constant 0 : i32
    %c0_i32_0 = arith.constant 0 : i32
    %c0_i32_1 = arith.constant 0 : i32
    return %c0_i32, %c0_i32_0 : i32, i32
  }
  func.func @transform_4(%arg0: i32, %arg1: i32) -> (i32, i32) {
    %c0_i32 = arith.constant 0 : i32
    %c0_i32_0 = arith.constant 0 : i32
    %c0_i32_1 = arith.constant 0 : i32
    return %c0_i32, %c0_i32_0 : i32, i32
  }
  func.func @transform_5(%arg0: i32, %arg1: i32) -> (i32, i32) {
    %c0_i32 = arith.constant 0 : i32
    %c0_i32_0 = arith.constant 0 : i32
    %c0_i32_1 = arith.constant 0 : i32
    return %c0_i32, %c0_i32_0 : i32, i32
  }
  func.func @transform_6(%arg0: i32, %arg1: i32) -> (i32, i32) {
    %c0_i32 = arith.constant 0 : i32
    %c0_i32_0 = arith.constant 0 : i32
    %c0_i32_1 = arith.constant 0 : i32
    return %c0_i32, %c0_i32_0 : i32, i32
  }
  func.func @transform_7(%arg0: i32, %arg1: i32) -> (i32, i32, i32) {
    %c0_i32 = arith.constant 0 : i32
    %c0_i32_0 = arith.constant 0 : i32
    return %arg1, %c0_i32, %arg0 : i32, i32, i32
  }
  func.func @transform_8(%arg0: i32, %arg1: i32) -> (i32, i32, i32) {
    %c0_i32 = arith.constant 0 : i32
    %c0_i32_0 = arith.constant 0 : i32
    return %arg1, %c0_i32, %arg0 : i32, i32, i32
  }
  func.func @transform_9(%arg0: i32, %arg1: i32) -> (i32, i32) {
    %c0_i32 = arith.constant 0 : i32
    %c0_i32_0 = arith.constant 0 : i32
    return %c0_i32, %arg0 : i32, i32
  }
}

</mosaic_0001>

<bundles_post_ra>
// kernel: tpu_custom_call.1
= control target key start
LH: loop header
LB: loop body
LE: loop exit
PB: predicated region body
PF: predicated region fallthrough
CT: control target
= control target key end

     0   :  { %s8078_s0 = inlined_call_operand.hbm [shape: f32[2,768], index: 0, kind: input, shape index: {}]   ;;  %s8079_s1 = inlined_call_operand.hbm [shape: bf16[768,768], index: 1, kind: input, shape index: {}]   ;;  %s8080_s2 = inlined_call_operand.hbm [shape: f32[1,768], index: 2, kind: input, shape index: {}]   ;;  %s8081_s3 = inlined_call_operand.vmem [shape: f32[768,192], index: 3, kind: input, shape index: {}]   ;;  %s8082_s4 = inlined_call_operand.hbm [shape: f32[1,192], index: 4, kind: input, shape index: {}]   ;;  %s8083_s5 = inlined_call_operand.vmem [shape: f32[192,4], index: 5, kind: input, shape index: {}]   ;;  %s8084_s6 = inlined_call_operand.hbm [shape: f32[1,4], index: 6, kind: input, shape index: {}]   ;;  %s8085_s7 = inlined_call_operand.hbm [shape: bf16[4,768,768], index: 7, kind: input, shape index: {}]   ;;  %s8086_s8 = inlined_call_operand.hbm [shape: f32[4,1,768], index: 8, kind: input, shape index: {}]   ;;  %s8087_s9 = inlined_call_operand.hbm [shape: f32[2,768], index: 9, kind: output, shape index: {}]  }
   0x1   :  { %8115 = sst [smem:[#allocation33_spill]] %s8079_s1 }
   0x2   :  { %8116 = sst [smem:[#allocation34_spill]] %s8081_s3 }
   0x3   :  { %8117 = sst [smem:[#allocation35_spill]] %s8082_s4 }
   0x4   :  { %8118 = sst [smem:[#allocation36_spill]] %s8083_s5 }
   0x5   :  { %8119 = sst [smem:[#allocation37_spill]] %s8085_s7 }
   0x6   :  { %8120 = sst [smem:[#allocation38_spill]] %s8087_s9 }
   0x7   :  { %14 = vsyncpa [#allocation5], 0 }
   0x8   :  { %15 = vsyncpa [#allocation8], 0 }
   0x9   :  { %16 = vsyncpa [#allocation11], 0 }
   0xa   :  { %17 = vsyncpa [#allocation14], 0 }
   0xb   :  { %19 = vsyncpa [#allocation14 + $0x1], 0 }
   0xc   :  { %20 = vsyncpa [#allocation6], 0 }
   0xd   :  { %22 = vsyncpa [#allocation6 + $0x1], 0  ;;  %s6717_s30 = smov 0   ;;  %s6719_s10 = smov 0  }
   0xe   :  { %s6721_s11 = smov 0   ;;  %s6723_s12 = smov 0  }
   0xf   :  { %s6725_s13 = smov 0   ;;  %s6727_s14 = smov 0  }
  0x10   :  { %s6729_s15 = smov 0   ;;  %s6731_s16 = smov 0  }
  0x11   :  { %s6733_s17 = smov 0   ;;  %s6735_s18 = smov 0  }
  0x12   :  { %s6737_s19 = smov 0  }
  0x13 LB: > { %8121 = sst [smem:[#allocation22_spill]] %s6610_s30  ;;  %s6771_s20 = sadd.s32 4294967295, %s6650_s19   ;;  %s6650_s19 = sphi %s6737_s19, %s28_s19   ;;  %s6646_s18 = sphi %s6735_s18, %s8187_s18   ;;  %s6642_s17 = sphi %s6733_s17, %s8186_s17   ;;  %s6638_s16 = sphi %s6731_s16, %s8185_s16   ;;  %s6634_s15 = sphi %s6729_s15, %s8184_s15   ;;  %s6630_s14 = sphi %s6727_s14, %s8183_s14   ;;  %s6626_s13 = sphi %s6725_s13, %s8182_s13   ;;  %s6622_s12 = sphi %s6723_s12, %s8176_s12   ;;  %s6618_s11 = sphi %s6721_s11, %s8181_s11   ;;  %s6614_s10 = sphi %s6719_s10, %s8180_s10   ;;  %s6610_s30 = sphi %s6717_s30, %s8175_s30  }
  0x14   : > { %8122 = sst [smem:[#allocation23_spill]] %s6614_s10  ;;  %s4726_s21 = sadd.s32 4294967294, %s6650_s19  }
  0x15   : > { %8123 = sst [smem:[#allocation24_spill]] %s6626_s13  ;;  %p209_p0 = scmp.ne.s32.totalorder %s6626_s13, %s6622_s12 }
  0x16   : > { %8124 = sst [smem:[#allocation25_spill]] %s6634_s15  ;;  %p8093_p1 = scmp.eq.s32.totalorder %s6771_s20, 0 }
  0x17   : > { %8125 = sst [smem:[#allocation26_spill]] %s6638_s16  ;;  %p260_p2 = scmp.ne.s32.totalorder %s6618_s11, %s6614_s10 }
  0x18   : > { %p261_p3 = scmp.eq.s32.totalorder %s6771_s20, 7  ;;  %p6781_p4 = por %p8093_p1, %p209_p0 }
  0x19   : > { %p266_p5 = scmp.ne.s32.totalorder %s6614_s10, %s6610_s30  ;;  %p267_p7 = scmp.eq.s32.totalorder %s4726_s21, 7 }
  0x1a   : > { %s8126_s22 = scalar_select %p6781_p4, 1, 0 }
  0x1b   : > { %p6787_p6 = por %p261_p3, %p260_p2  ;;  %p4727_p8 = scmp.ge.s32.totalorder %s6650_s19, 1 }
  0x1c   : > { %8127 = sst [smem:[#allocation27_spill]] %s8126_s22  ;;  %p274_p9 = scmp.lt.s32.totalorder %s6650_s19, 9 }
  0x1d   : > { %s8128_s23 = scalar_select %p6787_p6, 1, 0 }
  0x1e   : > { %p6793_p10 = por %p267_p7, %p266_p5  ;;  %p6797_p11 = pnand %p4727_p8, %p274_p9 }
  0x1f   : > { %8129 = sst [smem:[#allocation28_spill]] %s8128_s23  ;;  %s6652_s26 = smov [#allocation7]  }
  0x20   : > { %s8130_s24 = scalar_select %p6793_p10, 1, 0 }
  0x21   : > { %s8132_s25 = scalar_select %p6797_p11, 1, 0 }
  0x22   : > { %8131 = sst [smem:[#allocation29_spill]] %s8130_s24  ;;  %s297_s27 = sshll.u32 %s6652_s26, 4  ;;  %s298_s27 = int_to_ptr.vmem [resolvable:$true] %s297_s27 }
  0x23   : > { %p5553_p12 = pneg %p6797_p11  ;;  %s6653_s29 = smov [#allocation10]  }
  0x24   : > { %s325_s12 = sshll.u32 %s6653_s29, 4  ;;  %s8134_s1 = sld [smem:[#allocation33_spill]]  ;;  %s6809_s12 = int_to_ptr.vmem [resolvable:$true] %s325_s12 }
  0x25   : > { %p6805_p13 = pnand %p5553_p12, %p8093_p1 }
  0x27   : > { %s8133_s28 = scalar_select %p6805_p13, 1, 0 }
  0x28   : > { %p6819_p2 = pneg %p6805_p13 }
  0x2a   : > { %s6316_s30 = scalar_lea.hbm %s8134_s1, 36864 }
  0x2b   : > { %p6317_p0 = scmp.ne.s32.totalorder %s8134_s1, %s6316_s30  ;;  %p6323_p7 = scmp.lt.u32.totalorder %s6316_s30, %s8134_s1 }
  0x2d   : > { %p6319_p3 = pnand %p6819_p2, %p6317_p0 }
  0x2f   : > { %p6320_p5 = pneg %p6319_p3 }
  0x31   : > { %p6325_p8 = pnand %p6323_p7, %p6320_p5 }
  0x33   : > { %6328 = shalt.err (!%p6325_p8)
}
  0x34   : > { %s6329_s24 = scalar_lea.vmem %s298_s27, 36864  ;;  %p6337_p10 = scmp.lt.s32.totalorder %s298_s27, %s298_s27 }
  0x35   : > { %p6330_p9 = scmp.ne.s32.totalorder %s298_s27, %s6329_s24  ;;  %p6338_p6 = scmp.lt.s32.totalorder %s6329_s24, %s6329_s24 }
  0x37   : > { %p6332_p12 = pnand %p6330_p9, %p6819_p2  ;;  %p6339_p4 = por %p6338_p6, %p6337_p10 }
  0x39   : > { %p6333_p1 = pneg %p6332_p12 }
  0x3b   : > { %p6340_p11 = pnand %p6339_p4, %p6333_p1 }
  0x3d   : > { %6343 = shalt.err (!%p6340_p11)
}
  0x3e   : > { %s8102_s9 = smov 384   ;;  %s6655_s23 = smov 24  }
  0x3f   : > { %5559 = dma.hbm_to_vmem [thread:$0]  (!%p6805_p13), %s8134_s1, 36864, %s298_s27, [#allocation8], %s8102_s9, %s8102_s9, %s6655_s23  }
  0x40   : > { %s8136_s4 = sld [smem:[#allocation35_spill]] }
  0x46   : > { %s6344_s5 = scalar_lea.hbm %s8136_s4, 32 }
  0x47   : > { %p6345_p1 = scmp.ne.s32.totalorder %s8136_s4, %s6344_s5  ;;  %p6351_p10 = scmp.lt.u32.totalorder %s6344_s5, %s8136_s4 }
  0x49   : > { %p6347_p4 = pnand %p6345_p1, %p6819_p2 }
  0x4b   : > { %p6348_p6 = pneg %p6347_p4 }
  0x4d   : > { %p6353_p11 = pnand %p6351_p10, %p6348_p6 }
  0x4f   : > { %6356 = shalt.err (!%p6353_p11)
}
  0x50   : > { %s6357_s27 = scalar_lea.vmem %s6809_s12, 32  ;;  %p6365_p7 = scmp.lt.s32.totalorder %s6809_s12, %s6809_s12 }
  0x51   : > { %p6358_p0 = scmp.ne.s32.totalorder %s6809_s12, %s6357_s27  ;;  %p6366_p8 = scmp.lt.s32.totalorder %s6357_s27, %s6357_s27 }
  0x53   : > { %p6360_p3 = pnand %p6358_p0, %p6819_p2  ;;  %p6367_p9 = por %p6366_p8, %p6365_p7 }
  0x55   : > { %p6361_p5 = pneg %p6360_p3 }
  0x57   : > { %p6368_p12 = pnand %p6367_p9, %p6361_p5 }
  0x59   : > { %6371 = shalt.err (!%p6368_p12)
}
  0x5a   : > { %5565 = dma.hbm_to_vmem [thread:$0]  (!%p6805_p13), %s8136_s4, 32, %s6809_s12, [#allocation11]  }
  0x5b   : > { %s37_s10 = sadd.s32 1, %s6642_s17  ;;  %s40_s15 = sadd.s32 1, %s6646_s18 }
  0x5c   : > { %p38_p1 = scmp.ge.s32.totalorder %s37_s10, 4  ;;  %s196_s23 = sadd.s32 1, %s6630_s14 }
  0x5d   : > { %p203_p4 = scmp.ne.s32.totalorder %s6630_s14, %s6626_s13  ;;  %p204_p6 = scmp.eq.s32.totalorder %s6650_s19, 0 }
  0x5e   : > { %s8189_s10 = smov (%p38_p1, %s37_s10), 0  ;;  %s8191_s15 = smov (!%p38_p1, %s40_s15), %s6646_s18 }
  0x5f   : > { %8137 = sst [smem:[#allocation30_spill]] %s8189_s10  ;;  %s191_s30 = ssub.s32 %s6642_s17, %s8189_s10 }
  0x60   : > { %p42_p10 = scmp.ge.s32.totalorder %s8191_s15, 2  ;;  %s250_s12 = sadd.s32 1, %s6618_s11 }
  0x61   : > { %p6872_p11 = por %p204_p6, %p203_p4  ;;  %p5585_p0 = scmp.lt.s32.totalorder %s6650_s19, 8 }
  0x62   : > { %s8193_s15 = smov (%p42_p10, %s8191_s15), 0  ;;  %s350_s21 = sand.u32 1, %s6650_s19  }
  0x63   : > { %8139 = sst [smem:[#allocation31_spill]] %s8193_s15  ;;  %s8110_s29 = sand.u32 1, %s6630_s14  }
  0x64   : > { %s192_s24 = ssub.s32 %s6646_s18, %s8193_s15  ;;  %s5520_s3 = smul.u32 1152, %s8110_s29 }
  0x65   : > { %s193_s27 = sor.u32 %s192_s24, %s191_s30  ;;  %p248_p3 = scmp.eq.s32.totalorder %s192_s24, 0 }
  0x66   : > { %p194_p5 = scmp.eq.s32.totalorder %s193_s27, 0  ;;  %s8109_s1 = smul.u32 3, %s6646_s18 }
  0x67   : > { %s6886_s5 = scalar_select %p248_p3, %s6618_s11, %s250_s12  }
  0x68   : > { %s6889_s9 = scalar_select %p194_p5, %s6630_s14, %s196_s23  }
  0x69   : > { %s5521_s4 = smul.u32 576, %s6642_s17  ;;  %s354_s10 = scalar_lea.vmem [#allocation13], %s5520_s3 }
  0x6a   : > { %8140 = sst [smem:[#allocation32_spill]] %s6889_s9  ;;  %s363_s22 = sshll.u32 %s354_s10, 4  ;;  %s6893_s22 = int_to_ptr.vmem [resolvable:$true] %s363_s22 }
  0x6b   : > { %p6899_p7 = pnand %p5585_p0, %p6872_p11  ;;  %s360_s30 = sadd.s32 %s5521_s4, %s8109_s1 }
  0x6c   : > { %s4734_s12 = sshll.u32 %s360_s30, 6  ;;  %s8142_s7 = sld [smem:[#allocation37_spill]] }
  0x6d   : > { %s8141_s13 = scalar_select %p6899_p7, 1, 0 }
  0x6e   : > { %s6910_s10 = scalar_lea.sflag [#allocation14], %s350_s21  ;;  %p8112_p9 = pneg %p6899_p7 }
  0x72   : > { %s6908_s27 = scalar_lea.hbm %s8142_s7, %s4734_s12  ;;  %s6377_s30 = scalar_lea.hbm %s8142_s7, 147456 }
  0x73   : > { %s6372_s16 = scalar_lea.hbm %s6908_s27, 18432  ;;  %p6378_p4 = scmp.lt.u32.totalorder %s6908_s27, %s8142_s7 }
  0x74   : > { %p6373_p8 = scmp.ne.s32.totalorder %s6908_s27, %s6372_s16  ;;  %p6379_p6 = scmp.lt.u32.totalorder %s6377_s30, %s6372_s16 }
  0x75   : > { %p6381_p11 = scmp.lt.u32.totalorder %s6372_s16, %s6908_s27 }
  0x76   : > { %p6375_p12 = pnand %p8112_p9, %p6373_p8  ;;  %p6380_p10 = por %p6379_p6, %p6378_p4 }
  0x78   : > { %p6376_p1 = pneg %p6375_p12  ;;  %p6382_p0 = por %p6381_p11, %p6380_p10 }
  0x7a   : > { %p6383_p3 = pnand %p6382_p0, %p6376_p1 }
  0x7c   : > { %6386 = shalt.err (!%p6383_p3)
}
  0x7d   : > { %s6387_s21 = scalar_lea.vmem %s6893_s22, 18432  ;;  %s6656_s23 = smov [#allocation13]  }
  0x7e   : > { %p6388_p5 = scmp.ne.s32.totalorder %s6893_s22, %s6387_s21  ;;  %s6392_s4 = sshll.u32 %s6656_s23, 4  ;;  %s6393_s4 = int_to_ptr.vmem [resolvable:$false] %s6392_s4 }
  0x7f   : > { %s6394_s3 = scalar_lea.vmem %s6393_s4, 36864  ;;  %p6395_p13 = scmp.lt.s32.totalorder %s6893_s22, %s6393_s4 }
  0x80   : > { %p6390_p8 = pnand %p6388_p5, %p8112_p9  ;;  %p6396_p4 = scmp.lt.s32.totalorder %s6394_s3, %s6387_s21 }
  0x82   : > { %p6391_p12 = pneg %p6390_p8  ;;  %p6397_p6 = por %p6396_p4, %p6395_p13 }
  0x84   : > { %p6398_p10 = pnand %p6397_p6, %p6391_p12 }
  0x86   : > { %6401 = shalt.err (!%p6398_p10)
}
  0x87   : > { %s6657_s16 = smov 192   ;;  %s6658_s30 = smov 12  }
  0x88   : > { %s8143_s12 = smov 384   ;;  %s6659_s24 = smov [#allocation4]  }
  0x89   : > { %5572 = dma.hbm_to_vmem [thread:$0]  (!%p6899_p7), %s6908_s27, 18432, %s6893_s22, %s6910_s10, %s8143_s12, %s6657_s16, %s6658_s30  }
  0x8a   : > { %s287_s1 = sshll.u32 %s6659_s24, 4  ;;  %s6660_s23 = smov [#allocation9]   ;;  %s288_s1 = int_to_ptr.vmem [resolvable:$true] %s287_s1 }
  0x8b   : > { %s311_s29 = sshll.u32 %s6660_s23, 4  ;;  %s6402_s3 = scalar_lea.hbm %s8078_s0, 192  ;;  %s6939_s29 = int_to_ptr.vmem [resolvable:$true] %s311_s29 }
  0x8c   : > { %p6403_p13 = scmp.ne.s32.totalorder %s8078_s0, %s6402_s3  ;;  %p6409_p0 = scmp.lt.u32.totalorder %s6402_s3, %s8078_s0 }
  0x8e   : > { %p6405_p1 = pnand %p6403_p13, %p6819_p2 }
  0x90   : > { %p6406_p11 = pneg %p6405_p1 }
  0x92   : > { %p6411_p3 = pnand %p6409_p0, %p6406_p11 }
  0x94   : > { %6414 = shalt.err (!%p6411_p3)
}
  0x95   : > { %s6415_s27 = scalar_lea.vmem %s288_s1, 192  ;;  %p6423_p4 = scmp.lt.s32.totalorder %s288_s1, %s288_s1 }
  0x96   : > { %p6416_p5 = scmp.ne.s32.totalorder %s288_s1, %s6415_s27  ;;  %p6424_p6 = scmp.lt.s32.totalorder %s6415_s27, %s6415_s27 }
  0x98   : > { %p6418_p8 = pnand %p6416_p5, %p6819_p2  ;;  %p6425_p10 = por %p6424_p6, %p6423_p4 }
  0x9a   : > { %p6419_p12 = pneg %p6418_p8 }
  0x9c   : > { %p6426_p9 = pnand %p6425_p10, %p6419_p12 }
  0x9e   : > { %6429 = shalt.err (!%p6426_p9)
}
  0x9f   : > { %p8144_p13 = scmp.ne.s32.totalorder %s8133_s28, 0  ;;  %s6430_s30 = scalar_lea.hbm %s8080_s2, 96 }
  0xa0   : > { %p6431_p1 = scmp.ne.s32.totalorder %s8080_s2, %s6430_s30  ;;  %p6437_p9 = scmp.lt.u32.totalorder %s6430_s30, %s8080_s2 }
  0xa1   : > { %5556 = dma.hbm_to_vmem [thread:$0]  (!%p8144_p13), %s8078_s0, 192, %s288_s1, [#allocation5]  }
  0xa2   : > { %p6433_p11 = pnand %p6431_p1, %p6819_p2 }
  0xa4   : > { %p6434_p0 = pneg %p6433_p11 }
  0xa6   : > { %p6439_p3 = pnand %p6437_p9, %p6434_p0 }
  0xa8   : > { %6442 = shalt.err (!%p6439_p3)
}
  0xa9   : > { %s6443_s1 = scalar_lea.vmem %s6939_s29, 96  ;;  %p6451_p4 = scmp.lt.s32.totalorder %s6939_s29, %s6939_s29 }
  0xaa   : > { %p6444_p5 = scmp.ne.s32.totalorder %s6939_s29, %s6443_s1  ;;  %p6452_p6 = scmp.lt.s32.totalorder %s6443_s1, %s6443_s1 }
  0xac   : > { %p6446_p8 = pnand %p6444_p5, %p6819_p2  ;;  %p6453_p10 = por %p6452_p6, %p6451_p4 }
  0xae   : > { %p6447_p12 = pneg %p6446_p8 }
  0xb0   : > { %p6454_p1 = pnand %p6453_p10, %p6447_p12 }
  0xb2   : > { %6457 = shalt.err (!%p6454_p1)
}
  0xb3   : > { %5562 = dma.hbm_to_vmem [thread:$0]  (!%p8144_p13), %s8080_s2, 96, %s6939_s29, [#allocation8]  }
  0xb4   : > { %s8145_s22 = sand.u32 1, %s6630_s14   ;;  %s6661_s7 = smov [#allocation12]  }
  0xb5   : > { %s5522_s27 = smul.u32 3, %s8145_s22  ;;  %s339_s15 = sshll.u32 %s6661_s7, 4  ;;  %s340_s15 = int_to_ptr.vmem [resolvable:$true] %s339_s15 }
  0xb6   : > { %s5523_s9 = smul.u32 6, %s6642_s17  ;;  %s6458_s12 = scalar_lea.hbm %s8084_s6, 16 }
  0xb7   : > { %p6459_p11 = scmp.ne.s32.totalorder %s8084_s6, %s6458_s12  ;;  %p6465_p3 = scmp.lt.u32.totalorder %s6458_s12, %s8084_s6 }
  0xb9   : > { %p6461_p0 = pnand %p6459_p11, %p6819_p2 }
  0xbb   : > { %p6462_p9 = pneg %p6461_p0 }
  0xbd   : > { %p6467_p5 = pnand %p6465_p3, %p6462_p9 }
  0xbf   : > { %6470 = shalt.err (!%p6467_p5)
}
  0xc0   : > { %s6471_s29 = scalar_lea.vmem %s340_s15, 16  ;;  %s6478_s4 = scalar_lea.vmem %s340_s15, 32 }
  0xc1   : > { %p6472_p8 = scmp.ne.s32.totalorder %s340_s15, %s6471_s29  ;;  %p6479_p6 = scmp.lt.s32.totalorder %s340_s15, %s340_s15 }
  0xc2   : > { %p6480_p10 = scmp.lt.s32.totalorder %s6478_s4, %s6471_s29 }
  0xc3   : > { %p6474_p12 = pnand %p6472_p8, %p6819_p2 }
  0xc4   : > { %p6481_p1 = por %p6480_p10, %p6479_p6 }
  0xc5   : > { %p6475_p4 = pneg %p6474_p12 }
  0xc7   : > { %p6482_p7 = pnand %p6481_p1, %p6475_p4 }
  0xc9   : > { %6485 = shalt.err (!%p6482_p7)
}
  0xca   : > { %5568 = dma.hbm_to_vmem [thread:$0]  (!%p8144_p13), %s8084_s6, 16, %s340_s15, [#allocation11]  }
  0xcb   : > { %s8146_s7 = smul.u32 3, %s6646_s18  ;;  %s377_s30 = scalar_lea.vmem [#allocation15], %s5522_s27 }
  0xcc   : > { %s387_s26 = sshll.u32 %s377_s30, 4  ;;  %p8147_p7 = scmp.ne.s32.totalorder %s8141_s13, 0  ;;  %s388_s26 = int_to_ptr.vmem [resolvable:$true] %s387_s26 }
  0xcd   : > { %s383_s16 = sadd.s32 %s5523_s9, %s8146_s7  ;;  %s6491_s15 = scalar_lea.hbm %s8086_s8, 384 }
  0xce   : > { %s4735_s12 = sshll.u32 %s383_s16, 4  ;;  %p8148_p11 = pneg %p8147_p7 }
  0xcf   : > { %s385_s21 = scalar_lea.hbm %s8086_s8, %s4735_s12 }
  0xd0   : > { %s6486_s1 = scalar_lea.hbm %s385_s21, 48  ;;  %p6492_p13 = scmp.lt.u32.totalorder %s385_s21, %s8086_s8 }
  0xd1   : > { %p6487_p2 = scmp.ne.s32.totalorder %s385_s21, %s6486_s1  ;;  %p6493_p3 = scmp.lt.u32.totalorder %s6491_s15, %s6486_s1 }
  0xd2   : > { %p6495_p8 = scmp.lt.u32.totalorder %s6486_s1, %s385_s21 }
  0xd3   : > { %p6489_p0 = pnand %p6487_p2, %p8148_p11  ;;  %p6494_p5 = por %p6493_p3, %p6492_p13 }
  0xd5   : > { %p6490_p9 = pneg %p6489_p0  ;;  %p6496_p12 = por %p6495_p8, %p6494_p5 }
  0xd7   : > { %p6497_p4 = pnand %p6496_p12, %p6490_p9 }
  0xd9   : > { %6500 = shalt.err (!%p6497_p4)
}
  0xda   : > { %s6501_s27 = scalar_lea.vmem %s388_s26, 48  ;;  %p8149_p10 = pmov %p8148_p11 }
  0xdb   : > { %p6502_p6 = scmp.ne.s32.totalorder %s388_s26, %s6501_s27  ;;  %s6662_s3 = smov [#allocation15]  }
  0xdc   : > { %s6506_s22 = sshll.u32 %s6662_s3, 4  ;;  %s6507_s22 = int_to_ptr.vmem [resolvable:$false] %s6506_s22 }
  0xdd   : > { %p6504_p1 = pnand %p6502_p6, %p8149_p10  ;;  %s6508_s7 = scalar_lea.vmem %s6507_s22, 96 }
  0xde   : > { %p6509_p11 = scmp.lt.s32.totalorder %s388_s26, %s6507_s22  ;;  %p6510_p0 = scmp.lt.s32.totalorder %s6508_s7, %s6501_s27 }
  0xdf   : > { %p6505_p2 = pneg %p6504_p1 }
  0xe0   : > { %p6511_p3 = por %p6510_p0, %p6509_p11 }
  0xe2   : > { %p6512_p13 = pnand %p6511_p3, %p6505_p2 }
  0xe4   : > { %6515 = shalt.err (!%p6512_p13)
}
  0xe5   : > { %5575 = dma.hbm_to_vmem [thread:$0]  (!%p8147_p7), %s385_s21, 48, %s388_s26, %s6910_s10  }
  0xe6   : > { %p8150_p9 = scmp.ne.s32.totalorder %s8132_s25, 0 }
  0xe7   : > { %p8151_p5 = scmp.eq.s32.totalorder (!%p8150_p9), %s6771_s20, 0 }
  0xe8   : > { %396 = sbr.rel (%p8150_p9) target bundleno = 1829 (0x725), region = 56 }
  0xef   : > { %6589 = dma.done.wait (%p8151_p5), [#allocation5], 192   ;;  %p8152_p8 = pmov %p8151_p5 }
  0xf0   : > { %p8153_p12 = pmov %p8151_p5 }
  0xf1   : > { %6591 = vsyncadd (%p8152_p8), [#allocation5], 4294967104 }
  0xf2   : > { %6593 = dma.done.wait (%p8153_p12), [#allocation8], 36960   ;;  %p8154_p4 = pmov %p8151_p5 }
  0xf4   : > { %6595 = vsyncadd (%p8154_p4), [#allocation8], 4294930336  ;;  %p8155_p6 = pmov %p8154_p4 }
  0xf5   : > { %p8156_p7 = pmov %p8154_p4 }
  0xf6   : > { %6597 = dma.done.wait (%p8155_p6), [#allocation11], 48  }
  0xf7   : > { %6599 = vsyncadd (%p8156_p7), [#allocation11], 4294967248  ;;  %s8157_s13 = sld [smem:[#allocation24_spill]]  ;;  %s8158_s25 = sld [smem:[#allocation27_spill]] }
  0xf8   : > { %s418_s10 = sand.u32 1, %s6771_s20  }
  0xf9   : > { %s419_s26 = scalar_lea.sflag [#allocation14], %s418_s10 }
  0xfd   : > { %s420_s16 = sand.u32 1, %s8157_s13   ;;  %p8159_p10 = scmp.ne.s32.totalorder %s8158_s25, 0 }
  0xfe   : > { %s5524_s30 = smul.u32 1152, %s420_s16 }
 0x100   : > { %s7039_s12 = scalar_lea.vmem [#allocation13], %s5524_s30 }
 0x101   : > { %6601 = dma.done.wait (%p8159_p10), %s419_s26, 18480  }
 0x102   : > { %6603 = vsyncadd (%p8159_p10), %s419_s26, 4294948816  ;;  %s8160_s24 = sld [smem:[#allocation23_spill]]  ;;  %s7045_s23 = smul.u32 3, %s420_s16  ;;  %v7052_v0 = vld [vmem:[#allocation4] sm:$0xff]  ;;  %v7054_v1 = vld [vmem:[#allocation4 + $0x8] sm:$0xf] }
 0x103   : > { %s8161_s29 = sld [smem:[#allocation25_spill]] }
 0x104   : > { %s431_s20 = scalar_lea.vmem [#allocation15], %s7045_s23 }
 0x108   : > { %s468_s21 = sand.u32 1, %s8160_s24  }
 0x109   : > { %s7050_s1 = smul.u32 6, %s468_s21  ;;  %p4742_p1 = scmp.ne.s32.totalorder %s8161_s29, 0 }
 0x10a   : > { %v5692_v2 = vld [vmem:[#allocation7 + $0x4] ss:$24 sps:$4 sm:$0xff] (!%p4742_p1)   ;;  %v487_v3 = vlaneseq (!%p4742_p1)  ;;  %v6663_v5 = vmov (!%p4742_p1), 1983009808   ;;  %v5696_v7 = vld [vmem:[#allocation7] ss:$24 sps:$4 sm:$0xff] (!%p4742_p1)  }
 0x10b   : > { %s470_s28 = scalar_lea.vmem [#allocation16], %s7050_s1  ;;  %480 = sbr.rel (%p4742_p1) target bundleno = 1315 (0x523), region = 88  ;;  %v5694_v4 = vld [vmem:[#allocation7 + $0xc] ss:$24 sps:$4 sm:$0xff] (!%p4742_p1)   ;;  %v485_v6 = vunpack.c.l.s4 (!%p4742_p1), %v6663_v5  ;;  %2280 = vmatprep.subr.bf16.mxu0 (!%p4742_p1), %v5692_v2  ;;  %v5697_v8 = vld [vmem:[#allocation7 + $0x8] ss:$24 sps:$4 sm:$0xff] (!%p4742_p1)  }
 0x10c   : > { %v7059_v9 = vshrl.u32 (!%p4742_p1), %v487_v3, 7  ;;  %2403 = vmatprep.subr.bf16.mxu1 (!%p4742_p1), %v5694_v4  ;;  %v5698_v10 = vld [vmem:[#allocation7 + $0x34] ss:$24 sps:$4 sm:$0xff] (!%p4742_p1)   ;;  %2281 = vmatpush1.bf16.msra.mxu0 (!%p4742_p1), %v5696_v7  ;;  %v5702_v13 = vld [vmem:[#allocation7 + $0x30] ss:$24 sps:$4 sm:$0xff] (!%p4742_p1)   ;;  %v483_v7 = vcombine.high (!%p4742_p1), %v7052_v0, %v7052_v0  ;;  %s8162_s9 = sld [smem:[#allocation34_spill]] (!%p4742_p1) }
 0x10d   : > { %v486_v11 = vunpack.c.0.s8 (!%p4742_p1), %v485_v6  ;;  %2404 = vmatpush1.bf16.msra.mxu1 (!%p4742_p1), %v5697_v8  ;;  %v5700_v12 = vld [vmem:[#allocation7 + $0x3c] ss:$24 sps:$4 sm:$0xff] (!%p4742_p1)   ;;  %2282 = vmatprep.subr.bf16.mxu0 (!%p4742_p1), %v5698_v10  ;;  %v5703_v14 = vld [vmem:[#allocation7 + $0x38] ss:$24 sps:$4 sm:$0xff] (!%p4742_p1)   ;;  %v5706_v17 = vld [vmem:[#allocation7 + $0x6c] ss:$24 sps:$4 sm:$0xff] (!%p4742_p1)  }
 0x10e   : > { %2405 = vmatprep.subr.bf16.mxu1 (!%p4742_p1), %v5700_v12  ;;  %v5704_v16 = vld [vmem:[#allocation7 + $0x64] ss:$24 sps:$4 sm:$0xff] (!%p4742_p1)   ;;  %v5708_v18 = vld [vmem:[#allocation7 + $0x60] ss:$24 sps:$4 sm:$0xff] (!%p4742_p1)   ;;  %v5710_v21 = vld [vmem:[#allocation7 + $0x94] ss:$24 sps:$4 sm:$0xff] (!%p4742_p1)  }
 0x10f   : > { %v7062_v15 = vsub.s32 (!%p4742_p1), %v486_v11, %v7059_v9  ;;  %v5709_v19 = vld [vmem:[#allocation7 + $0x68] ss:$24 sps:$4 sm:$0xff] (!%p4742_p1)   ;;  %v5712_v22 = vld [vmem:[#allocation7 + $0x9c] ss:$24 sps:$4 sm:$0xff] (!%p4742_p1)   ;;  %v5715_v26 = vld [vmem:[#allocation7 + $0x98] ss:$24 sps:$4 sm:$0xff] (!%p4742_p1)  }
 0x110   : > { %2283 = vmatpush1.bf16.msra.mxu0 (!%p4742_p1), %v5702_v13  ;;  %v5714_v24 = vld [vmem:[#allocation7 + $0x90] ss:$24 sps:$4 sm:$0xff] (!%p4742_p1)   ;;  %v5716_v27 = vld [vmem:[#allocation7 + $0xc4] ss:$24 sps:$4 sm:$0xff] (!%p4742_p1)   ;;  %v5720_v29 = vld [vmem:[#allocation7 + $0xc0] ss:$24 sps:$4 sm:$0xff] (!%p4742_p1)  }
 0x111   : > { %v7066_v20 = vrot.slane (!%p4742_p1), %v7052_v0, %v7062_v15  ;;  %2406 = vmatpush1.bf16.msra.mxu1 (!%p4742_p1), %v5703_v14  ;;  %2284 = vmatprep.subr.bf16.mxu0 (!%p4742_p1), %v5704_v16  ;;  %v5718_v28 = vld [vmem:[#allocation7 + $0xcc] ss:$24 sps:$4 sm:$0xff] (!%p4742_p1)   ;;  %v5721_v30 = vld [vmem:[#allocation7 + $0xc8] ss:$24 sps:$4 sm:$0xff] (!%p4742_p1)   ;;  %v5724_v32 = vld [vmem:[#allocation7 + $0xfc] ss:$24 sps:$4 sm:$0xff] (!%p4742_p1)   ;;  %v7077_v13 = vrot.slane (!%p4742_p1), %v483_v7, %v7062_v15 }
 0x112   : > { %2407 = vmatprep.subr.bf16.mxu1 %v5706_v17  ;;  %v5722_v31 = vld [vmem:[#allocation7 + $0xf4] ss:$24 sps:$4 sm:$0xff]   ;;  %v5726_v33 = vld [vmem:[#allocation7 + $0xf0] ss:$24 sps:$4 sm:$0xff]   ;;  %v5728_v35 = vld [vmem:[#allocation7 + $0x124] ss:$24 sps:$4 sm:$0xff]  }
 0x113   : > { %v498_v23 = vcombine.high %v7066_v20, %v7066_v20  ;;  %v5727_v34 = vld [vmem:[#allocation7 + $0xf8] ss:$24 sps:$4 sm:$0xff]   ;;  %v5730_v36 = vld [vmem:[#allocation7 + $0x12c] ss:$24 sps:$4 sm:$0xff]   ;;  %v5733_v38 = vld [vmem:[#allocation7 + $0x128] ss:$24 sps:$4 sm:$0xff]  }
 0x114   : > { %2285 = vmatpush1.bf16.msra.mxu0 %v5708_v18  ;;  %v5732_v37 = vld [vmem:[#allocation7 + $0x120] ss:$24 sps:$4 sm:$0xff]   ;;  %v5734_v39 = vld [vmem:[#allocation7 + $0x154] ss:$24 sps:$4 sm:$0xff]   ;;  %v5738_v41 = vld [vmem:[#allocation7 + $0x150] ss:$24 sps:$4 sm:$0xff]  }
 0x115   : > { %v7070_v25 = vpack.c.bf16 %v498_v23, %v498_v23  ;;  %2408 = vmatpush1.bf16.msra.mxu1 %v5709_v19  ;;  %2286 = vmatprep.subr.bf16.mxu0 %v5710_v21  ;;  %v5736_v40 = vld [vmem:[#allocation7 + $0x15c] ss:$24 sps:$4 sm:$0xff]   ;;  %v5739_v42 = vld [vmem:[#allocation7 + $0x158] ss:$24 sps:$4 sm:$0xff]   ;;  %v5742_v44 = vld [vmem:[#allocation7 + $0x18c] ss:$24 sps:$4 sm:$0xff]   ;;  %v499_v19 = vcombine.high %v7077_v13, %v7077_v13  ;;  %v7083_v23 = vpack.c.bf16 %v7066_v20, %v7066_v20 }
 0x116   : > { %2409 = vmatprep.subr.bf16.mxu1 %v5712_v22  ;;  %v5740_v43 = vld [vmem:[#allocation7 + $0x184] ss:$24 sps:$4 sm:$0xff]   ;;  %v5744_v45 = vld [vmem:[#allocation7 + $0x180] ss:$24 sps:$4 sm:$0xff]   ;;  %v5746_v47 = vld [vmem:[#allocation7 + $0x1b4] ss:$24 sps:$4 sm:$0xff]  }
 0x117   : > { %2312 = vmatprep.mubr.bf16.mxu0 %v7070_v25  ;;  %2435 = vmatprep.mubr.bf16.mxu1 %v7070_v25  ;;  %v5745_v46 = vld [vmem:[#allocation7 + $0x188] ss:$24 sps:$4 sm:$0xff]   ;;  %v5748_v48 = vld [vmem:[#allocation7 + $0x1bc] ss:$24 sps:$4 sm:$0xff]   ;;  %v5751_v50 = vld [vmem:[#allocation7 + $0x1b8] ss:$24 sps:$4 sm:$0xff]  }
 0x118   : > { %2287 = vmatpush1.bf16.msra.mxu0 %v5714_v24  ;;  %v5750_v49 = vld [vmem:[#allocation7 + $0x1b0] ss:$24 sps:$4 sm:$0xff]   ;;  %v5752_v51 = vld [vmem:[#allocation7 + $0x1e4] ss:$24 sps:$4 sm:$0xff]   ;;  %v5756_v53 = vld [vmem:[#allocation7 + $0x1e0] ss:$24 sps:$4 sm:$0xff]  }
 0x119   : > { %2410 = vmatpush1.bf16.msra.mxu1 %v5715_v26  ;;  %2288 = vmatprep.subr.bf16.mxu0 %v5716_v27  ;;  %v5754_v52 = vld [vmem:[#allocation7 + $0x1ec] ss:$24 sps:$4 sm:$0xff]   ;;  %v5757_v54 = vld [vmem:[#allocation7 + $0x1e8] ss:$24 sps:$4 sm:$0xff]   ;;  %v5760_v56 = vld [vmem:[#allocation7 + $0x21c] ss:$24 sps:$4 sm:$0xff]   ;;  %v7085_v27 = vpack.c.bf16 %v499_v19, %v499_v19 }
 0x11a   : > { %2411 = vmatprep.subr.bf16.mxu1 %v5718_v28  ;;  %v5758_v55 = vld [vmem:[#allocation7 + $0x214] ss:$24 sps:$4 sm:$0xff]   ;;  %v5762_v57 = vld [vmem:[#allocation7 + $0x210] ss:$24 sps:$4 sm:$0xff]   ;;  %v5764_v59 = vld [vmem:[#allocation7 + $0x244] ss:$24 sps:$4 sm:$0xff]  }
 0x11b   : > { %v5763_v58 = vld [vmem:[#allocation7 + $0x218] ss:$24 sps:$4 sm:$0xff]   ;;  %v5766_v60 = vld [vmem:[#allocation7 + $0x24c] ss:$24 sps:$4 sm:$0xff]   ;;  %v5769_v62 = vld [vmem:[#allocation7 + $0x248] ss:$24 sps:$4 sm:$0xff]  }
 0x11c   : > { %2289 = vmatpush1.bf16.msra.mxu0 %v5720_v29  ;;  %v5768_v61 = vld [vmem:[#allocation7 + $0x240] ss:$24 sps:$4 sm:$0xff]   ;;  %v5770_v63 = vld [vmem:[#allocation7 + $0x274] ss:$24 sps:$4 sm:$0xff]   ;;  %v5774_v3 = vld [vmem:[#allocation7 + $0x270] ss:$24 sps:$4 sm:$0xff]  }
 0x11d   : > { %2412 = vmatpush1.bf16.msra.mxu1 %v5721_v30  ;;  %2290 = vmatprep.subr.bf16.mxu0 %v5722_v31  ;;  %v5772_v2 = vld [vmem:[#allocation7 + $0x27c] ss:$24 sps:$4 sm:$0xff]   ;;  %v5775_v4 = vld [vmem:[#allocation7 + $0x278] ss:$24 sps:$4 sm:$0xff]   ;;  %v5778_v6 = vld [vmem:[#allocation7 + $0x2ac] ss:$24 sps:$4 sm:$0xff]  }
 0x11e   : > { %2413 = vmatprep.subr.bf16.mxu1 %v5724_v32  ;;  %v5776_v5 = vld [vmem:[#allocation7 + $0x2a4] ss:$24 sps:$4 sm:$0xff]   ;;  %v5780_v8 = vld [vmem:[#allocation7 + $0x2a0] ss:$24 sps:$4 sm:$0xff]   ;;  %v5782_v11 = vld [vmem:[#allocation7 + $0x2d4] ss:$24 sps:$4 sm:$0xff]  }
 0x11f   : > { %v5781_v10 = vld [vmem:[#allocation7 + $0x2a8] ss:$24 sps:$4 sm:$0xff]   ;;  %v5784_v12 = vld [vmem:[#allocation7 + $0x2dc] ss:$24 sps:$4 sm:$0xff]   ;;  %v5787_v16 = vld [vmem:[#allocation7 + $0x2d8] ss:$24 sps:$4 sm:$0xff]  }
 0x120   : > { %2291 = vmatpush1.bf16.msra.mxu0 %v5726_v33  ;;  %v5786_v14 = vld [vmem:[#allocation7 + $0x2d0] ss:$24 sps:$4 sm:$0xff]   ;;  %v5790_v17 = vld [vmem:[#allocation7 + $0x304] ss:$24 sps:$4 sm:$0xff]   ;;  %v5788_v21 = vld [vmem:[#allocation7 + $0x300] ss:$24 sps:$4 sm:$0xff]  }
 0x121   : > { %2414 = vmatpush1.bf16.msra.mxu1 %v5727_v34  ;;  %2292 = vmatprep.subr.bf16.mxu0 %v5728_v35  ;;  %v5793_v18 = vld [vmem:[#allocation7 + $0x30c] ss:$24 sps:$4 sm:$0xff]   ;;  %v5791_v22 = vld [vmem:[#allocation7 + $0x308] ss:$24 sps:$4 sm:$0xff]   ;;  %v5799_v26 = vld [vmem:[#allocation7 + $0x33c] ss:$24 sps:$4 sm:$0xff]  }
 0x122   : > { %2415 = vmatprep.subr.bf16.mxu1 %v5730_v36  ;;  %v5796_v24 = vld [vmem:[#allocation7 + $0x334] ss:$24 sps:$4 sm:$0xff]   ;;  %v5794_v28 = vld [vmem:[#allocation7 + $0x330] ss:$24 sps:$4 sm:$0xff]   ;;  %v5802_v30 = vld [vmem:[#allocation7 + $0x364] ss:$24 sps:$4 sm:$0xff]  }
 0x123   : > { %v5797_v29 = vld [vmem:[#allocation7 + $0x338] ss:$24 sps:$4 sm:$0xff]   ;;  %v5805_v20 = vld [vmem:[#allocation7 + $0x36c] ss:$24 sps:$4 sm:$0xff]   ;;  %v5803_v32 = vld [vmem:[#allocation7 + $0x368] ss:$24 sps:$4 sm:$0xff]  }
 0x124   : > { %2293 = vmatpush1.bf16.msra.mxu0 %v5732_v37  ;;  %v5800_v31 = vld [vmem:[#allocation7 + $0x360] ss:$24 sps:$4 sm:$0xff]   ;;  %v5808_v33 = vld [vmem:[#allocation7 + $0x394] ss:$24 sps:$4 sm:$0xff]   ;;  %v5806_v35 = vld [vmem:[#allocation7 + $0x390] ss:$24 sps:$4 sm:$0xff]  }
 0x125   : > { %2416 = vmatpush1.bf16.msra.mxu1 %v5733_v38  ;;  %2294 = vmatprep.subr.bf16.mxu0 %v5734_v39  ;;  %v5811_v34 = vld [vmem:[#allocation7 + $0x39c] ss:$24 sps:$4 sm:$0xff]   ;;  %v5809_v36 = vld [vmem:[#allocation7 + $0x398] ss:$24 sps:$4 sm:$0xff]   ;;  %v5817_v38 = vld [vmem:[#allocation7 + $0x3cc] ss:$24 sps:$4 sm:$0xff]  }
 0x126   : > { %2417 = vmatprep.subr.bf16.mxu1 %v5736_v40  ;;  %v5814_v37 = vld [vmem:[#allocation7 + $0x3c4] ss:$24 sps:$4 sm:$0xff]   ;;  %v5812_v39 = vld [vmem:[#allocation7 + $0x3c0] ss:$24 sps:$4 sm:$0xff]   ;;  %s8163_s24 = sld [smem:[#allocation36_spill]]  ;;  %vm3099_vm0 = vcmask 523264  }
 0x127   : > { %v5815_v40 = vld [vmem:[#allocation7 + $0x3c8] ss:$24 sps:$4 sm:$0xff]   ;;  %v5862_v7 = vld [vmem:[#allocation7 + $0x544] ss:$24 sps:$4 sm:$0xff]   ;;  %vm3173_vm1 = vcmask 25600   ;;  %s8164_s30 = sld [smem:[#allocation26_spill]] }
 0x128   : > { %2295 = vmatpush1.bf16.msra.mxu0 %v5738_v41  ;;  %v5820_v41 = vld [vmem:[#allocation7 + $0x3f4] ss:$24 sps:$4 sm:$0xff]  }
 0x129   : > { %2418 = vmatpush1.bf16.msra.mxu1 %v5739_v42  ;;  %2296 = vmatprep.subr.bf16.mxu0 %v5740_v43  ;;  %v5823_v42 = vld [vmem:[#allocation7 + $0x3fc] ss:$24 sps:$4 sm:$0xff]   ;;  %v5818_v43 = vld [vmem:[#allocation7 + $0x3f0] ss:$24 sps:$4 sm:$0xff]   ;;  %v5877_v19 = vld [vmem:[#allocation7 + $0x5ac] ss:$24 sps:$4 sm:$0xff]  }
 0x12a   : > { %2419 = vmatprep.subr.bf16.mxu1 %v5742_v44  ;;  %v5821_v44 = vld [vmem:[#allocation7 + $0x3f8] ss:$24 sps:$4 sm:$0xff]  }
 0x12c   : > { %2297 = vmatpush1.bf16.msra.mxu0 %v5744_v45  ;;  %v5826_v45 = vld [vmem:[#allocation7 + $0x424] ss:$24 sps:$4 sm:$0xff]  }
 0x12d   : > { %2420 = vmatpush1.bf16.msra.mxu1 %v5745_v46  ;;  %2298 = vmatprep.subr.bf16.mxu0 %v5746_v47  ;;  %v5829_v46 = vld [vmem:[#allocation7 + $0x42c] ss:$24 sps:$4 sm:$0xff]   ;;  %v5824_v47 = vld [vmem:[#allocation7 + $0x420] ss:$24 sps:$4 sm:$0xff]   ;;  %p5033_p2 = scmp.ne.s32.totalorder %s8164_s30, 0 }
 0x12e   : > { %2421 = vmatprep.subr.bf16.mxu1 %v5748_v48  ;;  %v5827_v48 = vld [vmem:[#allocation7 + $0x428] ss:$24 sps:$4 sm:$0xff]  }
 0x130   : > { %2299 = vmatpush1.bf16.msra.mxu0 %v5750_v49  ;;  %v5832_v49 = vld [vmem:[#allocation7 + $0x454] ss:$24 sps:$4 sm:$0xff]  }
 0x131   : > { %2422 = vmatpush1.bf16.msra.mxu1 %v5751_v50  ;;  %2300 = vmatprep.subr.bf16.mxu0 %v5752_v51  ;;  %v5835_v50 = vld [vmem:[#allocation7 + $0x45c] ss:$24 sps:$4 sm:$0xff]   ;;  %v5830_v51 = vld [vmem:[#allocation7 + $0x450] ss:$24 sps:$4 sm:$0xff]  }
 0x132   : > { %2423 = vmatprep.subr.bf16.mxu1 %v5754_v52  ;;  %v5833_v52 = vld [vmem:[#allocation7 + $0x458] ss:$24 sps:$4 sm:$0xff]  }
 0x134   : > { %2301 = vmatpush1.bf16.msra.mxu0 %v5756_v53  ;;  %v5838_v53 = vld [vmem:[#allocation7 + $0x484] ss:$24 sps:$4 sm:$0xff]  }
 0x135   : > { %2424 = vmatpush1.bf16.msra.mxu1 %v5757_v54  ;;  %2302 = vmatprep.subr.bf16.mxu0 %v5758_v55  ;;  %v5841_v54 = vld [vmem:[#allocation7 + $0x48c] ss:$24 sps:$4 sm:$0xff]   ;;  %v5836_v55 = vld [vmem:[#allocation7 + $0x480] ss:$24 sps:$4 sm:$0xff]  }
 0x136   : > { %2425 = vmatprep.subr.bf16.mxu1 %v5760_v56  ;;  %v5839_v56 = vld [vmem:[#allocation7 + $0x488] ss:$24 sps:$4 sm:$0xff]  }
 0x138   : > { %2303 = vmatpush1.bf16.msra.mxu0 %v5762_v57  ;;  %v5844_v57 = vld [vmem:[#allocation7 + $0x4b4] ss:$24 sps:$4 sm:$0xff]  }
 0x139   : > { %2426 = vmatpush1.bf16.msra.mxu1 %v5763_v58  ;;  %2304 = vmatprep.subr.bf16.mxu0 %v5764_v59  ;;  %v5847_v58 = vld [vmem:[#allocation7 + $0x4bc] ss:$24 sps:$4 sm:$0xff]   ;;  %v5842_v59 = vld [vmem:[#allocation7 + $0x4b0] ss:$24 sps:$4 sm:$0xff]  }
 0x13a   : > { %2427 = vmatprep.subr.bf16.mxu1 %v5766_v60  ;;  %v5845_v60 = vld [vmem:[#allocation7 + $0x4b8] ss:$24 sps:$4 sm:$0xff]  }
 0x13c   : > { %2305 = vmatpush1.bf16.msra.mxu0 %v5768_v61  ;;  %v5850_v61 = vld [vmem:[#allocation7 + $0x4e4] ss:$24 sps:$4 sm:$0xff]  }
 0x13d   : > { %2428 = vmatpush1.bf16.msra.mxu1 %v5769_v62  ;;  %2306 = vmatprep.subr.bf16.mxu0 %v5770_v63  ;;  %v5853_v62 = vld [vmem:[#allocation7 + $0x4ec] ss:$24 sps:$4 sm:$0xff]   ;;  %v5848_v63 = vld [vmem:[#allocation7 + $0x4e0] ss:$24 sps:$4 sm:$0xff]  }
 0x13e   : > { %2429 = vmatprep.subr.bf16.mxu1 %v5772_v2  ;;  %v5851_v2 = vld [vmem:[#allocation7 + $0x4e8] ss:$24 sps:$4 sm:$0xff]  }
 0x140   : > { %2307 = vmatpush1.bf16.msra.mxu0 %v5774_v3  ;;  %v5856_v3 = vld [vmem:[#allocation7 + $0x514] ss:$24 sps:$4 sm:$0xff]  }
 0x141   : > { %2430 = vmatpush1.bf16.msra.mxu1 %v5775_v4  ;;  %2308 = vmatprep.subr.bf16.mxu0 %v5776_v5  ;;  %v5859_v4 = vld [vmem:[#allocation7 + $0x51c] ss:$24 sps:$4 sm:$0xff]   ;;  %v5854_v5 = vld [vmem:[#allocation7 + $0x510] ss:$24 sps:$4 sm:$0xff]  }
 0x142   : > { %2431 = vmatprep.subr.bf16.mxu1 %v5778_v6  ;;  %v5857_v6 = vld [vmem:[#allocation7 + $0x518] ss:$24 sps:$4 sm:$0xff]  }
 0x144   : > { %2309 = vmatpush1.bf16.msra.mxu0 %v5780_v8  ;;  %v5865_v8 = vld [vmem:[#allocation7 + $0x54c] ss:$24 sps:$4 sm:$0xff]  }
 0x145   : > { %2432 = vmatpush1.bf16.msra.mxu1 %v5781_v10  ;;  %2310 = vmatprep.subr.bf16.mxu0 %v5782_v11  ;;  %v5860_v10 = vld [vmem:[#allocation7 + $0x540] ss:$24 sps:$4 sm:$0xff]  }
 0x146   : > { %2433 = vmatprep.subr.bf16.mxu1 %v5784_v12  ;;  %v5863_v11 = vld [vmem:[#allocation7 + $0x548] ss:$24 sps:$4 sm:$0xff]   ;;  %v5868_v12 = vld [vmem:[#allocation7 + $0x574] ss:$24 sps:$4 sm:$0xff]  }
 0x148   : > { %2311 = vmatpush1.bf16.msra.mxu0 %v5786_v14  ;;  %v5871_v14 = vld [vmem:[#allocation7 + $0x57c] ss:$24 sps:$4 sm:$0xff]  }
 0x149   : > { %2434 = vmatpush1.bf16.msra.mxu1 %v5787_v16  ;;  %2321 = vmatprep.subr.bf16.mxu0 %v5790_v17  ;;  %v5866_v16 = vld [vmem:[#allocation7 + $0x570] ss:$24 sps:$4 sm:$0xff]  }
 0x14a   : > { %2444 = vmatprep.subr.bf16.mxu1 %v5793_v18  ;;  %v5869_v17 = vld [vmem:[#allocation7 + $0x578] ss:$24 sps:$4 sm:$0xff]   ;;  %v5874_v18 = vld [vmem:[#allocation7 + $0x5a4] ss:$24 sps:$4 sm:$0xff]  }
 0x14b   : > { %2313 = vmatmul.mubr.bf16.vlgmr.msra.gmra.mrb[0].mxu0 %v7083_v23 }
 0x14c   : > { %2436 = vmatmul.mubr.bf16.vlgmr.msra.gmra.mrb[0].mxu1 %v7083_v23  ;;  %2322 = vmatpush1.bf16.msra.mxu0 %v5788_v21  ;;  %v5872_v21 = vld [vmem:[#allocation7 + $0x5a0] ss:$24 sps:$4 sm:$0xff]  }
 0x14d   : > { %2445 = vmatpush1.bf16.msra.mxu1 %v5791_v22  ;;  %2323 = vmatprep.subr.bf16.mxu0 %v5796_v24  ;;  %v5875_v22 = vld [vmem:[#allocation7 + $0x5a8] ss:$24 sps:$4 sm:$0xff]   ;;  %v5880_v24 = vld [vmem:[#allocation7 + $0x5d4] ss:$24 sps:$4 sm:$0xff]  }
 0x14e   : > { %2446 = vmatprep.subr.bf16.mxu1 %v5799_v26  ;;  %2353 = vmatprep.mubr.bf16.mxu0 %v7085_v27  ;;  %v5883_v26 = vld [vmem:[#allocation7 + $0x5dc] ss:$24 sps:$4 sm:$0xff]  }
 0x14f   : > { %2476 = vmatprep.mubr.bf16.mxu1 %v7085_v27 }
 0x150   : > { %2324 = vmatpush1.bf16.msra.mxu0 %v5794_v28  ;;  %v7093_v28 = vrot.slane %v7054_v1, %v7062_v15 }
 0x151   : > { %2447 = vmatpush1.bf16.msra.mxu1 %v5797_v29  ;;  %2325 = vmatprep.subr.bf16.mxu0 %v5802_v30  ;;  %v5878_v29 = vld [vmem:[#allocation7 + $0x5d0] ss:$24 sps:$4 sm:$0xff]  }
 0x152   : > { %2448 = vmatprep.subr.bf16.mxu1 %v5805_v20  ;;  %v5881_v30 = vld [vmem:[#allocation7 + $0x5d8] ss:$24 sps:$4 sm:$0xff]   ;;  %v5886_v20 = vld [vmem:[#allocation7 + $0x604] ss:$24 sps:$4 sm:$0xff]  }
 0x154   : > { %2326 = vmatpush1.bf16.msra.mxu0 %v5800_v31  ;;  %v5889_v31 = vld [vmem:[#allocation7 + $0x60c] ss:$24 sps:$4 sm:$0xff]  }
 0x155   : > { %2449 = vmatpush1.bf16.msra.mxu1 %v5803_v32  ;;  %2327 = vmatprep.subr.bf16.mxu0 %v5808_v33  ;;  %v507_v32 = vcombine.high %v7093_v28, %v7093_v28  ;;  %v5884_v33 = vld [vmem:[#allocation7 + $0x600] ss:$24 sps:$4 sm:$0xff]  }
 0x156   : > { %2450 = vmatprep.subr.bf16.mxu1 %v5811_v34  ;;  %v5887_v34 = vld [vmem:[#allocation7 + $0x608] ss:$24 sps:$4 sm:$0xff]  }
 0x158   : > { %2328 = vmatpush1.bf16.msra.mxu0 %v5806_v35  ;;  %v7099_v35 = vpack.c.bf16 %v7077_v13, %v7077_v13  ;;  %v5901_v13 = vld [vmem:[#allocation7 + $0x66c] ss:$24 sps:$4 sm:$0xff]  }
 0x159   : > { %2451 = vmatpush1.bf16.msra.mxu1 %v5809_v36  ;;  %2329 = vmatprep.subr.bf16.mxu0 %v5814_v37  ;;  %v5892_v36 = vld [vmem:[#allocation7 + $0x634] ss:$24 sps:$4 sm:$0xff]  }
 0x15a   : > { %2452 = vmatprep.subr.bf16.mxu1 %v5817_v38  ;;  %v5895_v37 = vld [vmem:[#allocation7 + $0x63c] ss:$24 sps:$4 sm:$0xff]   ;;  %v7101_v38 = vpack.c.bf16 %v507_v32, %v507_v32  ;;  %v5965_v32 = vld [vmem:[#allocation7 + $0x878] ss:$24 sps:$4 sm:$0xff]  }
 0x15c   : > { %2330 = vmatpush1.bf16.msra.mxu0 %v5812_v39  ;;  %v5890_v39 = vld [vmem:[#allocation7 + $0x630] ss:$24 sps:$4 sm:$0xff]  }
 0x15d   : > { %2453 = vmatpush1.bf16.msra.mxu1 %v5815_v40  ;;  %2331 = vmatprep.subr.bf16.mxu0 %v5820_v41  ;;  %v5893_v40 = vld [vmem:[#allocation7 + $0x638] ss:$24 sps:$4 sm:$0xff]   ;;  %v5898_v41 = vld [vmem:[#allocation7 + $0x664] ss:$24 sps:$4 sm:$0xff]  }
 0x15e   : > { %2454 = vmatprep.subr.bf16.mxu1 %v5823_v42  ;;  %v5896_v42 = vld [vmem:[#allocation7 + $0x660] ss:$24 sps:$4 sm:$0xff]  }
 0x160   : > { %2332 = vmatpush1.bf16.msra.mxu0 %v5818_v43  ;;  %v5899_v43 = vld [vmem:[#allocation7 + $0x668] ss:$24 sps:$4 sm:$0xff]  }
 0x161   : > { %2455 = vmatpush1.bf16.msra.mxu1 %v5821_v44  ;;  %2333 = vmatprep.subr.bf16.mxu0 %v5826_v45  ;;  %v5904_v44 = vld [vmem:[#allocation7 + $0x694] ss:$24 sps:$4 sm:$0xff]  }
 0x162   : > { %2456 = vmatprep.subr.bf16.mxu1 %v5829_v46  ;;  %v5907_v45 = vld [vmem:[#allocation7 + $0x69c] ss:$24 sps:$4 sm:$0xff]   ;;  %v5902_v46 = vld [vmem:[#allocation7 + $0x690] ss:$24 sps:$4 sm:$0xff]  }
 0x164   : > { %2334 = vmatpush1.bf16.msra.mxu0 %v5824_v47  ;;  %v5905_v47 = vld [vmem:[#allocation7 + $0x698] ss:$24 sps:$4 sm:$0xff]  }
 0x165   : > { %2457 = vmatpush1.bf16.msra.mxu1 %v5827_v48  ;;  %2335 = vmatprep.subr.bf16.mxu0 %v5832_v49  ;;  %v5910_v48 = vld [vmem:[#allocation7 + $0x6c4] ss:$24 sps:$4 sm:$0xff]  }
 0x166   : > { %2458 = vmatprep.subr.bf16.mxu1 %v5835_v50  ;;  %v5913_v49 = vld [vmem:[#allocation7 + $0x6cc] ss:$24 sps:$4 sm:$0xff]   ;;  %v5908_v50 = vld [vmem:[#allocation7 + $0x6c0] ss:$24 sps:$4 sm:$0xff]  }
 0x168   : > { %2336 = vmatpush1.bf16.msra.mxu0 %v5830_v51  ;;  %v5911_v51 = vld [vmem:[#allocation7 + $0x6c8] ss:$24 sps:$4 sm:$0xff]  }
 0x169   : > { %2459 = vmatpush1.bf16.msra.mxu1 %v5833_v52  ;;  %2337 = vmatprep.subr.bf16.mxu0 %v5838_v53  ;;  %v5916_v52 = vld [vmem:[#allocation7 + $0x6f4] ss:$24 sps:$4 sm:$0xff]  }
 0x16a   : > { %2460 = vmatprep.subr.bf16.mxu1 %v5841_v54  ;;  %v5919_v53 = vld [vmem:[#allocation7 + $0x6fc] ss:$24 sps:$4 sm:$0xff]   ;;  %v5914_v54 = vld [vmem:[#allocation7 + $0x6f0] ss:$24 sps:$4 sm:$0xff]  }
 0x16c   : > { %2338 = vmatpush1.bf16.msra.mxu0 %v5836_v55  ;;  %v5917_v55 = vld [vmem:[#allocation7 + $0x6f8] ss:$24 sps:$4 sm:$0xff]  }
 0x16d   : > { %2461 = vmatpush1.bf16.msra.mxu1 %v5839_v56  ;;  %2339 = vmatprep.subr.bf16.mxu0 %v5844_v57  ;;  %v5922_v56 = vld [vmem:[#allocation7 + $0x724] ss:$24 sps:$4 sm:$0xff]  }
 0x16e   : > { %2462 = vmatprep.subr.bf16.mxu1 %v5847_v58  ;;  %v5925_v57 = vld [vmem:[#allocation7 + $0x72c] ss:$24 sps:$4 sm:$0xff]   ;;  %v5920_v58 = vld [vmem:[#allocation7 + $0x720] ss:$24 sps:$4 sm:$0xff]  }
 0x170   : > { %2340 = vmatpush1.bf16.msra.mxu0 %v5842_v59  ;;  %v5923_v59 = vld [vmem:[#allocation7 + $0x728] ss:$24 sps:$4 sm:$0xff]  }
 0x171   : > { %2463 = vmatpush1.bf16.msra.mxu1 %v5845_v60  ;;  %2341 = vmatprep.subr.bf16.mxu0 %v5850_v61  ;;  %v5928_v60 = vld [vmem:[#allocation7 + $0x754] ss:$24 sps:$4 sm:$0xff]  }
 0x172   : > { %2464 = vmatprep.subr.bf16.mxu1 %v5853_v62  ;;  %v5931_v61 = vld [vmem:[#allocation7 + $0x75c] ss:$24 sps:$4 sm:$0xff]   ;;  %v5926_v62 = vld [vmem:[#allocation7 + $0x750] ss:$24 sps:$4 sm:$0xff]  }
 0x174   : > { %2342 = vmatpush1.bf16.msra.mxu0 %v5848_v63  ;;  %v5929_v63 = vld [vmem:[#allocation7 + $0x758] ss:$24 sps:$4 sm:$0xff]  }
 0x175   : > { %2465 = vmatpush1.bf16.msra.mxu1 %v5851_v2  ;;  %2343 = vmatprep.subr.bf16.mxu0 %v5856_v3  ;;  %v5934_v2 = vld [vmem:[#allocation7 + $0x784] ss:$24 sps:$4 sm:$0xff]  }
 0x176   : > { %2466 = vmatprep.subr.bf16.mxu1 %v5859_v4  ;;  %v5937_v3 = vld [vmem:[#allocation7 + $0x78c] ss:$24 sps:$4 sm:$0xff]   ;;  %v5932_v4 = vld [vmem:[#allocation7 + $0x780] ss:$24 sps:$4 sm:$0xff]  }
 0x178   : > { %2344 = vmatpush1.bf16.msra.mxu0 %v5854_v5  ;;  %v5935_v5 = vld [vmem:[#allocation7 + $0x788] ss:$24 sps:$4 sm:$0xff]  }
 0x179   : > { %2467 = vmatpush1.bf16.msra.mxu1 %v5857_v6  ;;  %2345 = vmatprep.subr.bf16.mxu0 %v5862_v7  ;;  %v5940_v6 = vld [vmem:[#allocation7 + $0x7b4] ss:$24 sps:$4 sm:$0xff]  }
 0x17a   : > { %2468 = vmatprep.subr.bf16.mxu1 %v5865_v8  ;;  %v5943_v7 = vld [vmem:[#allocation7 + $0x7bc] ss:$24 sps:$4 sm:$0xff]   ;;  %v5938_v8 = vld [vmem:[#allocation7 + $0x7b0] ss:$24 sps:$4 sm:$0xff]  }
 0x17c   : > { %2346 = vmatpush1.bf16.msra.mxu0 %v5860_v10  ;;  %v5941_v10 = vld [vmem:[#allocation7 + $0x7b8] ss:$24 sps:$4 sm:$0xff]  }
 0x17d   : > { %2469 = vmatpush1.bf16.msra.mxu1 %v5863_v11  ;;  %2347 = vmatprep.subr.bf16.mxu0 %v5868_v12  ;;  %v5946_v11 = vld [vmem:[#allocation7 + $0x7e4] ss:$24 sps:$4 sm:$0xff]  }
 0x17e   : > { %2470 = vmatprep.subr.bf16.mxu1 %v5871_v14  ;;  %v5949_v12 = vld [vmem:[#allocation7 + $0x7ec] ss:$24 sps:$4 sm:$0xff]   ;;  %v5944_v14 = vld [vmem:[#allocation7 + $0x7e0] ss:$24 sps:$4 sm:$0xff]  }
 0x180   : > { %2348 = vmatpush1.bf16.msra.mxu0 %v5866_v16  ;;  %v5947_v16 = vld [vmem:[#allocation7 + $0x7e8] ss:$24 sps:$4 sm:$0xff]  }
 0x181   : > { %2471 = vmatpush1.bf16.msra.mxu1 %v5869_v17  ;;  %2349 = vmatprep.subr.bf16.mxu0 %v5874_v18  ;;  %v5952_v17 = vld [vmem:[#allocation7 + $0x814] ss:$24 sps:$4 sm:$0xff]  }
 0x182   : > { %2472 = vmatprep.subr.bf16.mxu1 %v5877_v19  ;;  %v5955_v18 = vld [vmem:[#allocation7 + $0x81c] ss:$24 sps:$4 sm:$0xff]   ;;  %v5950_v19 = vld [vmem:[#allocation7 + $0x810] ss:$24 sps:$4 sm:$0xff]  }
 0x184   : > { %2350 = vmatpush1.bf16.msra.mxu0 %v5872_v21  ;;  %v5953_v21 = vld [vmem:[#allocation7 + $0x818] ss:$24 sps:$4 sm:$0xff]  }
 0x185   : > { %2473 = vmatpush1.bf16.msra.mxu1 %v5875_v22  ;;  %2351 = vmatprep.subr.bf16.mxu0 %v5880_v24  ;;  %v5958_v22 = vld [vmem:[#allocation7 + $0x844] ss:$24 sps:$4 sm:$0xff]  }
 0x186   : > { %2474 = vmatprep.subr.bf16.mxu1 %v5883_v26  ;;  %v5961_v24 = vld [vmem:[#allocation7 + $0x84c] ss:$24 sps:$4 sm:$0xff]   ;;  %v5956_v26 = vld [vmem:[#allocation7 + $0x840] ss:$24 sps:$4 sm:$0xff]  }
 0x188   : > { %2352 = vmatpush1.bf16.msra.mxu0 %v5878_v29  ;;  %v5959_v29 = vld [vmem:[#allocation7 + $0x848] ss:$24 sps:$4 sm:$0xff]  }
 0x189   : > { %2475 = vmatpush1.bf16.msra.mxu1 %v5881_v30  ;;  %2362 = vmatprep.subr.bf16.mxu0 %v5886_v20  ;;  %v5964_v30 = vld [vmem:[#allocation7 + $0x874] ss:$24 sps:$4 sm:$0xff]  }
 0x18a   : > { %2485 = vmatprep.subr.bf16.mxu1 %v5889_v31  ;;  %v5967_v20 = vld [vmem:[#allocation7 + $0x87c] ss:$24 sps:$4 sm:$0xff]   ;;  %v5962_v31 = vld [vmem:[#allocation7 + $0x870] ss:$24 sps:$4 sm:$0xff]  }
 0x18b   : > { %2354 = vmatmul.mubr.bf16.vlgmr.msra.gmra.mrb[0].mxu0 %v7099_v35 }
 0x18c   : > { %2477 = vmatmul.mubr.bf16.vlgmr.msra.gmra.mrb[0].mxu1 %v7099_v35  ;;  %2363 = vmatpush1.bf16.msra.mxu0 %v5884_v33  ;;  %v5970_v33 = vld [vmem:[#allocation7 + $0x8a4] ss:$24 sps:$4 sm:$0xff]  }
 0x18d   : > { %2486 = vmatpush1.bf16.msra.mxu1 %v5887_v34  ;;  %2364 = vmatprep.subr.bf16.mxu0 %v5892_v36  ;;  %v5973_v34 = vld [vmem:[#allocation7 + $0x8ac] ss:$24 sps:$4 sm:$0xff]   ;;  %v5968_v36 = vld [vmem:[#allocation7 + $0x8a0] ss:$24 sps:$4 sm:$0xff]  }
 0x18e   : > { %2487 = vmatprep.subr.bf16.mxu1 %v5895_v37  ;;  %2394 = vmatprep.mubr.bf16.mxu0 %v7101_v38  ;;  %v5971_v37 = vld [vmem:[#allocation7 + $0x8a8] ss:$24 sps:$4 sm:$0xff]  }
 0x18f   : > { %2517 = vmatprep.mubr.bf16.mxu1 %v7101_v38 }
 0x190   : > { %2365 = vmatpush1.bf16.msra.mxu0 %v5890_v39  ;;  %v5976_v39 = vld [vmem:[#allocation7 + $0x8d4] ss:$24 sps:$4 sm:$0xff]  }
 0x191   : > { %2488 = vmatpush1.bf16.msra.mxu1 %v5893_v40  ;;  %2366 = vmatprep.subr.bf16.mxu0 %v5898_v41  ;;  %v5979_v40 = vld [vmem:[#allocation7 + $0x8dc] ss:$24 sps:$4 sm:$0xff]   ;;  %v5974_v41 = vld [vmem:[#allocation7 + $0x8d0] ss:$24 sps:$4 sm:$0xff]  }
 0x192   : > { %2489 = vmatprep.subr.bf16.mxu1 %v5901_v13  ;;  %v5977_v13 = vld [vmem:[#allocation7 + $0x8d8] ss:$24 sps:$4 sm:$0xff]  }
 0x194   : > { %2367 = vmatpush1.bf16.msra.mxu0 %v5896_v42  ;;  %v5982_v42 = vld [vmem:[#allocation7 + $0x14] ss:$24 sps:$4 sm:$0xff]  }
 0x195   : > { %2490 = vmatpush1.bf16.msra.mxu1 %v5899_v43  ;;  %2368 = vmatprep.subr.bf16.mxu0 %v5904_v44  ;;  %v7109_v43 = vpack.c.bf16 %v7093_v28, %v7093_v28  ;;  %v5980_v44 = vld [vmem:[#allocation7 + $0x10] ss:$24 sps:$4 sm:$0xff]   ;;  %v5991_v28 = vld [vmem:[#allocation7 + $0xa4] ss:$24 sps:$4 sm:$0xff]  }
 0x196   : > { %2491 = vmatprep.subr.bf16.mxu1 %v5907_v45  ;;  %v5985_v45 = vld [vmem:[#allocation7 + $0x44] ss:$24 sps:$4 sm:$0xff]  }
 0x198   : > { %2369 = vmatpush1.bf16.msra.mxu0 %v5902_v46  ;;  %v5983_v46 = vld [vmem:[#allocation7 + $0x40] ss:$24 sps:$4 sm:$0xff]  }
 0x199   : > { %2492 = vmatpush1.bf16.msra.mxu1 %v5905_v47  ;;  %2370 = vmatprep.subr.bf16.mxu0 %v5910_v48  ;;  %v5988_v47 = vld [vmem:[#allocation7 + $0x74] ss:$24 sps:$4 sm:$0xff]   ;;  %v5986_v48 = vld [vmem:[#allocation7 + $0x70] ss:$24 sps:$4 sm:$0xff]  }
 0x19a   : > { %2493 = vmatprep.subr.bf16.mxu1 %v5913_v49  ;;  %v5989_v49 = vld [vmem:[#allocation7 + $0xa0] ss:$24 sps:$4 sm:$0xff]  }
 0x19c   : > { %2371 = vmatpush1.bf16.msra.mxu0 %v5908_v50  ;;  %v5994_v50 = vld [vmem:[#allocation7 + $0xd4] ss:$24 sps:$4 sm:$0xff]  }
 0x19d   : > { %2494 = vmatpush1.bf16.msra.mxu1 %v5911_v51  ;;  %2372 = vmatprep.subr.bf16.mxu0 %v5916_v52  ;;  %v5992_v51 = vld [vmem:[#allocation7 + $0xd0] ss:$24 sps:$4 sm:$0xff]   ;;  %v5997_v52 = vld [vmem:[#allocation7 + $0x104] ss:$24 sps:$4 sm:$0xff]  }
 0x19e   : > { %2495 = vmatprep.subr.bf16.mxu1 %v5919_v53  ;;  %v5995_v53 = vld [vmem:[#allocation7 + $0x100] ss:$24 sps:$4 sm:$0xff]  }
 0x1a0   : > { %2373 = vmatpush1.bf16.msra.mxu0 %v5914_v54  ;;  %v6000_v54 = vld [vmem:[#allocation7 + $0x134] ss:$24 sps:$4 sm:$0xff]  }
 0x1a1   : > { %2496 = vmatpush1.bf16.msra.mxu1 %v5917_v55  ;;  %2374 = vmatprep.subr.bf16.mxu0 %v5922_v56  ;;  %v2652_v55 = vld [vmem:[%s8162_s9 + $0x18] sm:$0xff] }
 0x1a2   : > { %2497 = vmatprep.subr.bf16.mxu1 %v5925_v57  ;;  %v5998_v56 = vld [vmem:[#allocation7 + $0x130] ss:$24 sps:$4 sm:$0xff]  }
 0x1a4   : > { %2375 = vmatpush1.bf16.msra.mxu0 %v5920_v58  ;;  %v2649_v58 = vld [vmem:[%s8162_s9] sm:$0xff] }
 0x1a5   : > { %2498 = vmatpush1.bf16.msra.mxu1 %v5923_v59  ;;  %2376 = vmatprep.subr.bf16.mxu0 %v5928_v60  ;;  %v6003_v59 = vld [vmem:[#allocation7 + $0x164] ss:$24 sps:$4 sm:$0xff]  }
 0x1a6   : > { %2499 = vmatprep.subr.bf16.mxu1 %v5931_v61  ;;  %v2651_v60 = vld [vmem:[%s8162_s9 + $0x10] sm:$0xff] }
 0x1a7   : > { %v5252_v61 = vpack.c.bf16 %v2651_v60, %v2649_v58  ;;  %v6024_v60 = vld [vmem:[#allocation7 + $0x2b4] ss:$24 sps:$4 sm:$0xff]  }
 0x1a8   : > { %2377 = vmatpush1.bf16.msra.mxu0 %v5926_v62  ;;  %v2654_v62 = vld [vmem:[%s8162_s9 + $0x28] sm:$0xff] }
 0x1a9   : > { %2500 = vmatpush1.bf16.msra.mxu1 %v5929_v63  ;;  %2378 = vmatprep.subr.bf16.mxu0 %v5934_v2  ;;  %v2656_v63 = vld [vmem:[%s8162_s9 + $0x38] sm:$0xff]  ;;  %v6001_v2 = vld [vmem:[#allocation7 + $0x160] ss:$24 sps:$4 sm:$0xff]  }
 0x1aa   : > { %2501 = vmatprep.subr.bf16.mxu1 %v5937_v3  ;;  %v5254_v3 = vpack.c.bf16 %v2656_v63, %v2654_v62  ;;  %v2682_v63 = vld [vmem:[%s8162_s9 + $0x108] sm:$0xff] }
 0x1ac   : > { %2379 = vmatpush1.bf16.msra.mxu0 %v5932_v4  ;;  %v2653_v4 = vld [vmem:[%s8162_s9 + $0x20] sm:$0xff] }
 0x1ad   : > { %2502 = vmatpush1.bf16.msra.mxu1 %v5935_v5  ;;  %2380 = vmatprep.subr.bf16.mxu0 %v5940_v6  ;;  %v6006_v5 = vld [vmem:[#allocation7 + $0x194] ss:$24 sps:$4 sm:$0xff]   ;;  %v2655_v6 = vld [vmem:[%s8162_s9 + $0x30] sm:$0xff] }
 0x1ae   : > { %2503 = vmatprep.subr.bf16.mxu1 %v5943_v7  ;;  %v5256_v7 = vpack.c.bf16 %v2655_v6, %v2653_v4  ;;  %v6027_v6 = vld [vmem:[#allocation7 + $0x2e4] ss:$24 sps:$4 sm:$0xff]  }
 0x1b0   : > { %2381 = vmatpush1.bf16.msra.mxu0 %v5938_v8  ;;  %v2658_v8 = vld [vmem:[%s8162_s9 + $0x48] sm:$0xff] }
 0x1b1   : > { %2504 = vmatpush1.bf16.msra.mxu1 %v5941_v10  ;;  %2382 = vmatprep.subr.bf16.mxu0 %v5946_v11  ;;  %v2660_v10 = vld [vmem:[%s8162_s9 + $0x58] sm:$0xff] }
 0x1b2   : > { %2505 = vmatprep.subr.bf16.mxu1 %v5949_v12  ;;  %v6004_v11 = vld [vmem:[#allocation7 + $0x190] ss:$24 sps:$4 sm:$0xff]   ;;  %v5258_v12 = vpack.c.bf16 %v2660_v10, %v2658_v8  ;;  %v2686_v10 = vld [vmem:[%s8162_s9 + $0x128] sm:$0xff] }
 0x1b4   : > { %2383 = vmatpush1.bf16.msra.mxu0 %v5944_v14  ;;  %v2657_v14 = vld [vmem:[%s8162_s9 + $0x40] sm:$0xff] }
 0x1b5   : > { %2506 = vmatpush1.bf16.msra.mxu1 %v5947_v16  ;;  %2384 = vmatprep.subr.bf16.mxu0 %v5952_v17  ;;  %v6009_v16 = vld [vmem:[#allocation7 + $0x1c4] ss:$24 sps:$4 sm:$0xff]  }
 0x1b6   : > { %2507 = vmatprep.subr.bf16.mxu1 %v5955_v18  ;;  %v2659_v17 = vld [vmem:[%s8162_s9 + $0x50] sm:$0xff] }
 0x1b7   : > { %v5260_v18 = vpack.c.bf16 %v2659_v17, %v2657_v14  ;;  %v6030_v17 = vld [vmem:[#allocation7 + $0x314] ss:$24 sps:$4 sm:$0xff]  }
 0x1b8   : > { %2385 = vmatpush1.bf16.msra.mxu0 %v5950_v19  ;;  %v2662_v19 = vld [vmem:[%s8162_s9 + $0x68] sm:$0xff] }
 0x1b9   : > { %2508 = vmatpush1.bf16.msra.mxu1 %v5953_v21  ;;  %2386 = vmatprep.subr.bf16.mxu0 %v5958_v22  ;;  %v2664_v21 = vld [vmem:[%s8162_s9 + $0x78] sm:$0xff]  ;;  %v6007_v22 = vld [vmem:[#allocation7 + $0x1c0] ss:$24 sps:$4 sm:$0xff]  }
 0x1ba   : > { %2509 = vmatprep.subr.bf16.mxu1 %v5961_v24  ;;  %v5262_v24 = vpack.c.bf16 %v2664_v21, %v2662_v19  ;;  %v2690_v21 = vld [vmem:[%s8162_s9 + $0x148] sm:$0xff] }
 0x1bc   : > { %2387 = vmatpush1.bf16.msra.mxu0 %v5956_v26  ;;  %v2661_v26 = vld [vmem:[%s8162_s9 + $0x60] sm:$0xff] }
 0x1bd   : > { %2510 = vmatpush1.bf16.msra.mxu1 %v5959_v29  ;;  %2388 = vmatprep.subr.bf16.mxu0 %v5964_v30  ;;  %v6012_v29 = vld [vmem:[#allocation7 + $0x1f4] ss:$24 sps:$4 sm:$0xff]   ;;  %v2663_v30 = vld [vmem:[%s8162_s9 + $0x70] sm:$0xff] }
 0x1be   : > { %2511 = vmatprep.subr.bf16.mxu1 %v5967_v20  ;;  %v5264_v20 = vpack.c.bf16 %v2663_v30, %v2661_v26  ;;  %v2691_v30 = vld [vmem:[%s8162_s9 + $0x150] sm:$0xff] }
 0x1c0   : > { %2389 = vmatpush1.bf16.msra.mxu0 %v5962_v31  ;;  %v2666_v31 = vld [vmem:[%s8162_s9 + $0x88] sm:$0xff] }
 0x1c1   : > { %2512 = vmatpush1.bf16.msra.mxu1 %v5965_v32  ;;  %2390 = vmatprep.subr.bf16.mxu0 %v5970_v33  ;;  %v2668_v32 = vld [vmem:[%s8162_s9 + $0x98] sm:$0xff] }
 0x1c2   : > { %2513 = vmatprep.subr.bf16.mxu1 %v5973_v34  ;;  %v6010_v33 = vld [vmem:[#allocation7 + $0x1f0] ss:$24 sps:$4 sm:$0xff]   ;;  %v5266_v34 = vpack.c.bf16 %v2668_v32, %v2666_v31  ;;  %v6031_v32 = vld [vmem:[#allocation7 + $0x340] ss:$24 sps:$4 sm:$0xff]  }
 0x1c4   : > { %2391 = vmatpush1.bf16.msra.mxu0 %v5968_v36  ;;  %v2665_v36 = vld [vmem:[%s8162_s9 + $0x80] sm:$0xff] }
 0x1c5   : > { %2514 = vmatpush1.bf16.msra.mxu1 %v5971_v37  ;;  %2392 = vmatprep.subr.bf16.mxu0 %v5976_v39  ;;  %v6015_v37 = vld [vmem:[#allocation7 + $0x224] ss:$24 sps:$4 sm:$0xff]  }
 0x1c6   : > { %2515 = vmatprep.subr.bf16.mxu1 %v5979_v40  ;;  %v2667_v39 = vld [vmem:[%s8162_s9 + $0x90] sm:$0xff] }
 0x1c7   : > { %v5268_v40 = vpack.c.bf16 %v2667_v39, %v2665_v36  ;;  %v2693_v36 = vld [vmem:[%s8162_s9 + $0x160] sm:$0xff]  ;;  %v2698_v39 = vld [vmem:[%s8162_s9 + $0x188] sm:$0xff] }
 0x1c8   : > { %2393 = vmatpush1.bf16.msra.mxu0 %v5974_v41  ;;  %v2670_v41 = vld [vmem:[%s8162_s9 + $0xa8] sm:$0xff] }
 0x1c9   : > { %2516 = vmatpush1.bf16.msra.mxu1 %v5977_v13  ;;  %2526 = vmatprep.subr.bf16.mxu0 %v5982_v42  ;;  %v2672_v13 = vld [vmem:[%s8162_s9 + $0xb8] sm:$0xff]  ;;  %v6013_v42 = vld [vmem:[#allocation7 + $0x220] ss:$24 sps:$4 sm:$0xff]  }
 0x1cb   : > { %2395 = vmatmul.mubr.bf16.vlgmr.msra.gmra.mrb[0].mxu0 %v7109_v43 }
 0x1cc   : > { %2518 = vmatmul.mubr.bf16.vlgmr.msra.gmra.mrb[0].mxu1 %v7109_v43  ;;  %2527 = vmatpush1.bf16.msra.mxu0 %v5980_v44  ;;  %v5270_v44 = vpack.c.bf16 %v2672_v13, %v2670_v41  ;;  %v6036_v41 = vld [vmem:[#allocation7 + $0x374] ss:$24 sps:$4 sm:$0xff]  }
 0x1cd   : > { %2558 = vmatprep.mubr.bf16.mxu0 %v7070_v25  ;;  %2528 = vmatprep.subr.bf16.mxu0 %v5985_v45  ;;  %v2650_v25 = vld [vmem:[%s8162_s9 + $0x8] sm:$0xff]  ;;  %v2669_v45 = vld [vmem:[%s8162_s9 + $0xa0] sm:$0xff] }
 0x1ce   : > { %v5250_v57 = vpack.c.bf16 %v2652_v55, %v2650_v25  ;;  %v2678_v55 = vld [vmem:[%s8162_s9 + $0xe8] sm:$0xff] }
 0x1d0   : > { %2529 = vmatpush1.bf16.msra.mxu0 %v5983_v46  ;;  %5251 = vmatprep.subr.bf16.mxu1 %v5250_v57  ;;  %v6018_v46 = vld [vmem:[#allocation7 + $0x254] ss:$24 sps:$4 sm:$0xff]   ;;  %v6019_v57 = vld [vmem:[#allocation7 + $0x280] ss:$24 sps:$4 sm:$0xff]  }
 0x1d1   : > { %2530 = vmatprep.subr.bf16.mxu0 %v5988_v47  ;;  %5253 = vmatpush1.bf16.msra.mxu1 %v5252_v61  ;;  %v2671_v47 = vld [vmem:[%s8162_s9 + $0xb0] sm:$0xff] }
 0x1d2   : > { %5255 = vmatprep.subr.bf16.mxu1 %v5254_v3  ;;  %v2679_v61 = vld [vmem:[%s8162_s9 + $0xf0] sm:$0xff]  ;;  %v6022_v3 = vld [vmem:[#allocation7 + $0x2b0] ss:$24 sps:$4 sm:$0xff]  }
 0x1d4   : > { %2531 = vmatpush1.bf16.msra.mxu0 %v5986_v48  ;;  %v5272_v48 = vpack.c.bf16 %v2671_v47, %v2669_v45  ;;  %v2702_v45 = vld [vmem:[%s8162_s9 + $0x1a8] sm:$0xff]  ;;  %v6034_v47 = vld [vmem:[#allocation7 + $0x370] ss:$24 sps:$4 sm:$0xff]  }
 0x1d5   : > { %2532 = vmatprep.subr.bf16.mxu0 %v5991_v28  ;;  %5257 = vmatpush1.bf16.msra.mxu1 %v5256_v7  ;;  %v2674_v28 = vld [vmem:[%s8162_s9 + $0xc8] sm:$0xff]  ;;  %v2683_v7 = vld [vmem:[%s8162_s9 + $0x110] sm:$0xff] }
 0x1d6   : > { %5259 = vmatprep.subr.bf16.mxu1 %v5258_v12  ;;  %v6025_v12 = vld [vmem:[#allocation7 + $0x2e0] ss:$24 sps:$4 sm:$0xff]  }
 0x1d8   : > { %2533 = vmatpush1.bf16.msra.mxu0 %v5989_v49  ;;  %v2676_v49 = vld [vmem:[%s8162_s9 + $0xd8] sm:$0xff] }
 0x1d9   : > { %2534 = vmatprep.subr.bf16.mxu0 %v5994_v50  ;;  %5261 = vmatpush1.bf16.msra.mxu1 %v5260_v18  ;;  %v6016_v50 = vld [vmem:[#allocation7 + $0x250] ss:$24 sps:$4 sm:$0xff]   ;;  %v2687_v18 = vld [vmem:[%s8162_s9 + $0x130] sm:$0xff] }
 0x1da   : > { %5263 = vmatprep.subr.bf16.mxu1 %v5262_v24  ;;  %v6028_v24 = vld [vmem:[#allocation7 + $0x310] ss:$24 sps:$4 sm:$0xff]  }
 0x1dc   : > { %2535 = vmatpush1.bf16.msra.mxu0 %v5992_v51  ;;  %v5274_v51 = vpack.c.bf16 %v2676_v49, %v2674_v28 }
 0x1dd   : > { %2536 = vmatprep.subr.bf16.mxu0 %v5997_v52  ;;  %5265 = vmatpush1.bf16.msra.mxu1 %v5264_v20  ;;  %v2673_v52 = vld [vmem:[%s8162_s9 + $0xc0] sm:$0xff]  ;;  %v6033_v20 = vld [vmem:[#allocation7 + $0x344] ss:$24 sps:$4 sm:$0xff]  }
 0x1de   : > { %5267 = vmatprep.subr.bf16.mxu1 %v5266_v34  ;;  %v2696_v34 = vld [vmem:[%s8162_s9 + $0x178] sm:$0xff] }
 0x1e0   : > { %2537 = vmatpush1.bf16.msra.mxu0 %v5995_v53  ;;  %v6021_v53 = vld [vmem:[#allocation7 + $0x284] ss:$24 sps:$4 sm:$0xff]  }
 0x1e1   : > { %2538 = vmatprep.subr.bf16.mxu0 %v6000_v54  ;;  %5269 = vmatpush1.bf16.msra.mxu1 %v5268_v40  ;;  %v2675_v54 = vld [vmem:[%s8162_s9 + $0xd0] sm:$0xff]  ;;  %v2700_v40 = vld [vmem:[%s8162_s9 + $0x198] sm:$0xff] }
 0x1e2   : > { %5271 = vmatprep.subr.bf16.mxu1 %v5270_v44  ;;  %v5276_v25 = vpack.c.bf16 %v2675_v54, %v2673_v52  ;;  %v2699_v44 = vld [vmem:[%s8162_s9 + $0x190] sm:$0xff]  ;;  %v2706_v52 = vld [vmem:[%s8162_s9 + $0x1c8] sm:$0xff] }
 0x1e3   : > { %v6037_v54 = vld [vmem:[#allocation7 + $0x3a0] ss:$24 sps:$4 sm:$0xff]  }
 0x1e4   : > { %2539 = vmatpush1.bf16.msra.mxu0 %v5998_v56  ;;  %v2680_v56 = vld [vmem:[%s8162_s9 + $0xf8] sm:$0xff] }
 0x1e5   : > { %2540 = vmatprep.subr.bf16.mxu0 %v6003_v59  ;;  %5273 = vmatpush1.bf16.msra.mxu1 %v5272_v48  ;;  %v5278_v58 = vpack.c.bf16 %v2680_v56, %v2678_v55  ;;  %v2677_v59 = vld [vmem:[%s8162_s9 + $0xe0] sm:$0xff]  ;;  %v6039_v48 = vld [vmem:[#allocation7 + $0x3a4] ss:$24 sps:$4 sm:$0xff]  }
 0x1e6   : > { %5275 = vmatprep.subr.bf16.mxu1 %v5274_v51  ;;  %v5280_v62 = vpack.c.bf16 %v2679_v61, %v2677_v59  ;;  %v2703_v51 = vld [vmem:[%s8162_s9 + $0x1b0] sm:$0xff]  ;;  %v6040_v59 = vld [vmem:[#allocation7 + $0x3d0] ss:$24 sps:$4 sm:$0xff]  }
 0x1e8   : > { %2541 = vmatpush1.bf16.msra.mxu0 %v6001_v2  ;;  %v2684_v2 = vld [vmem:[%s8162_s9 + $0x118] sm:$0xff] }
 0x1e9   : > { %2542 = vmatprep.subr.bf16.mxu0 %v6006_v5  ;;  %5277 = vmatpush1.bf16.msra.mxu1 %v5276_v25  ;;  %v5282_v4 = vpack.c.bf16 %v2684_v2, %v2682_v63  ;;  %v2681_v5 = vld [vmem:[%s8162_s9 + $0x100] sm:$0xff]  ;;  %v2712_v63 = vld [vmem:[%s8162_s9 + $0x1f8] sm:$0xff]  ;;  %v6043_v2 = vld [vmem:[#allocation7 + $0x400] ss:$24 sps:$4 sm:$0xff]  }
 0x1ea   : > { %5279 = vmatprep.subr.bf16.mxu1 %v5278_v58  ;;  %v5284_v8 = vpack.c.bf16 %v2683_v7, %v2681_v5  ;;  %v6042_v25 = vld [vmem:[#allocation7 + $0x3d4] ss:$24 sps:$4 sm:$0xff]   ;;  %v2707_v58 = vld [vmem:[%s8162_s9 + $0x1d0] sm:$0xff] }
 0x1eb   : > { %v2711_v5 = vld [vmem:[%s8162_s9 + $0x1f0] sm:$0xff] }
 0x1ec   : > { %2543 = vmatpush1.bf16.msra.mxu0 %v6004_v11  ;;  %v2688_v11 = vld [vmem:[%s8162_s9 + $0x138] sm:$0xff] }
 0x1ed   : > { %2544 = vmatprep.subr.bf16.mxu0 %v6009_v16  ;;  %5281 = vmatpush1.bf16.msra.mxu1 %v5280_v62  ;;  %v5286_v14 = vpack.c.bf16 %v2688_v11, %v2686_v10  ;;  %v2685_v16 = vld [vmem:[%s8162_s9 + $0x120] sm:$0xff]  ;;  %v2710_v62 = vld [vmem:[%s8162_s9 + $0x1e8] sm:$0xff]  ;;  %v2716_v10 = vld [vmem:[%s8162_s9 + $0x218] sm:$0xff] }
 0x1ee   : > { %5283 = vmatprep.subr.bf16.mxu1 %v5282_v4  ;;  %v5288_v19 = vpack.c.bf16 %v2687_v18, %v2685_v16  ;;  %v2709_v4 = vld [vmem:[%s8162_s9 + $0x1e0] sm:$0xff]  ;;  %v6049_v16 = vld [vmem:[#allocation7 + $0x460] ss:$24 sps:$4 sm:$0xff]  }
 0x1ef   : > { %v5312_v7 = vpack.c.bf16 %v2711_v5, %v2709_v4  ;;  %v6046_v11 = vld [vmem:[#allocation7 + $0x430] ss:$24 sps:$4 sm:$0xff]   ;;  %v824_v4 = vsub.s32 3, %v7059_v9  ;;  %v7319_v5 = vld [vmem:[#allocation9] sm:$0x3f] }
 0x1f0   : > { %2545 = vmatpush1.bf16.msra.mxu0 %v6007_v22  ;;  %v2692_v22 = vld [vmem:[%s8162_s9 + $0x158] sm:$0xff] }
 0x1f1   : > { %2546 = vmatprep.subr.bf16.mxu0 %v6012_v29  ;;  %5285 = vmatpush1.bf16.msra.mxu1 %v5284_v8  ;;  %v5290_v26 = vpack.c.bf16 %v2692_v22, %v2690_v21  ;;  %v2689_v29 = vld [vmem:[%s8162_s9 + $0x140] sm:$0xff]  ;;  %v2714_v8 = vld [vmem:[%s8162_s9 + $0x208] sm:$0xff] }
 0x1f2   : > { %5287 = vmatprep.subr.bf16.mxu1 %v5286_v14  ;;  %v5292_v31 = vpack.c.bf16 %v2691_v30, %v2689_v29  ;;  %v6051_v14 = vld [vmem:[#allocation7 + $0x464] ss:$24 sps:$4 sm:$0xff]   ;;  %v6052_v18 = vld [vmem:[#allocation7 + $0x490] ss:$24 sps:$4 sm:$0xff]   ;;  %v6055_v21 = vld [vmem:[#allocation7 + $0x4c0] ss:$24 sps:$4 sm:$0xff]  }
 0x1f3   : > { %v6060_v22 = vld [vmem:[#allocation7 + $0x4f4] ss:$24 sps:$4 sm:$0xff]   ;;  %v6061_v29 = vld [vmem:[#allocation7 + $0x520] ss:$24 sps:$4 sm:$0xff]  }
 0x1f4   : > { %2547 = vmatpush1.bf16.msra.mxu0 %v6010_v33  ;;  %v2694_v33 = vld [vmem:[%s8162_s9 + $0x168] sm:$0xff] }
 0x1f5   : > { %2548 = vmatprep.subr.bf16.mxu0 %v6015_v37  ;;  %5289 = vmatpush1.bf16.msra.mxu1 %v5288_v19  ;;  %v5294_v37 = vpack.c.bf16 %v2696_v34, %v2694_v33  ;;  %v6057_v19 = vld [vmem:[#allocation7 + $0x4c4] ss:$24 sps:$4 sm:$0xff]   ;;  %v6066_v30 = vld [vmem:[#allocation7 + $0x554] ss:$24 sps:$4 sm:$0xff]   ;;  %v6070_v34 = vld [vmem:[#allocation7 + $0x5b0] ss:$24 sps:$4 sm:$0xff]  }
 0x1f6   : > { %5291 = vmatprep.subr.bf16.mxu1 %v5290_v26  ;;  %v6063_v26 = vld [vmem:[#allocation7 + $0x524] ss:$24 sps:$4 sm:$0xff]   ;;  %v6072_v33 = vld [vmem:[#allocation7 + $0x5b4] ss:$24 sps:$4 sm:$0xff]  }
 0x1f8   : > { %2549 = vmatpush1.bf16.msra.mxu0 %v6013_v42  ;;  %v5298_v42 = vpack.c.bf16 %v2700_v40, %v2698_v39  ;;  %v6076_v39 = vld [vmem:[#allocation7 + $0x610] ss:$24 sps:$4 sm:$0xff]   ;;  %v6081_v40 = vld [vmem:[#allocation7 + $0x644] ss:$24 sps:$4 sm:$0xff]  }
 0x1f9   : > { %2550 = vmatprep.subr.bf16.mxu0 %v6018_v46  ;;  %5293 = vmatpush1.bf16.msra.mxu1 %v5292_v31  ;;  %v2704_v46 = vld [vmem:[%s8162_s9 + $0x1b8] sm:$0xff] }
 0x1fa   : > { %5295 = vmatprep.subr.bf16.mxu1 %v5294_v37  ;;  %v5302_v49 = vpack.c.bf16 %v2704_v46, %v2702_v45  ;;  %v6069_v31 = vld [vmem:[#allocation7 + $0x584] ss:$24 sps:$4 sm:$0xff]   ;;  %v6073_v37 = vld [vmem:[#allocation7 + $0x5e0] ss:$24 sps:$4 sm:$0xff]   ;;  %v6090_v45 = vld [vmem:[#allocation7 + $0x6d4] ss:$24 sps:$4 sm:$0xff]  }
 0x1fb   : > { %v6088_v46 = vld [vmem:[#allocation7 + $0x6d0] ss:$24 sps:$4 sm:$0xff]  }
 0x1fc   : > { %2551 = vmatpush1.bf16.msra.mxu0 %v6016_v50  ;;  %v2701_v50 = vld [vmem:[%s8162_s9 + $0x1a0] sm:$0xff] }
 0x1fd   : > { %2552 = vmatprep.subr.bf16.mxu0 %v6021_v53  ;;  %v2708_v53 = vld [vmem:[%s8162_s9 + $0x1d8] sm:$0xff]  ;;  %v5304_v55 = vpack.c.bf16 %v2703_v51, %v2701_v50  ;;  %v6102_v50 = vld [vmem:[#allocation7 + $0x794] ss:$24 sps:$4 sm:$0xff]  }
 0x1fe   : > { %v5306_v56 = vpack.c.bf16 %v2708_v53, %v2706_v52  ;;  %v6100_v51 = vld [vmem:[#allocation7 + $0x790] ss:$24 sps:$4 sm:$0xff]   ;;  %v6105_v52 = vld [vmem:[#allocation7 + $0x7c4] ss:$24 sps:$4 sm:$0xff]   ;;  %v6103_v53 = vld [vmem:[#allocation7 + $0x7c0] ss:$24 sps:$4 sm:$0xff]  }
 0x200   : > { %2553 = vmatpush1.bf16.msra.mxu0 %v6019_v57  ;;  %v2705_v57 = vld [vmem:[%s8162_s9 + $0x1c0] sm:$0xff] }
 0x201   : > { %2554 = vmatprep.subr.bf16.mxu0 %v6024_v60  ;;  %v6045_v60 = vld [vmem:[#allocation7 + $0x404] ss:$24 sps:$4 sm:$0xff]   ;;  %v5308_v61 = vpack.c.bf16 %v2707_v58, %v2705_v57  ;;  %v6114_v57 = vld [vmem:[#allocation7 + $0x854] ss:$24 sps:$4 sm:$0xff]   ;;  %v6112_v58 = vld [vmem:[#allocation7 + $0x850] ss:$24 sps:$4 sm:$0xff]  }
 0x204   : > { %2555 = vmatpush1.bf16.msra.mxu0 %v6022_v3  ;;  %v5310_v3 = vpack.c.bf16 %v2712_v63, %v2710_v62  ;;  %v6118_v62 = vld [vmem:[#allocation7 + $0x8b0] ss:$24 sps:$4 sm:$0xff]   ;;  %v6123_v63 = vld [vmem:[#allocation7 + $0x8e4] ss:$24 sps:$4 sm:$0xff]  }
 0x205   : > { %2556 = vmatprep.subr.bf16.mxu0 %v6027_v6  ;;  %v6048_v6 = vld [vmem:[#allocation7 + $0x434] ss:$24 sps:$4 sm:$0xff]  }
 0x208   : > { %2557 = vmatpush1.bf16.msra.mxu0 %v6025_v12  ;;  %v5314_v12 = vpack.c.bf16 %v2716_v10, %v2714_v8  ;;  %v825_v8 = vrot.slane %v7319_v5, %v824_v4  ;;  %v2741_v4 = vld [vmem:[%s8162_s9 + $0x2e0] sm:$0xff] }
 0x209   : > { %2567 = vmatprep.subr.bf16.mxu0 %v6030_v17  ;;  %v6054_v17 = vld [vmem:[#allocation7 + $0x494] ss:$24 sps:$4 sm:$0xff]  }
 0x20b   : > { %2559 = vmatmul.mubr.bf16.vlgmr.msra.gmra.mrb[4].mxu0 %v7083_v23  ;;  %v2695_v23 = vld [vmem:[%s8162_s9 + $0x170] sm:$0xff] }
 0x20c   : > { %2568 = vmatpush1.bf16.msra.mxu0 %v6028_v24  ;;  %2599 = vmatprep.mubr.bf16.mxu0 %v7085_v27  ;;  %v5296_v13 = vpack.c.bf16 %v2695_v23, %v2693_v36  ;;  %v2697_v27 = vld [vmem:[%s8162_s9 + $0x180] sm:$0xff]  ;;  %v6075_v36 = vld [vmem:[#allocation7 + $0x5e4] ss:$24 sps:$4 sm:$0xff]  }
 0x20d   : > { %2569 = vmatprep.subr.bf16.mxu0 %v6033_v20  ;;  %v5300_v28 = vpack.c.bf16 %v2699_v44, %v2697_v27  ;;  %v6058_v24 = vld [vmem:[#allocation7 + $0x4f0] ss:$24 sps:$4 sm:$0xff]   ;;  %v6078_v23 = vld [vmem:[#allocation7 + $0x614] ss:$24 sps:$4 sm:$0xff]   ;;  %v6087_v27 = vld [vmem:[#allocation7 + $0x6a4] ss:$24 sps:$4 sm:$0xff]  }
 0x20e   : > { %5297 = vmatpush1.bf16.msra.mxu1 %v5296_v13  ;;  %v6064_v20 = vld [vmem:[#allocation7 + $0x550] ss:$24 sps:$4 sm:$0xff]   ;;  %v6084_v13 = vld [vmem:[#allocation7 + $0x674] ss:$24 sps:$4 sm:$0xff]   ;;  %v6085_v44 = vld [vmem:[#allocation7 + $0x6a0] ss:$24 sps:$4 sm:$0xff]  }
 0x20f   : > { %5299 = vmatprep.subr.bf16.mxu1 %v5298_v42  ;;  %v6082_v42 = vld [vmem:[#allocation7 + $0x670] ss:$24 sps:$4 sm:$0xff]  }
 0x210   : > { %2570 = vmatpush1.bf16.msra.mxu0 %v6031_v32  ;;  %v6067_v32 = vld [vmem:[#allocation7 + $0x580] ss:$24 sps:$4 sm:$0xff]  }
 0x211   : > { %2571 = vmatprep.subr.bf16.mxu0 %v6036_v41  ;;  %v6079_v41 = vld [vmem:[#allocation7 + $0x640] ss:$24 sps:$4 sm:$0xff]  }
 0x212   : > { %5301 = vmatpush1.bf16.msra.mxu1 %v5300_v28  ;;  %v6099_v28 = vld [vmem:[#allocation7 + $0x764] ss:$24 sps:$4 sm:$0xff]  }
 0x213   : > { %5303 = vmatprep.subr.bf16.mxu1 %v5302_v49  ;;  %v6097_v49 = vld [vmem:[#allocation7 + $0x760] ss:$24 sps:$4 sm:$0xff]  }
 0x214   : > { %2572 = vmatpush1.bf16.msra.mxu0 %v6034_v47  ;;  %v6093_v47 = vld [vmem:[#allocation7 + $0x704] ss:$24 sps:$4 sm:$0xff]  }
 0x215   : > { %2573 = vmatprep.subr.bf16.mxu0 %v6039_v48  ;;  %v6096_v48 = vld [vmem:[#allocation7 + $0x734] ss:$24 sps:$4 sm:$0xff]  }
 0x216   : > { %5305 = vmatpush1.bf16.msra.mxu1 %v5304_v55  ;;  %v6111_v55 = vld [vmem:[#allocation7 + $0x824] ss:$24 sps:$4 sm:$0xff]  }
 0x217   : > { %5307 = vmatprep.subr.bf16.mxu1 %v5306_v56  ;;  %v6109_v56 = vld [vmem:[#allocation7 + $0x820] ss:$24 sps:$4 sm:$0xff]  }
 0x218   : > { %2574 = vmatpush1.bf16.msra.mxu0 %v6037_v54  ;;  %v6108_v54 = vld [vmem:[#allocation7 + $0x7f4] ss:$24 sps:$4 sm:$0xff]  }
 0x219   : > { %2575 = vmatprep.subr.bf16.mxu0 %v6042_v25  ;;  %v6106_v25 = vld [vmem:[#allocation7 + $0x7f0] ss:$24 sps:$4 sm:$0xff]  }
 0x21a   : > { %5309 = vmatpush1.bf16.msra.mxu1 %v5308_v61  ;;  %v6120_v61 = vld [vmem:[#allocation7 + $0x8b4] ss:$24 sps:$4 sm:$0xff]  }
 0x21b   : > { %5311 = vmatprep.subr.bf16.mxu1 %v5310_v3  ;;  %v816_v3 = vsub.s32 1, %v7059_v9 }
 0x21c   : > { %2576 = vmatpush1.bf16.msra.mxu0 %v6040_v59  ;;  %v6117_v59 = vld [vmem:[#allocation7 + $0x884] ss:$24 sps:$4 sm:$0xff]  }
 0x21d   : > { %2577 = vmatprep.subr.bf16.mxu0 %v6045_v60  ;;  %v6115_v60 = vld [vmem:[#allocation7 + $0x880] ss:$24 sps:$4 sm:$0xff]  }
 0x21e   : > { %5313 = vmatpush1.bf16.msra.mxu1 %v5312_v7  ;;  %v817_v7 = vrot.slane %v7319_v5, %v816_v3 }
 0x21f   : > { %5315 = vmatprep.subr.bf16.mxu1 %v5314_v12 }
 0x220   : > { %2578 = vmatpush1.bf16.msra.mxu0 %v6043_v2  ;;  %v6121_v2 = vld [vmem:[#allocation7 + $0x8e0] ss:$24 sps:$4 sm:$0xff]  }
 0x221   : > { %2579 = vmatprep.subr.bf16.mxu0 %v6048_v6  ;;  %v812_v6 = vsub.s32 0, %v7059_v9 }
 0x223   : > { %v813_v10 = vrot.slane %v7319_v5, %v812_v6 }
 0x224   : > { %2580 = vmatpush1.bf16.msra.mxu0 %v6046_v11  ;;  %v2715_v11 = vld [vmem:[%s8162_s9 + $0x210] sm:$0xff] }
 0x225   : > { %2581 = vmatprep.subr.bf16.mxu0 %v6051_v14 }
 0x228   : > { %2582 = vmatpush1.bf16.msra.mxu0 %v6049_v16  ;;  %v2718_v16 = vld [vmem:[%s8162_s9 + $0x228] sm:$0xff] }
 0x229   : > { %2583 = vmatprep.subr.bf16.mxu0 %v6054_v17  ;;  %v2720_v17 = vld [vmem:[%s8162_s9 + $0x238] sm:$0xff] }
 0x22c   : > { %2584 = vmatpush1.bf16.msra.mxu0 %v6052_v18 }
 0x22d   : > { %2585 = vmatprep.subr.bf16.mxu0 %v6057_v19 }
 0x230   : > { %2586 = vmatpush1.bf16.msra.mxu0 %v6055_v21 }
 0x231   : > { %2587 = vmatprep.subr.bf16.mxu0 %v6060_v22 }
 0x234   : > { %2588 = vmatpush1.bf16.msra.mxu0 %v6058_v24 }
 0x235   : > { %2589 = vmatprep.subr.bf16.mxu0 %v6063_v26 }
 0x238   : > { %2590 = vmatpush1.bf16.msra.mxu0 %v6061_v29 }
 0x239   : > { %2591 = vmatprep.subr.bf16.mxu0 %v6066_v30 }
 0x23c   : > { %2592 = vmatpush1.bf16.msra.mxu0 %v6064_v20 }
 0x23d   : > { %2593 = vmatprep.subr.bf16.mxu0 %v6069_v31 }
 0x240   : > { %2594 = vmatpush1.bf16.msra.mxu0 %v6067_v32  ;;  %v5318_v32 = vpack.c.bf16 %v2720_v17, %v2718_v16  ;;  %v2747_v16 = vld [vmem:[%s8162_s9 + $0x310] sm:$0xff]  ;;  %v2750_v17 = vld [vmem:[%s8162_s9 + $0x328] sm:$0xff] }
 0x241   : > { %2595 = vmatprep.subr.bf16.mxu0 %v6072_v33  ;;  %v2717_v33 = vld [vmem:[%s8162_s9 + $0x220] sm:$0xff] }
 0x244   : > { %2596 = vmatpush1.bf16.msra.mxu0 %v6070_v34  ;;  %v2719_v34 = vld [vmem:[%s8162_s9 + $0x230] sm:$0xff] }
 0x245   : > { %2597 = vmatprep.subr.bf16.mxu0 %v6075_v36  ;;  %v2722_v36 = vld [vmem:[%s8162_s9 + $0x248] sm:$0xff] }
 0x248   : > { %2598 = vmatpush1.bf16.msra.mxu0 %v6073_v37  ;;  %v2724_v37 = vld [vmem:[%s8162_s9 + $0x258] sm:$0xff] }
 0x249   : > { %2608 = vmatprep.subr.bf16.mxu0 %v6078_v23  ;;  %v5320_v23 = vpack.c.bf16 %v2719_v34, %v2717_v33  ;;  %v2753_v34 = vld [vmem:[%s8162_s9 + $0x340] sm:$0xff] }
 0x24b   : > { %2600 = vmatmul.mubr.bf16.vlgmr.msra.gmra.mrb[4].mxu0 %v7099_v35  ;;  %v6091_v35 = vld [vmem:[#allocation7 + $0x700] ss:$24 sps:$4 sm:$0xff]  }
 0x24c   : > { %2609 = vmatpush1.bf16.msra.mxu0 %v6076_v39  ;;  %2640 = vmatprep.mubr.bf16.mxu0 %v7101_v38  ;;  %v6094_v38 = vld [vmem:[#allocation7 + $0x730] ss:$24 sps:$4 sm:$0xff]   ;;  %v5322_v39 = vpack.c.bf16 %v2724_v37, %v2722_v36  ;;  %v2755_v36 = vld [vmem:[%s8162_s9 + $0x350] sm:$0xff]  ;;  %v2758_v37 = vld [vmem:[%s8162_s9 + $0x368] sm:$0xff] }
 0x24d   : > { %2610 = vmatprep.subr.bf16.mxu0 %v6081_v40  ;;  %v2721_v40 = vld [vmem:[%s8162_s9 + $0x240] sm:$0xff] }
 0x250   : > { %2611 = vmatpush1.bf16.msra.mxu0 %v6079_v41  ;;  %v2723_v41 = vld [vmem:[%s8162_s9 + $0x250] sm:$0xff] }
 0x251   : > { %2612 = vmatprep.subr.bf16.mxu0 %v6084_v13  ;;  %v2726_v13 = vld [vmem:[%s8162_s9 + $0x268] sm:$0xff] }
 0x254   : > { %2613 = vmatpush1.bf16.msra.mxu0 %v6082_v42  ;;  %v2728_v42 = vld [vmem:[%s8162_s9 + $0x278] sm:$0xff] }
 0x255   : > { %2614 = vmatprep.subr.bf16.mxu0 %v6087_v27  ;;  %v5324_v27 = vpack.c.bf16 %v2723_v41, %v2721_v40  ;;  %v2757_v41 = vld [vmem:[%s8162_s9 + $0x360] sm:$0xff] }
 0x258   : > { %2615 = vmatpush1.bf16.msra.mxu0 %v6085_v44  ;;  %v5326_v44 = vpack.c.bf16 %v2728_v42, %v2726_v13  ;;  %v2759_v13 = vld [vmem:[%s8162_s9 + $0x370] sm:$0xff]  ;;  %v2762_v42 = vld [vmem:[%s8162_s9 + $0x388] sm:$0xff] }
 0x259   : > { %2616 = vmatprep.subr.bf16.mxu0 %v6090_v45  ;;  %v2725_v45 = vld [vmem:[%s8162_s9 + $0x260] sm:$0xff] }
 0x25c   : > { %2617 = vmatpush1.bf16.msra.mxu0 %v6088_v46  ;;  %v2727_v46 = vld [vmem:[%s8162_s9 + $0x270] sm:$0xff] }
 0x25d   : > { %2618 = vmatprep.subr.bf16.mxu0 %v6093_v47  ;;  %v2730_v47 = vld [vmem:[%s8162_s9 + $0x288] sm:$0xff] }
 0x260   : > { %2619 = vmatpush1.bf16.msra.mxu0 %v6091_v35  ;;  %v2732_v35 = vld [vmem:[%s8162_s9 + $0x298] sm:$0xff] }
 0x261   : > { %2620 = vmatprep.subr.bf16.mxu0 %v6096_v48  ;;  %v5328_v48 = vpack.c.bf16 %v2727_v46, %v2725_v45  ;;  %v2761_v46 = vld [vmem:[%s8162_s9 + $0x380] sm:$0xff] }
 0x264   : > { %2621 = vmatpush1.bf16.msra.mxu0 %v6094_v38  ;;  %v5330_v38 = vpack.c.bf16 %v2732_v35, %v2730_v47  ;;  %v2763_v47 = vld [vmem:[%s8162_s9 + $0x390] sm:$0xff]  ;;  %v2766_v35 = vld [vmem:[%s8162_s9 + $0x3a8] sm:$0xff] }
 0x265   : > { %2622 = vmatprep.subr.bf16.mxu0 %v6099_v28  ;;  %v2729_v28 = vld [vmem:[%s8162_s9 + $0x280] sm:$0xff] }
 0x268   : > { %2623 = vmatpush1.bf16.msra.mxu0 %v6097_v49  ;;  %v2731_v49 = vld [vmem:[%s8162_s9 + $0x290] sm:$0xff] }
 0x269   : > { %2624 = vmatprep.subr.bf16.mxu0 %v6102_v50  ;;  %v2734_v50 = vld [vmem:[%s8162_s9 + $0x2a8] sm:$0xff] }
 0x26c   : > { %2625 = vmatpush1.bf16.msra.mxu0 %v6100_v51  ;;  %v2736_v51 = vld [vmem:[%s8162_s9 + $0x2b8] sm:$0xff] }
 0x26d   : > { %2626 = vmatprep.subr.bf16.mxu0 %v6105_v52  ;;  %v5332_v52 = vpack.c.bf16 %v2731_v49, %v2729_v28  ;;  %v2765_v49 = vld [vmem:[%s8162_s9 + $0x3a0] sm:$0xff] }
 0x270   : > { %2627 = vmatpush1.bf16.msra.mxu0 %v6103_v53  ;;  %v5334_v53 = vpack.c.bf16 %v2736_v51, %v2734_v50  ;;  %v2767_v50 = vld [vmem:[%s8162_s9 + $0x3b0] sm:$0xff]  ;;  %v2770_v51 = vld [vmem:[%s8162_s9 + $0x3c8] sm:$0xff] }
 0x271   : > { %2628 = vmatprep.subr.bf16.mxu0 %v6108_v54  ;;  %v2733_v54 = vld [vmem:[%s8162_s9 + $0x2a0] sm:$0xff] }
 0x274   : > { %2629 = vmatpush1.bf16.msra.mxu0 %v6106_v25  ;;  %v2735_v25 = vld [vmem:[%s8162_s9 + $0x2b0] sm:$0xff] }
 0x275   : > { %2630 = vmatprep.subr.bf16.mxu0 %v6111_v55  ;;  %v2738_v55 = vld [vmem:[%s8162_s9 + $0x2c8] sm:$0xff] }
 0x278   : > { %2631 = vmatpush1.bf16.msra.mxu0 %v6109_v56  ;;  %v2740_v56 = vld [vmem:[%s8162_s9 + $0x2d8] sm:$0xff] }
 0x279   : > { %2632 = vmatprep.subr.bf16.mxu0 %v6114_v57  ;;  %v5336_v57 = vpack.c.bf16 %v2735_v25, %v2733_v54  ;;  %v2769_v25 = vld [vmem:[%s8162_s9 + $0x3c0] sm:$0xff] }
 0x27c   : > { %2633 = vmatpush1.bf16.msra.mxu0 %v6112_v58  ;;  %v5338_v58 = vpack.c.bf16 %v2740_v56, %v2738_v55  ;;  %v2771_v55 = vld [vmem:[%s8162_s9 + $0x3d0] sm:$0xff]  ;;  %v2774_v56 = vld [vmem:[%s8162_s9 + $0x3e8] sm:$0xff] }
 0x27d   : > { %2634 = vmatprep.subr.bf16.mxu0 %v6117_v59  ;;  %v2737_v59 = vld [vmem:[%s8162_s9 + $0x2c0] sm:$0xff] }
 0x280   : > { %2635 = vmatpush1.bf16.msra.mxu0 %v6115_v60  ;;  %v2739_v60 = vld [vmem:[%s8162_s9 + $0x2d0] sm:$0xff] }
 0x281   : > { %2636 = vmatprep.subr.bf16.mxu0 %v6120_v61  ;;  %v2742_v61 = vld [vmem:[%s8162_s9 + $0x2e8] sm:$0xff] }
 0x284   : > { %2637 = vmatpush1.bf16.msra.mxu0 %v6118_v62  ;;  %v2744_v62 = vld [vmem:[%s8162_s9 + $0x2f8] sm:$0xff] }
 0x285   : > { %2638 = vmatprep.subr.bf16.mxu0 %v6123_v63  ;;  %v5340_v63 = vpack.c.bf16 %v2739_v60, %v2737_v59  ;;  %v820_v59 = vsub.s32 2, %v7059_v9 }
 0x288   : > { %2639 = vmatpush1.bf16.msra.mxu0 %v6121_v2  ;;  %v5342_v2 = vpack.c.bf16 %v2744_v62, %v2742_v61  ;;  %v2773_v61 = vld [vmem:[%s8162_s9 + $0x3e0] sm:$0xff]  ;;  %v2775_v62 = vld [vmem:[%s8162_s9 + $0x3f0] sm:$0xff] }
 0x28b   : > { %2641 = vmatmul.mubr.bf16.vlgmr.msra.gmra.mrb[4].mxu0 %v7109_v43  ;;  %v2713_v43 = vld [vmem:[%s8162_s9 + $0x200] sm:$0xff] }
 0x28c   : > { %v5316_v29 = vpack.c.bf16 %v2715_v11, %v2713_v43 }
 0x29e   : > { %v2396_v12 = vpop.f32.mrb[0].mxu0 }
 0x29f   : > { %v7335_v14 = vpop.f32.mrb[0].mxu1  ;;  %v2398_v18 = vpop.f32.mrb[1].mxu0  ;;  %v7347_v30 = vadd.f32 %v2396_v12, %v813_v10  ;;  %v2748_v10 = vld [vmem:[%s8162_s9 + $0x318] sm:$0xff]  ;;  %v2745_v12 = vld [vmem:[%s8162_s9 + $0x300] sm:$0xff] }
 0x2a0   : > { %v2521_v19 = vpop.f32.mrb[1].mxu1  ;;  %v7343_v21 = vadd.f32 %v2398_v18, %v817_v7  ;;  %v2400_v24 = vpop.f32.mrb[2].mxu0  ;;  %v2743_v7 = vld [vmem:[%s8162_s9 + $0x2f0] sm:$0xff]  ;;  %v2752_v18 = vld [vmem:[%s8162_s9 + $0x338] sm:$0xff] }
 0x2a1   : > { %v7345_v22 = vadd.f32 %v2521_v19, %v825_v8  ;;  %v2523_v26 = vpop.f32.mrb[2].mxu1  ;;  %v2401_v20 = vpop.f32.mrb[3].mxu0  ;;  %v2746_v8 = vld [vmem:[%s8162_s9 + $0x308] sm:$0xff]  ;;  %v5344_v43 = vpack.c.bf16 %v2743_v7, %v2741_v4  ;;  %v5348_v19 = vpack.c.bf16 %v2747_v16, %v2745_v12  ;;  %v5350_v24 = vpack.c.bf16 %v2752_v18, %v2750_v17  ;;  %v2784_v12 = vld [vmem:[%s8162_s9 + $0x438] sm:$0xff] }
 0x2a2   : > { %v2524_v31 = vpop.f32.mrb[3].mxu1  ;;  %2917 = vmatprep.mubr.f32.mxu1 %v7343_v21  ;;  %v5346_v11 = vpack.c.bf16 %v2748_v10, %v2746_v8  ;;  %v2749_v26 = vld [vmem:[%s8162_s9 + $0x320] sm:$0xff]  ;;  %v2754_v20 = vld [vmem:[%s8162_s9 + $0x348] sm:$0xff]  ;;  %v5376_v4 = vpack.c.bf16 %v2775_v62, %v2773_v61  ;;  %v821_v7 = vrot.slane %v7319_v5, %v820_v59  ;;  %v2799_v61 = vld [vmem:[%s8162_s9 + $0x4b0] sm:$0xff] }
 0x2a3   : > { %2918 = vmatmul.mubr.f32.vlgmr.msra.gmra.mrb[4].mxu1 %v7347_v30  ;;  %v2756_v31 = vld [vmem:[%s8162_s9 + $0x358] sm:$0xff]  ;;  %v2777_v10 = vld [vmem:[%s8162_s9 + $0x400] sm:$0xff]  ;;  %v2802_v62 = vld [vmem:[%s8162_s9 + $0x4c8] sm:$0xff] }
 0x2a4   : > { %5317 = vmatpush1.bf16.msra.mxu1 %v5316_v29  ;;  %2988 = vmatprep.mubr.f32.mxu1 %v7345_v22  ;;  %v2751_v29 = vld [vmem:[%s8162_s9 + $0x330] sm:$0xff]  ;;  %v5354_v33 = vpack.c.bf16 %v2756_v31, %v2754_v20  ;;  %v7547_v17 = vadd.f32 %v7335_v14, %v821_v7  ;;  %v3068_v14 = vld [vmem:[%s8163_s24] sm:$0xff]  ;;  %v3069_v20 = vld [vmem:[%s8163_s24 + $0x8] sm:$0xff] }
 0x2a5   : > { %5319 = vmatprep.subr.bf16.mxu1 %v5318_v32  ;;  %v5352_v32 = vpack.c.bf16 %v2751_v29, %v2749_v26  ;;  %v2786_v26 = vld [vmem:[%s8162_s9 + $0x448] sm:$0xff]  ;;  %v2788_v29 = vld [vmem:[%s8162_s9 + $0x458] sm:$0xff]  ;;  %v3070_v31 = vld [vmem:[%s8163_s24 + $0x10] sm:$0xff] }
 0x2a6   : > { %v3079_v7 = vld [vmem:[%s8163_s24 + $0x58] sm:$0xff] }
 0x2a8   : > { %5321 = vmatpush1.bf16.msra.mxu1 %v5320_v23  ;;  %v2760_v23 = vld [vmem:[%s8162_s9 + $0x378] sm:$0xff] }
 0x2a9   : > { %5323 = vmatprep.subr.bf16.mxu1 %v5322_v39  ;;  %v5356_v39 = vpack.c.bf16 %v2755_v36, %v2753_v34  ;;  %v5358_v40 = vpack.c.bf16 %v2760_v23, %v2758_v37  ;;  %v5443_v34 = vpack.c.bf16 %v3069_v20, %v3068_v14  ;;  %v3071_v36 = vld [vmem:[%s8163_s24 + $0x18] sm:$0xff]  ;;  %v5386_v37 = vpack.c.bf16 %v2788_v29, %v2786_v26  ;;  %v2785_v23 = vld [vmem:[%s8162_s9 + $0x440] sm:$0xff]  ;;  %v2807_v20 = vld [vmem:[%s8162_s9 + $0x4f0] sm:$0xff] }
 0x2aa   : > { %v2805_v14 = vld [vmem:[%s8162_s9 + $0x4e0] sm:$0xff] }
 0x2ac   : > { %5325 = vmatpush1.bf16.msra.mxu1 %v5324_v27  ;;  %v2764_v27 = vld [vmem:[%s8162_s9 + $0x398] sm:$0xff] }
 0x2ad   : > { %5327 = vmatprep.subr.bf16.mxu1 %v5326_v44  ;;  %v5360_v44 = vpack.c.bf16 %v2759_v13, %v2757_v41  ;;  %v5362_v45 = vpack.c.bf16 %v2764_v27, %v2762_v42  ;;  %v2792_v41 = vld [vmem:[%s8162_s9 + $0x478] sm:$0xff]  ;;  %v5446_v13 = vpack.c.bf16 %v3071_v36, %v3070_v31  ;;  %v3072_v42 = vld [vmem:[%s8163_s24 + $0x20] sm:$0xff]  ;;  %v3073_v27 = vld [vmem:[%s8163_s24 + $0x28] sm:$0xff] }
 0x2ae   : > { %v2810_v31 = vld [vmem:[%s8162_s9 + $0x508] sm:$0xff]  ;;  %v3082_v36 = vld [vmem:[%s8163_s24 + $0x70] sm:$0xff] }
 0x2b0   : > { %5329 = vmatpush1.bf16.msra.mxu1 %v5328_v48  ;;  %v2768_v48 = vld [vmem:[%s8162_s9 + $0x3b8] sm:$0xff] }
 0x2b1   : > { %5331 = vmatprep.subr.bf16.mxu1 %v5330_v38  ;;  %v5364_v38 = vpack.c.bf16 %v2763_v47, %v2761_v46  ;;  %v5366_v28 = vpack.c.bf16 %v2768_v48, %v2766_v35  ;;  %v2789_v46 = vld [vmem:[%s8162_s9 + $0x460] sm:$0xff]  ;;  %v2791_v47 = vld [vmem:[%s8162_s9 + $0x470] sm:$0xff]  ;;  %v2794_v35 = vld [vmem:[%s8162_s9 + $0x488] sm:$0xff] }
 0x2b2   : > { %v2796_v48 = vld [vmem:[%s8162_s9 + $0x498] sm:$0xff] }
 0x2b4   : > { %5333 = vmatpush1.bf16.msra.mxu1 %v5332_v52  ;;  %v2772_v52 = vld [vmem:[%s8162_s9 + $0x3d8] sm:$0xff] }
 0x2b5   : > { %5335 = vmatprep.subr.bf16.mxu1 %v5334_v53  ;;  %v5368_v53 = vpack.c.bf16 %v2767_v50, %v2765_v49  ;;  %v5370_v54 = vpack.c.bf16 %v2772_v52, %v2770_v51  ;;  %v3075_v49 = vld [vmem:[%s8163_s24 + $0x38] sm:$0xff]  ;;  %v5392_v50 = vpack.c.bf16 %v2791_v47, %v2789_v46  ;;  %v5394_v51 = vpack.c.bf16 %v2796_v48, %v2794_v35  ;;  %v2793_v52 = vld [vmem:[%s8162_s9 + $0x480] sm:$0xff]  ;;  %v2815_v48 = vld [vmem:[%s8162_s9 + $0x530] sm:$0xff] }
 0x2b6   : > { %v2813_v35 = vld [vmem:[%s8162_s9 + $0x520] sm:$0xff] }
 0x2b8   : > { %5337 = vmatpush1.bf16.msra.mxu1 %v5336_v57  ;;  %v2776_v57 = vld [vmem:[%s8162_s9 + $0x3f8] sm:$0xff] }
 0x2b9   : > { %5339 = vmatprep.subr.bf16.mxu1 %v5338_v58  ;;  %v5372_v58 = vpack.c.bf16 %v2771_v55, %v2769_v25  ;;  %v5374_v60 = vpack.c.bf16 %v2776_v57, %v2774_v56  ;;  %v2800_v25 = vld [vmem:[%s8162_s9 + $0x4b8] sm:$0xff]  ;;  %v3076_v56 = vld [vmem:[%s8163_s24 + $0x40] sm:$0xff]  ;;  %v3077_v57 = vld [vmem:[%s8163_s24 + $0x48] sm:$0xff] }
 0x2bc   : > { %5341 = vmatpush1.bf16.msra.mxu1 %v5340_v63  ;;  %v2778_v63 = vld [vmem:[%s8162_s9 + $0x408] sm:$0xff] }
 0x2bd   : > { %5343 = vmatprep.subr.bf16.mxu1 %v5342_v2  ;;  %v2780_v2 = vld [vmem:[%s8162_s9 + $0x418] sm:$0xff] }
 0x2be   : > { %v5378_v8 = vpack.c.bf16 %v2780_v2, %v2778_v63  ;;  %v2804_v63 = vld [vmem:[%s8162_s9 + $0x4d8] sm:$0xff]  ;;  %v5455_v2 = vpack.c.bf16 %v3077_v57, %v3076_v56 }
 0x2bf   : > { %v2824_v56 = vld [vmem:[%s8162_s9 + $0x578] sm:$0xff] }
 0x2c0   : > { %5345 = vmatpush1.bf16.msra.mxu1 %v5344_v43  ;;  %v2779_v43 = vld [vmem:[%s8162_s9 + $0x410] sm:$0xff] }
 0x2c1   : > { %5347 = vmatprep.subr.bf16.mxu1 %v5346_v11  ;;  %v2782_v11 = vld [vmem:[%s8162_s9 + $0x428] sm:$0xff]  ;;  %v5380_v16 = vpack.c.bf16 %v2779_v43, %v2777_v10  ;;  %v5402_v10 = vpack.c.bf16 %v2804_v63, %v2802_v62  ;;  %v2801_v43 = vld [vmem:[%s8162_s9 + $0x4c0] sm:$0xff]  ;;  %v2828_v63 = vld [vmem:[%s8162_s9 + $0x598] sm:$0xff] }
 0x2c2   : > { %v5382_v18 = vpack.c.bf16 %v2784_v12, %v2782_v11  ;;  %v2803_v11 = vld [vmem:[%s8162_s9 + $0x4d0] sm:$0xff]  ;;  %v2806_v12 = vld [vmem:[%s8162_s9 + $0x4e8] sm:$0xff] }
 0x2c3   : > { %v5404_v26 = vpack.c.bf16 %v2803_v11, %v2801_v43  ;;  %v2826_v62 = vld [vmem:[%s8162_s9 + $0x588] sm:$0xff]  ;;  %v2832_v43 = vld [vmem:[%s8162_s9 + $0x5b8] sm:$0xff] }
 0x2c4   : > { %5349 = vmatpush1.bf16.msra.mxu1 %v5348_v19  ;;  %v2781_v19 = vld [vmem:[%s8162_s9 + $0x420] sm:$0xff] }
 0x2c5   : > { %5351 = vmatprep.subr.bf16.mxu1 %v5350_v24  ;;  %v2783_v24 = vld [vmem:[%s8162_s9 + $0x430] sm:$0xff] }
 0x2c8   : > { %5353 = vmatpush1.bf16.msra.mxu1 %v5352_v32  ;;  %v5384_v32 = vpack.c.bf16 %v2783_v24, %v2781_v19  ;;  %v3080_v19 = vld [vmem:[%s8163_s24 + $0x60] sm:$0xff]  ;;  %v3081_v24 = vld [vmem:[%s8163_s24 + $0x68] sm:$0xff] }
 0x2c9   : > { %5355 = vmatprep.subr.bf16.mxu1 %v5354_v33  ;;  %v6664_v33 = vmov 0.0|0.0  }
 0x2ca   : > { %5442 = vmatprep.subr.bf16.mxu0 %v6664_v33 }
 0x2cb   : > { %5444 = vmatpush1.bf16.msra.mxu0 %v5443_v34  ;;  %v5461_v34 = vpack.c.bf16 %v3081_v24, %v3080_v19  ;;  %v2834_v19 = vld [vmem:[%s8162_s9 + $0x5c8] sm:$0xff]  ;;  %v2836_v24 = vld [vmem:[%s8162_s9 + $0x5d8] sm:$0xff] }
 0x2cc   : > { %5357 = vmatpush1.bf16.msra.mxu1 %v5356_v39  ;;  %v2787_v39 = vld [vmem:[%s8162_s9 + $0x450] sm:$0xff]  ;;  %5445 = vmatprep.subr.bf16.mxu0 %v6664_v33 }
 0x2cd   : > { %5359 = vmatprep.subr.bf16.mxu1 %v5358_v40  ;;  %v2790_v40 = vld [vmem:[%s8162_s9 + $0x468] sm:$0xff] }
 0x2cf   : > { %5447 = vmatpush1.bf16.msra.mxu0 %v5446_v13  ;;  %v2814_v13 = vld [vmem:[%s8162_s9 + $0x528] sm:$0xff] }
 0x2d0   : > { %5361 = vmatpush1.bf16.msra.mxu1 %v5360_v44  ;;  %v5388_v44 = vpack.c.bf16 %v2787_v39, %v2785_v23  ;;  %5448 = vmatprep.subr.bf16.mxu0 %v6664_v33  ;;  %v5408_v23 = vpack.c.bf16 %v2807_v20, %v2805_v14  ;;  %v2833_v14 = vld [vmem:[%s8162_s9 + $0x5c0] sm:$0xff]  ;;  %v2835_v20 = vld [vmem:[%s8162_s9 + $0x5d0] sm:$0xff] }
 0x2d1   : > { %5363 = vmatprep.subr.bf16.mxu1 %v5362_v45  ;;  %v5390_v45 = vpack.c.bf16 %v2792_v41, %v2790_v40  ;;  %v2809_v40 = vld [vmem:[%s8162_s9 + $0x500] sm:$0xff]  ;;  %v2811_v41 = vld [vmem:[%s8162_s9 + $0x510] sm:$0xff] }
 0x2d2   : > { %v5412_v46 = vpack.c.bf16 %v2811_v41, %v2809_v40  ;;  %v832_v40 = vsub.s32 5, %v7059_v9  ;;  %v828_v41 = vsub.s32 4, %v7059_v9  ;;  %v3182_v9 = vcombine.low (!%p5033_p2), %v7347_v30, %v7343_v21 }
 0x2d4   : > { %5365 = vmatpush1.bf16.msra.mxu1 %v5364_v38  ;;  %v5449_v38 = vpack.c.bf16 %v3073_v27, %v3072_v42  ;;  %v2816_v42 = vld [vmem:[%s8162_s9 + $0x538] sm:$0xff] }
 0x2d5   : > { %5367 = vmatprep.subr.bf16.mxu1 %v5366_v28  ;;  %v3074_v28 = vld [vmem:[%s8163_s24 + $0x30] sm:$0xff]  ;;  %v5414_v47 = vpack.c.bf16 %v2816_v42, %v2814_v13  ;;  %v833_v13 = vrot.slane %v7319_v5, %v832_v40  ;;  %v829_v42 = vrot.slane %v7319_v5, %v828_v41 }
 0x2d6   : > { %5450 = vmatpush1.bf16.msra.mxu0 %v5449_v38  ;;  %v5452_v55 = vpack.c.bf16 %v3075_v49, %v3074_v28  ;;  %v2818_v38 = vld [vmem:[%s8162_s9 + $0x548] sm:$0xff]  ;;  %v2820_v28 = vld [vmem:[%s8162_s9 + $0x558] sm:$0xff]  ;;  %v3090_v5 = vld [vmem:[%s8163_s24 + $0xb0] sm:$0xff] }
 0x2d7   : > { %5451 = vmatprep.subr.bf16.mxu0 %v6664_v33 }
 0x2d8   : > { %5369 = vmatpush1.bf16.msra.mxu1 %v5368_v53  ;;  %v2795_v53 = vld [vmem:[%s8162_s9 + $0x490] sm:$0xff] }
 0x2d9   : > { %5371 = vmatprep.subr.bf16.mxu1 %v5370_v54  ;;  %v2798_v54 = vld [vmem:[%s8162_s9 + $0x4a8] sm:$0xff] }
 0x2da   : > { %v5398_v59 = vpack.c.bf16 %v2800_v25, %v2798_v54  ;;  %5453 = vmatpush1.bf16.msra.mxu0 %v5452_v55  ;;  %v2817_v54 = vld [vmem:[%s8162_s9 + $0x540] sm:$0xff]  ;;  %v2819_v25 = vld [vmem:[%s8162_s9 + $0x550] sm:$0xff]  ;;  %v2822_v55 = vld [vmem:[%s8162_s9 + $0x568] sm:$0xff] }
 0x2db   : > { %5454 = vmatprep.subr.bf16.mxu0 %v6664_v33 }
 0x2dc   : > { %5373 = vmatpush1.bf16.msra.mxu1 %v5372_v58  ;;  %v5396_v58 = vpack.c.bf16 %v2795_v53, %v2793_v52  ;;  %v5416_v52 = vpack.c.bf16 %v2815_v48, %v2813_v35  ;;  %v5418_v53 = vpack.c.bf16 %v2820_v28, %v2818_v38  ;;  %v3088_v48 = vld [vmem:[%s8163_s24 + $0xa0] sm:$0xff]  ;;  %v3089_v38 = vld [vmem:[%s8163_s24 + $0xa8] sm:$0xff] }
 0x2dd   : > { %5375 = vmatprep.subr.bf16.mxu1 %v5374_v60  ;;  %v2797_v60 = vld [vmem:[%s8162_s9 + $0x4a0] sm:$0xff]  ;;  %v5473_v28 = vpack.c.bf16 %v3089_v38, %v3088_v48 }
 0x2de   : > { %5456 = vmatpush1.bf16.msra.mxu0 %v5455_v2 }
 0x2df   : > { %5457 = vmatprep.subr.bf16.mxu0 %v6664_v33 }
 0x2e0   : > { %5377 = vmatpush1.bf16.msra.mxu1 %v5376_v4  ;;  %v3078_v4 = vld [vmem:[%s8163_s24 + $0x50] sm:$0xff] }
 0x2e1   : > { %5379 = vmatprep.subr.bf16.mxu1 %v5378_v8  ;;  %v5400_v8 = vpack.c.bf16 %v2799_v61, %v2797_v60  ;;  %v2821_v60 = vld [vmem:[%s8162_s9 + $0x560] sm:$0xff]  ;;  %v2823_v61 = vld [vmem:[%s8162_s9 + $0x570] sm:$0xff] }
 0x2e2   : > { %v5424_v2 = vpack.c.bf16 %v2823_v61, %v2821_v60 }
 0x2e3   : > { %2989 = vmatmul.mubr.f32.vlgmr.msra.gmra.mrb[4].mxu1 %v7547_v17 }
 0x2e4   : > { %5381 = vmatpush1.bf16.msra.mxu1 %v5380_v16  ;;  %v2808_v16 = vld [vmem:[%s8162_s9 + $0x4f8] sm:$0xff] }
 0x2e5   : > { %5383 = vmatprep.subr.bf16.mxu1 %v5382_v18  ;;  %v5458_v18 = vpack.c.bf16 %v3079_v7, %v3078_v4  ;;  %v5406_v29 = vpack.c.bf16 %v2808_v16, %v2806_v12  ;;  %v5426_v4 = vpack.c.bf16 %v2828_v63, %v2826_v62  ;;  %v2825_v7 = vld [vmem:[%s8162_s9 + $0x580] sm:$0xff] }
 0x2e6   : > { %v2829_v16 = vld [vmem:[%s8162_s9 + $0x5a0] sm:$0xff] }
 0x2e7   : > { %5459 = vmatpush1.bf16.msra.mxu0 %v5458_v18  ;;  %v2831_v18 = vld [vmem:[%s8162_s9 + $0x5b0] sm:$0xff] }
 0x2e8   : > { %5385 = vmatpush1.bf16.msra.mxu1 %v5384_v32  ;;  %v2812_v32 = vld [vmem:[%s8162_s9 + $0x518] sm:$0xff]  ;;  %5460 = vmatprep.subr.bf16.mxu0 %v6664_v33 }
 0x2e9   : > { %5387 = vmatprep.subr.bf16.mxu1 %v5386_v37  ;;  %v3083_v37 = vld [vmem:[%s8163_s24 + $0x78] sm:$0xff]  ;;  %v5410_v39 = vpack.c.bf16 %v2812_v32, %v2810_v31  ;;  %v2838_v31 = vld [vmem:[%s8162_s9 + $0x5e8] sm:$0xff] }
 0x2ea   : > { %v5464_v27 = vpack.c.bf16 %v3083_v37, %v3082_v36  ;;  %v2840_v32 = vld [vmem:[%s8162_s9 + $0x5f8] sm:$0xff]  ;;  %v2837_v37 = vld [vmem:[%s8162_s9 + $0x5e0] sm:$0xff] }
 0x2eb   : > { %5462 = vmatpush1.bf16.msra.mxu0 %v5461_v34  ;;  %v5436_v34 = vpack.c.bf16 %v2835_v20, %v2833_v14  ;;  %v5438_v36 = vpack.c.bf16 %v2840_v32, %v2838_v31 }
 0x2ec   : > { %5389 = vmatpush1.bf16.msra.mxu1 %v5388_v44  ;;  %5463 = vmatprep.subr.bf16.mxu0 %v6664_v33  ;;  %v3084_v44 = vld [vmem:[%s8163_s24 + $0x80] sm:$0xff] }
 0x2ed   : > { %5391 = vmatprep.subr.bf16.mxu1 %v5390_v45  ;;  %v3085_v45 = vld [vmem:[%s8163_s24 + $0x88] sm:$0xff] }
 0x2ee   : > { %v5467_v49 = vpack.c.bf16 %v3085_v45, %v3084_v44 }
 0x2ef   : > { %5465 = vmatpush1.bf16.msra.mxu0 %v5464_v27 }
 0x2f0   : > { %5393 = vmatpush1.bf16.msra.mxu1 %v5392_v50  ;;  %5466 = vmatprep.subr.bf16.mxu0 %v6664_v33  ;;  %v3086_v50 = vld [vmem:[%s8163_s24 + $0x90] sm:$0xff] }
 0x2f1   : > { %5395 = vmatprep.subr.bf16.mxu1 %v5394_v51  ;;  %v3087_v51 = vld [vmem:[%s8163_s24 + $0x98] sm:$0xff] }
 0x2f2   : > { %v5470_v57 = vpack.c.bf16 %v3087_v51, %v3086_v50  ;;  %v2841_v51 = vld [vmem:[#allocation10] sm:$0x3] }
 0x2f3   : > { %5468 = vmatpush1.bf16.msra.mxu0 %v5467_v49  ;;  %v3091_v49 = vld [vmem:[%s8163_s24 + $0xb8] sm:$0xff] }
 0x2f4   : > { %5397 = vmatpush1.bf16.msra.mxu1 %v5396_v58  ;;  %5469 = vmatprep.subr.bf16.mxu0 %v6664_v33  ;;  %v5420_v58 = vpack.c.bf16 %v2819_v25, %v2817_v54  ;;  %v5476_v50 = vpack.c.bf16 %v3091_v49, %v3090_v5 }
 0x2f5   : > { %5399 = vmatprep.subr.bf16.mxu1 %v5398_v59  ;;  %v5422_v59 = vpack.c.bf16 %v2824_v56, %v2822_v55 }
 0x2f7   : > { %5471 = vmatpush1.bf16.msra.mxu0 %v5470_v57 }
 0x2f8   : > { %5401 = vmatpush1.bf16.msra.mxu1 %v5400_v8  ;;  %5472 = vmatprep.subr.bf16.mxu0 %v6664_v33  ;;  %v2827_v8 = vld [vmem:[%s8162_s9 + $0x590] sm:$0xff] }
 0x2f9   : > { %5403 = vmatprep.subr.bf16.mxu1 %v5402_v10  ;;  %v2830_v10 = vld [vmem:[%s8162_s9 + $0x5a8] sm:$0xff]  ;;  %v5428_v11 = vpack.c.bf16 %v2827_v8, %v2825_v7 }
 0x2fa   : > { %v5430_v12 = vpack.c.bf16 %v2832_v43, %v2830_v10 }
 0x2fb   : > { %5474 = vmatpush1.bf16.msra.mxu0 %v5473_v28 }
 0x2fc   : > { %5405 = vmatpush1.bf16.msra.mxu1 %v5404_v26  ;;  %v5432_v26 = vpack.c.bf16 %v2831_v18, %v2829_v16  ;;  %5475 = vmatprep.subr.bf16.mxu0 %v6664_v33 }
 0x2fd   : > { %5407 = vmatprep.subr.bf16.mxu1 %v5406_v29  ;;  %v5434_v29 = vpack.c.bf16 %v2836_v24, %v2834_v19 }
 0x2ff   : > { %5477 = vmatpush1.bf16.msra.mxu0 %v5476_v50 }
 0x300   : > { %5409 = vmatpush1.bf16.msra.mxu1 %v5408_v23  ;;  %v2839_v23 = vld [vmem:[%s8162_s9 + $0x5f0] sm:$0xff] }
 0x301   : > { %5411 = vmatprep.subr.bf16.mxu1 %v5410_v39  ;;  %v5440_v39 = vpack.c.bf16 %v2839_v23, %v2837_v37 }
 0x304   : > { %5413 = vmatpush1.bf16.msra.mxu1 %v5412_v46 }
 0x305   : > { %5415 = vmatprep.subr.bf16.mxu1 %v5414_v47 }
 0x308   : > { %5417 = vmatpush1.bf16.msra.mxu1 %v5416_v52  ;;  %v2846_v52 = vrot.slane %v2841_v51, %v812_v6  ;;  %v3189_v6 = vrot.slane (!%p5033_p2), %v3182_v9, %v7062_v15 }
 0x309   : > { %5419 = vmatprep.subr.bf16.mxu1 %v5418_v53  ;;  %v2850_v53 = vrot.slane %v2841_v51, %v816_v3  ;;  %v3196_v3 = vrot.slane (!%p5033_p2), %v7547_v17, %v7062_v15 }
 0x30b   : > { %v3197_v62 = vcombine.low (!%p5033_p2), %v3189_v6, %v3196_v3 }
 0x30c   : > { %5421 = vmatpush1.bf16.msra.mxu1 %v5420_v58  ;;  %v5031_v58 = vld [vmem:[#allocation12] ss:$0 sm:$0xff] }
 0x30d   : > { %5423 = vmatprep.subr.bf16.mxu1 %v5422_v59  ;;  %3199 = vst [vmem:[#allocation3] sm:$0x3f] (!%p5033_p2), %v3197_v62 }
 0x310   : > { %5425 = vmatpush1.bf16.msra.mxu1 %v5424_v2 }
 0x311   : > { %5427 = vmatprep.subr.bf16.mxu1 %v5426_v4 }
 0x314   : > { %5429 = vmatpush1.bf16.msra.mxu1 %v5428_v11 }
 0x315   : > { %5431 = vmatprep.subr.bf16.mxu1 %v5430_v12 }
 0x318   : > { %5433 = vmatpush1.bf16.msra.mxu1 %v5432_v26 }
 0x319   : > { %5435 = vmatprep.subr.bf16.mxu1 %v5434_v29 }
 0x31c   : > { %5437 = vmatpush1.bf16.msra.mxu1 %v5436_v34 }
 0x31d   : > { %5439 = vmatprep.subr.bf16.mxu1 %v5438_v36 }
 0x320   : > { %5441 = vmatpush1.bf16.msra.mxu1 %v5440_v39 }
 0x35e   : > { %v2642_v27 = vpop.f32.mrb[4].mxu0 }
 0x35f   : > { %v2644_v44 = vpop.f32.mrb[5].mxu0  ;;  %v5482_v47 = vadd.f32 %v2642_v27, %v829_v42 }
 0x360   : > { %v5483_v45 = vadd.f32 %v2644_v44, %v833_v13  ;;  %v2646_v46 = vpop.f32.mrb[6].mxu0 }
 0x361   : > { %v2647_v35 = vpop.f32.mrb[7].mxu0 }
 0x362   : > { %3059 = vmatprep.mubr.f32.mxu1 %v5483_v45 }
 0x363   : > { %3060 = vmatmul.mubr.f32.vlgmr.msra.gmra.mrb[4].mxu1 %v5482_v47 }
 0x436   : > { %v3061_v54 = vpop.f32.mrb[4].mxu1 }
 0x437   : > { %v5484_v25 = vadd.f32 %v3061_v54, %v2846_v52  ;;  %v3063_v33 = vpop.f32.mrb[5].mxu1 }
 0x438   : > { %v5485_v55 = vadd.f32 %v3063_v33, %v2850_v53 }
 0x439   : > { %v3066_v57 = vmax.f32 %v5484_v25, 0.0 }
 0x43a   : > { %v3067_v56 = vmax.f32 %v5485_v55, 0.0 }
 0x43c   : > { %5032 = vmatprep.mubr.msk.f32.mxu0 %vm3099_vm0, %v3067_v56 }
 0x43d   : > { %3168 = vmatmul.mubr.f32.vlgmr.msra.gmra.mrb[8].mxu0 %v3066_v57 }
 0x50d   : > { %3178 = sbr.rel (%p5033_p2) target bundleno = 1300 (0x514), region = 92 }
 0x510   : > { %v3169_v59 = vpop.f32.mrb[8].mxu0 }
 0x511   : > { %v3170_v60 = vadd.f32 %v5031_v58, %v3169_v59  ;;  %v3171_v61 = vpop.f32.mrb[9].mxu0 }
 0x513   : > { %3174 = vst.msk [vmem:[#allocation2] sm:$0x3] %vm3173_vm1, %v3170_v60 }
 0x514 PF: > { %s8165_s26 = sld [smem:[#allocation26_spill]] }
 0x51a   : > { %p5034_p11 = scmp.ne.s32.totalorder %s8165_s26, 1 }
 0x51b   : > { %v3207_v63 = vcombine.low (!%p5034_p11), %v7345_v22, %v5482_v47  ;;  %v3221_v2 = vrot.slane (!%p5034_p11), %v5483_v45, %v7062_v15 }
 0x51c   : > { %3203 = sbr.rel (%p5034_p11) target bundleno = 1315 (0x523), region = 96 }
 0x51d   : > { %v3214_v4 = vrot.slane (!%p5034_p11), %v3207_v63, %v7062_v15 }
 0x51f   : > { %v3222_v7 = vcombine.low (!%p5034_p11), %v3214_v4, %v3221_v2 }
 0x521   : > { %3224 = vst [vmem:[#allocation3] sm:$0x3f] (!%p5034_p11), %v3222_v7 }
 0x523 PF: > { %v3226_v21 = vlaneseq  ;;  %s8166_s29 = sld [smem:[#allocation25_spill]]  ;;  %v3225_v30 = vld [vmem:[#allocation2] sm:$0x3]  ;;  %v6124_v8 = vld [vmem:[%s7039_s12 + $0x4] ss:$12 sps:$4 sm:$0xff]   ;;  %vm3231_vm2 = vcmask 25600  }
 0x524   : > { %v6126_v15 = vld [vmem:[%s7039_s12 + $0x184] ss:$12 sps:$4 sm:$0xff]   ;;  %4240 = vmatprep.subr.bf16.mxu1 %v6124_v8  ;;  %v6128_v10 = vld [vmem:[%s7039_s12] ss:$12 sps:$4 sm:$0xff]   ;;  %v6130_v11 = vld [vmem:[%s7039_s12 + $0x1c] ss:$12 sps:$4 sm:$0xff]  }
 0x525   : > { %v3227_v22 = vand.u32 127, %v3226_v21  ;;  %v6129_v43 = vld [vmem:[%s7039_s12 + $0x180] ss:$12 sps:$4 sm:$0xff]   ;;  %4281 = vmatprep.subr.bf16.mxu0 %v6126_v15  ;;  %4241 = vmatpush1.bf16.msra.mxu1 %v6128_v10  ;;  %v6132_v16 = vld [vmem:[%s7039_s12 + $0x19c] ss:$12 sps:$4 sm:$0xff]  }
 0x526   : > { %4282 = vmatpush1.bf16.msra.mxu0 %v6129_v43  ;;  %4242 = vmatprep.subr.bf16.mxu1 %v6130_v11  ;;  %v6134_v19 = vld [vmem:[%s7039_s12 + $0x18] ss:$12 sps:$4 sm:$0xff]   ;;  %v6136_v26 = vld [vmem:[%s7039_s12 + $0x34] ss:$12 sps:$4 sm:$0xff]   ;;  %v6140_v14 = vld [vmem:[%s7039_s12 + $0x30] ss:$12 sps:$4 sm:$0xff]  }
 0x527   : > { %v6135_v24 = vld [vmem:[%s7039_s12 + $0x198] ss:$12 sps:$4 sm:$0xff]   ;;  %4283 = vmatprep.subr.bf16.mxu0 %v6132_v16  ;;  %v6138_v29 = vld [vmem:[%s7039_s12 + $0x1b4] ss:$12 sps:$4 sm:$0xff]   ;;  %v6141_v20 = vld [vmem:[%s7039_s12 + $0x1b0] ss:$12 sps:$4 sm:$0xff]  }
 0x528   : > { %v6142_v31 = vld [vmem:[%s7039_s12 + $0x4c] ss:$12 sps:$4 sm:$0xff]   ;;  %v6146_v34 = vld [vmem:[%s7039_s12 + $0x48] ss:$12 sps:$4 sm:$0xff]   ;;  %v6148_v37 = vld [vmem:[%s7039_s12 + $0x64] ss:$12 sps:$4 sm:$0xff]  }
 0x529   : > { %v3228_v17 = vstv %s8166_s29  ;;  %4243 = vmatpush1.bf16.msra.mxu1 %v6134_v19  ;;  %v6144_v32 = vld [vmem:[%s7039_s12 + $0x1cc] ss:$12 sps:$4 sm:$0xff]   ;;  %v6147_v36 = vld [vmem:[%s7039_s12 + $0x1c8] ss:$12 sps:$4 sm:$0xff]   ;;  %v6150_v23 = vld [vmem:[%s7039_s12 + $0x1e4] ss:$12 sps:$4 sm:$0xff]  }
 0x52a   : > { %vm3229_vm3 = vcmp.eq.s32.totalorder %v3227_v22, %v3228_v17  ;;  %4284 = vmatpush1.bf16.msra.mxu0 %v6135_v24  ;;  %4244 = vmatprep.subr.bf16.mxu1 %v6136_v26  ;;  %v6152_v39 = vld [vmem:[%s7039_s12 + $0x60] ss:$12 sps:$4 sm:$0xff]   ;;  %v6154_v41 = vld [vmem:[%s7039_s12 + $0x7c] ss:$12 sps:$4 sm:$0xff]   ;;  %v6158_v42 = vld [vmem:[%s7039_s12 + $0x78] ss:$12 sps:$4 sm:$0xff]  }
 0x52b   : > { %v3230_v12 = vsel %vm3229_vm3, %v3225_v30, 0.0  ;;  %4285 = vmatprep.subr.bf16.mxu0 %v6138_v29  ;;  %v6153_v40 = vld [vmem:[%s7039_s12 + $0x1e0] ss:$12 sps:$4 sm:$0xff]   ;;  %v6156_v13 = vld [vmem:[%s7039_s12 + $0x1fc] ss:$12 sps:$4 sm:$0xff]   ;;  %v3242_v26 = vshrl.u32 %v3226_v21, 7 }
 0x52c   : > { %v3232_v18 = vsel %vm3231_vm2, %v3230_v12, 0.0  ;;  %v6159_v27 = vld [vmem:[%s7039_s12 + $0x1f8] ss:$12 sps:$4 sm:$0xff]   ;;  %v6160_v44 = vld [vmem:[%s7039_s12 + $0x94] ss:$12 sps:$4 sm:$0xff]   ;;  %p5179_p0 = scmp.ne.s32.totalorder %s8166_s29, 3 }
 0x52d   : > { %3233 = vadd.xlane.f32.xlu0 %v3232_v18  ;;  %4245 = vmatpush1.bf16.msra.mxu1 %v6140_v14  ;;  %v6162_v45 = vld [vmem:[%s7039_s12 + $0x214] ss:$12 sps:$4 sm:$0xff]   ;;  %v6164_v46 = vld [vmem:[%s7039_s12 + $0x90] ss:$12 sps:$4 sm:$0xff]   ;;  %v6166_v35 = vld [vmem:[%s7039_s12 + $0xac] ss:$12 sps:$4 sm:$0xff]   ;;  %v3237_v14 = vcombine.high %v7052_v0, %v7052_v0 }
 0x52e   : > { %4286 = vmatpush1.bf16.msra.mxu0 %v6141_v20  ;;  %4246 = vmatprep.subr.bf16.mxu1 %v6142_v31  ;;  %v6165_v47 = vld [vmem:[%s7039_s12 + $0x210] ss:$12 sps:$4 sm:$0xff]   ;;  %v6168_v48 = vld [vmem:[%s7039_s12 + $0x22c] ss:$12 sps:$4 sm:$0xff]   ;;  %v6170_v38 = vld [vmem:[%s7039_s12 + $0xa8] ss:$12 sps:$4 sm:$0xff]  }
 0x52f   : > { %4287 = vmatprep.subr.bf16.mxu0 %v6144_v32  ;;  %v6171_v28 = vld [vmem:[%s7039_s12 + $0x228] ss:$12 sps:$4 sm:$0xff]   ;;  %v6172_v5 = vld [vmem:[%s7039_s12 + $0xc4] ss:$12 sps:$4 sm:$0xff]   ;;  %v6176_v50 = vld [vmem:[%s7039_s12 + $0xc0] ss:$12 sps:$4 sm:$0xff]  }
 0x530   : > { %v6174_v49 = vld [vmem:[%s7039_s12 + $0x244] ss:$12 sps:$4 sm:$0xff]   ;;  %v6177_v51 = vld [vmem:[%s7039_s12 + $0x240] ss:$12 sps:$4 sm:$0xff]   ;;  %v6178_v52 = vld [vmem:[%s7039_s12 + $0xdc] ss:$12 sps:$4 sm:$0xff]  }
 0x531   : > { %4247 = vmatpush1.bf16.msra.mxu1 %v6146_v34  ;;  %v6180_v53 = vld [vmem:[%s7039_s12 + $0x25c] ss:$12 sps:$4 sm:$0xff]   ;;  %v6182_v54 = vld [vmem:[%s7039_s12 + $0xd8] ss:$12 sps:$4 sm:$0xff]   ;;  %v6184_v33 = vld [vmem:[%s7039_s12 + $0xf4] ss:$12 sps:$4 sm:$0xff]  }
 0x532   : > { %4288 = vmatpush1.bf16.msra.mxu0 %v6147_v36  ;;  %4248 = vmatprep.subr.bf16.mxu1 %v6148_v37  ;;  %v6183_v25 = vld [vmem:[%s7039_s12 + $0x258] ss:$12 sps:$4 sm:$0xff]   ;;  %v6186_v55 = vld [vmem:[%s7039_s12 + $0x274] ss:$12 sps:$4 sm:$0xff]   ;;  %v6188_v56 = vld [vmem:[%s7039_s12 + $0xf0] ss:$12 sps:$4 sm:$0xff]  }
 0x533   : > { %4289 = vmatprep.subr.bf16.mxu0 %v6150_v23  ;;  %v6189_v57 = vld [vmem:[%s7039_s12 + $0x270] ss:$12 sps:$4 sm:$0xff]   ;;  %v6190_v58 = vld [vmem:[%s7039_s12 + $0x10c] ss:$12 sps:$4 sm:$0xff]   ;;  %v6194_v60 = vld [vmem:[%s7039_s12 + $0x108] ss:$12 sps:$4 sm:$0xff]  }
 0x534   : > { %v6192_v59 = vld [vmem:[%s7039_s12 + $0x28c] ss:$12 sps:$4 sm:$0xff]   ;;  %v6195_v61 = vld [vmem:[%s7039_s12 + $0x288] ss:$12 sps:$4 sm:$0xff]   ;;  %v6196_v9 = vld [vmem:[%s7039_s12 + $0x124] ss:$12 sps:$4 sm:$0xff]  }
 0x535   : > { %4249 = vmatpush1.bf16.msra.mxu1 %v6152_v39  ;;  %v6198_v3 = vld [vmem:[%s7039_s12 + $0x2a4] ss:$12 sps:$4 sm:$0xff]   ;;  %v6200_v6 = vld [vmem:[%s7039_s12 + $0x120] ss:$12 sps:$4 sm:$0xff]   ;;  %v6202_v63 = vld [vmem:[%s7039_s12 + $0x13c] ss:$12 sps:$4 sm:$0xff]  }
 0x536   : > { %4290 = vmatpush1.bf16.msra.mxu0 %v6153_v40  ;;  %4250 = vmatprep.subr.bf16.mxu1 %v6154_v41  ;;  %v6201_v62 = vld [vmem:[%s7039_s12 + $0x2a0] ss:$12 sps:$4 sm:$0xff]   ;;  %v6204_v2 = vld [vmem:[%s7039_s12 + $0x2bc] ss:$12 sps:$4 sm:$0xff]   ;;  %v6206_v4 = vld [vmem:[%s7039_s12 + $0x138] ss:$12 sps:$4 sm:$0xff]  }
 0x537   : > { %4291 = vmatprep.subr.bf16.mxu0 %v6156_v13  ;;  %v6207_v7 = vld [vmem:[%s7039_s12 + $0x2b8] ss:$12 sps:$4 sm:$0xff]   ;;  %v6208_v30 = vld [vmem:[%s7039_s12 + $0x154] ss:$12 sps:$4 sm:$0xff]   ;;  %v6212_v8 = vld [vmem:[%s7039_s12 + $0x150] ss:$12 sps:$4 sm:$0xff]  }
 0x538   : > { %v6210_v17 = vld [vmem:[%s7039_s12 + $0x2d4] ss:$12 sps:$4 sm:$0xff]   ;;  %v6213_v22 = vld [vmem:[%s7039_s12 + $0x2d0] ss:$12 sps:$4 sm:$0xff]   ;;  %v6214_v15 = vld [vmem:[%s7039_s12 + $0x16c] ss:$12 sps:$4 sm:$0xff]  }
 0x539   : > { %4251 = vmatpush1.bf16.msra.mxu1 %v6158_v42  ;;  %v6216_v10 = vld [vmem:[%s7039_s12 + $0x2ec] ss:$12 sps:$4 sm:$0xff]   ;;  %v6218_v43 = vld [vmem:[%s7039_s12 + $0x168] ss:$12 sps:$4 sm:$0xff]   ;;  %v6222_v12 = vld [vmem:[%s7039_s12 + $0x304] ss:$12 sps:$4 sm:$0xff]  }
 0x53a   : > { %4292 = vmatpush1.bf16.msra.mxu0 %v6159_v27  ;;  %4252 = vmatprep.subr.bf16.mxu1 %v6160_v44  ;;  %v6219_v11 = vld [vmem:[%s7039_s12 + $0x2e8] ss:$12 sps:$4 sm:$0xff]   ;;  %v6665_v18 = vmov 1983009808   ;;  %v4509_v32 = vsub.s32 0, %v3242_v26  ;;  %v4513_v34 = vsub.s32 1, %v3242_v26 }
 0x53b   : > { %4293 = vmatprep.subr.bf16.mxu0 %v6162_v45  ;;  %v6223_v16 = vld [vmem:[%s7039_s12 + $0xc8] ss:$12 sps:$4 sm:$0xff]   ;;  %v3239_v19 = vunpack.c.l.s4 %v6665_v18  ;;  %v4505_v37 = vld [vmem:[%s431_s20] sm:$0x7]  ;;  %v4517_v23 = vsub.s32 2, %v3242_v26 }
 0x53c   : > { %v4510_v40 = vrot.slane %v4505_v37, %v4509_v32  ;;  %v4514_v41 = vrot.slane %v4505_v37, %v4513_v34  ;;  %v6257_v18 = vld [vmem:[%s7039_s12 + $0x3ac] ss:$12 sps:$4 sm:$0xff]   ;;  %v6264_v32 = vld [vmem:[%s7039_s12 + $0x188] ss:$12 sps:$4 sm:$0xff]  }
 0x53d   : > { %4253 = vmatpush1.bf16.msra.mxu1 %v6164_v46  ;;  %v3240_v24 = vunpack.c.0.s8 %v3239_v19  ;;  %v4518_v42 = vrot.slane %v4505_v37, %v4517_v23  ;;  %v6258_v19 = vld [vmem:[%s7039_s12 + $0x170] ss:$12 sps:$4 sm:$0xff]   ;;  %v6265_v37 = vld [vmem:[%s7039_s12 + $0x3d8] ss:$12 sps:$4 sm:$0xff]   ;;  %v6269_v23 = vld [vmem:[%s7039_s12 + $0x1a0] ss:$12 sps:$4 sm:$0xff]  }
 0x53e   : > { %4294 = vmatpush1.bf16.msra.mxu0 %v6165_v47  ;;  %4254 = vmatprep.subr.bf16.mxu1 %v6166_v35  ;;  %v6267_v34 = vld [vmem:[%s7039_s12 + $0x3dc] ss:$12 sps:$4 sm:$0xff]  }
 0x53f   : > { %4295 = vmatprep.subr.bf16.mxu0 %v6168_v48  ;;  %v7895_v29 = vsub.s32 %v3240_v24, %v3242_v26  ;;  %v6255_v24 = vld [vmem:[%s7039_s12 + $0x3a8] ss:$12 sps:$4 sm:$0xff]   ;;  %v6259_v26 = vld [vmem:[%s7039_s12 + $0xb0] ss:$12 sps:$4 sm:$0xff]  }
 0x541   : > { %4255 = vmatpush1.bf16.msra.mxu1 %v6170_v38  ;;  %v3244_v20 = vrot.slane %v7052_v0, %v7895_v29  ;;  %v3251_v31 = vrot.slane %v3237_v14, %v7895_v29  ;;  %v3260_v36 = vrot.slane %v7054_v1, %v7895_v29  ;;  %v6262_v14 = vld [vmem:[%s7039_s12 + $0x3c4] ss:$12 sps:$4 sm:$0xff]  }
 0x542   : > { %4296 = vmatpush1.bf16.msra.mxu0 %v6171_v28  ;;  %4256 = vmatprep.subr.bf16.mxu1 %v6172_v5  ;;  %v6220_v5 = vld [vmem:[%s7039_s12 + $0x300] ss:$12 sps:$4 sm:$0xff]  }
 0x543   : > { %4297 = vmatprep.subr.bf16.mxu0 %v6174_v49  ;;  %v3252_v39 = vcombine.high %v3244_v20, %v3244_v20  ;;  %v3253_v21 = vcombine.high %v3251_v31, %v3251_v31  ;;  %v3261_v13 = vcombine.high %v3260_v36, %v3260_v36 }
 0x545   : > { %4257 = vmatpush1.bf16.msra.mxu1 %v6176_v50 }
 0x546   : > { %4298 = vmatpush1.bf16.msra.mxu0 %v6177_v51  ;;  %4258 = vmatprep.subr.bf16.mxu1 %v6178_v52  ;;  %v6224_v51 = vld [vmem:[%s7039_s12 + $0x8] ss:$12 sps:$4 sm:$0xff]  }
 0x547   : > { %4299 = vmatprep.subr.bf16.mxu0 %v6180_v53 }
 0x549   : > { %4259 = vmatpush1.bf16.msra.mxu1 %v6182_v54  ;;  %v6227_v54 = vld [vmem:[%s7039_s12 + $0x31c] ss:$12 sps:$4 sm:$0xff]  }
 0x54a   : > { %4300 = vmatpush1.bf16.msra.mxu0 %v6183_v25  ;;  %4260 = vmatprep.subr.bf16.mxu1 %v6184_v33  ;;  %v6228_v25 = vld [vmem:[%s7039_s12 + $0xe0] ss:$12 sps:$4 sm:$0xff]  }
 0x54b   : > { %4301 = vmatprep.subr.bf16.mxu0 %v6186_v55 }
 0x54d   : > { %4261 = vmatpush1.bf16.msra.mxu1 %v6188_v56 }
 0x54e   : > { %4302 = vmatpush1.bf16.msra.mxu0 %v6189_v57  ;;  %4262 = vmatprep.subr.bf16.mxu1 %v6190_v58  ;;  %v6225_v57 = vld [vmem:[%s7039_s12 + $0x318] ss:$12 sps:$4 sm:$0xff]   ;;  %v6229_v58 = vld [vmem:[%s7039_s12 + $0x20] ss:$12 sps:$4 sm:$0xff]  }
 0x54f   : > { %4303 = vmatprep.subr.bf16.mxu0 %v6192_v59  ;;  %v6232_v59 = vld [vmem:[%s7039_s12 + $0x334] ss:$12 sps:$4 sm:$0xff]  }
 0x551   : > { %4263 = vmatpush1.bf16.msra.mxu1 %v6194_v60  ;;  %v6233_v60 = vld [vmem:[%s7039_s12 + $0xf8] ss:$12 sps:$4 sm:$0xff]  }
 0x552   : > { %4304 = vmatpush1.bf16.msra.mxu0 %v6195_v61  ;;  %4264 = vmatprep.subr.bf16.mxu1 %v6196_v9  ;;  %v6230_v9 = vld [vmem:[%s7039_s12 + $0x330] ss:$12 sps:$4 sm:$0xff]  }
 0x553   : > { %4305 = vmatprep.subr.bf16.mxu0 %v6198_v3  ;;  %v6234_v3 = vld [vmem:[%s7039_s12 + $0x38] ss:$12 sps:$4 sm:$0xff]  }
 0x555   : > { %4265 = vmatpush1.bf16.msra.mxu1 %v6200_v6  ;;  %v6237_v6 = vld [vmem:[%s7039_s12 + $0x34c] ss:$12 sps:$4 sm:$0xff]  }
 0x556   : > { %4306 = vmatpush1.bf16.msra.mxu0 %v6201_v62  ;;  %4266 = vmatprep.subr.bf16.mxu1 %v6202_v63  ;;  %v6238_v62 = vld [vmem:[%s7039_s12 + $0x110] ss:$12 sps:$4 sm:$0xff]   ;;  %v6235_v63 = vld [vmem:[%s7039_s12 + $0x348] ss:$12 sps:$4 sm:$0xff]  }
 0x557   : > { %4307 = vmatprep.subr.bf16.mxu0 %v6204_v2  ;;  %v6239_v2 = vld [vmem:[%s7039_s12 + $0x50] ss:$12 sps:$4 sm:$0xff]  }
 0x559   : > { %4267 = vmatpush1.bf16.msra.mxu1 %v6206_v4  ;;  %v6242_v4 = vld [vmem:[%s7039_s12 + $0x364] ss:$12 sps:$4 sm:$0xff]  }
 0x55a   : > { %4308 = vmatpush1.bf16.msra.mxu0 %v6207_v7  ;;  %4268 = vmatprep.subr.bf16.mxu1 %v6208_v30  ;;  %v6243_v7 = vld [vmem:[%s7039_s12 + $0x128] ss:$12 sps:$4 sm:$0xff]   ;;  %v6240_v30 = vld [vmem:[%s7039_s12 + $0x360] ss:$12 sps:$4 sm:$0xff]  }
 0x55b   : > { %4309 = vmatprep.subr.bf16.mxu0 %v6210_v17  ;;  %v6244_v17 = vld [vmem:[%s7039_s12 + $0x68] ss:$12 sps:$4 sm:$0xff]  }
 0x55d   : > { %4269 = vmatpush1.bf16.msra.mxu1 %v6212_v8  ;;  %v6247_v8 = vld [vmem:[%s7039_s12 + $0x37c] ss:$12 sps:$4 sm:$0xff]  }
 0x55e   : > { %4310 = vmatpush1.bf16.msra.mxu0 %v6213_v22  ;;  %4270 = vmatprep.subr.bf16.mxu1 %v6214_v15  ;;  %v6248_v22 = vld [vmem:[%s7039_s12 + $0x140] ss:$12 sps:$4 sm:$0xff]   ;;  %v6245_v15 = vld [vmem:[%s7039_s12 + $0x378] ss:$12 sps:$4 sm:$0xff]  }
 0x55f   : > { %4311 = vmatprep.subr.bf16.mxu0 %v6216_v10  ;;  %v6249_v10 = vld [vmem:[%s7039_s12 + $0x80] ss:$12 sps:$4 sm:$0xff]  }
 0x561   : > { %4271 = vmatpush1.bf16.msra.mxu1 %v6218_v43  ;;  %v6252_v43 = vld [vmem:[%s7039_s12 + $0x394] ss:$12 sps:$4 sm:$0xff]  }
 0x562   : > { %4312 = vmatpush1.bf16.msra.mxu0 %v6219_v11  ;;  %5184 = vmatprep.subr.bf16.mxu1 %v6223_v16  ;;  %v6253_v11 = vld [vmem:[%s7039_s12 + $0x158] ss:$12 sps:$4 sm:$0xff]  }
 0x563   : > { %4322 = vmatprep.subr.bf16.mxu0 %v6222_v12  ;;  %v6250_v12 = vld [vmem:[%s7039_s12 + $0x390] ss:$12 sps:$4 sm:$0xff]   ;;  %v6254_v16 = vld [vmem:[%s7039_s12 + $0x98] ss:$12 sps:$4 sm:$0xff]  }
 0x5ba   : > { %v3234_v27 = vpop.xlane.xlu0 %3233 }
 0x5bb   : > { %v3269_v0 = vmul.f32 %v3252_v39, %v3234_v27  ;;  %v3271_v44 = vmul.f32 %v3253_v21, %v3234_v27  ;;  %v3268_v45 = vmul.f32 %v3244_v20, %v3234_v27  ;;  %v3270_v46 = vmul.f32 %v3251_v31, %v3234_v27  ;;  %v6263_v20 = vld [vmem:[%s7039_s12 + $0x248] ss:$12 sps:$4 sm:$0xff]   ;;  %v6260_v31 = vld [vmem:[%s7039_s12 + $0x3c0] ss:$12 sps:$4 sm:$0xff]   ;;  %v6273_v21 = vld [vmem:[%s7039_s12 + $0x278] ss:$12 sps:$4 sm:$0xff]  }
 0x5bc   : > { %v3273_v47 = vmul.f32 %v3261_v13, %v3234_v27  ;;  %v7906_v1 = vmul.f32 %v3260_v36, %v3234_v27  ;;  %v4522_v35 = vmul.f32 %v4510_v40, %v3234_v27  ;;  %v4523_v48 = vmul.f32 %v4514_v41, %v3234_v27  ;;  %v6268_v36 = vld [vmem:[%s7039_s12 + $0x260] ss:$12 sps:$4 sm:$0xff]   ;;  %v6270_v40 = vld [vmem:[%s7039_s12 + $0x3f0] ss:$12 sps:$4 sm:$0xff]   ;;  %v6274_v41 = vld [vmem:[%s7039_s12 + $0x1b8] ss:$12 sps:$4 sm:$0xff]  }
 0x5bd   : > { %v3275_v38 = vpack.c.bf16 %v3269_v0, %v3269_v0  ;;  %v7908_v28 = vpack.c.bf16 %v3271_v44, %v3271_v44  ;;  %v7911_v49 = vpack.c.bf16 %v3268_v45, %v3268_v45  ;;  %v7913_v50 = vpack.c.bf16 %v3270_v46, %v3270_v46  ;;  %v6272_v39 = vld [vmem:[%s7039_s12 + $0x3f4] ss:$12 sps:$4 sm:$0xff]   ;;  %v6277_v13 = vld [vmem:[%s7039_s12 + $0x40c] ss:$12 sps:$4 sm:$0xff]   ;;  %v6279_v0 = vld [vmem:[%s7039_s12 + $0x1d0] ss:$12 sps:$4 sm:$0xff]  }
 0x5be   : > { %v4524_v52 = vmul.f32 %v4518_v42, %v3234_v27  ;;  %v4528_v53 = vcombine.low %v4522_v35, %v4523_v48  ;;  %v7921_v33 = vpack.c.bf16 %v3273_v47, %v3273_v47  ;;  %v6278_v42 = vld [vmem:[%s7039_s12 + $0x290] ss:$12 sps:$4 sm:$0xff]   ;;  %v6275_v27 = vld [vmem:[%s7039_s12 + $0x408] ss:$12 sps:$4 sm:$0xff]   ;;  %v6280_v46 = vld [vmem:[%s7039_s12 + $0x420] ss:$12 sps:$4 sm:$0xff]  }
 0x5bf   : > { %4272 = vmatprep.mubr.bf16.mxu1 %v3275_v38  ;;  %4313 = vmatprep.mubr.bf16.mxu0 %v7908_v28  ;;  %v6282_v44 = vld [vmem:[%s7039_s12 + $0x424] ss:$12 sps:$4 sm:$0xff]   ;;  %v6283_v45 = vld [vmem:[%s7039_s12 + $0x2a8] ss:$12 sps:$4 sm:$0xff]   ;;  %v6288_v48 = vld [vmem:[%s7039_s12 + $0x2c0] ss:$12 sps:$4 sm:$0xff]  }
 0x5c0   : > { %4273 = vmatmul.mubr.bf16.vlgmr.msra.gmra.mrb[0].mxu1 %v7911_v49  ;;  %4314 = vmatmul.mubr.bf16.vlgmr.msra.gmra.mrb[0].mxu0 %v7913_v50  ;;  %v4535_v55 = vrot.slane %v4528_v53, %v7895_v29  ;;  %v4542_v56 = vrot.slane %v4524_v52, %v7895_v29  ;;  %v6284_v47 = vld [vmem:[%s7039_s12 + $0x1e8] ss:$12 sps:$4 sm:$0xff]   ;;  %v6294_v52 = vld [vmem:[%s7039_s12 + $0x218] ss:$12 sps:$4 sm:$0xff]  }
 0x5c1   : > { %4323 = vmatpush1.bf16.msra.mxu0 %v6220_v5  ;;  %5185 = vmatpush3.bf16.msra.mxu1 %v6224_v51  ;;  %v6287_v35 = vld [vmem:[%s7039_s12 + $0x43c] ss:$12 sps:$4 sm:$0xff]   ;;  %v6292_v5 = vld [vmem:[%s7039_s12 + $0x454] ss:$12 sps:$4 sm:$0xff]   ;;  %v6297_v53 = vld [vmem:[%s7039_s12 + $0x46c] ss:$12 sps:$4 sm:$0xff]  }
 0x5c2   : > { %4354 = vmatprep.mubr.bf16.mxu0 %v7921_v33  ;;  %4395 = vmatprep.mubr.bf16.mxu1 %v3275_v38  ;;  %v7930_v61 = vcombine.low %v4535_v55, %v4542_v56  ;;  %v6285_v38 = vld [vmem:[%s7039_s12 + $0x438] ss:$12 sps:$4 sm:$0xff]   ;;  %v6290_v51 = vld [vmem:[%s7039_s12 + $0x450] ss:$12 sps:$4 sm:$0xff]   ;;  %v6300_v56 = vld [vmem:[%s7039_s12 + $0x3c8] ss:$12 sps:$4 sm:$0xff]  }
 0x5c3   : > { %4324 = vmatprep.subr.bf16.mxu0 %v6227_v54  ;;  %5186 = vmatprep.subr.bf16.mxu1 %v6228_v25  ;;  %v6298_v54 = vld [vmem:[%s7039_s12 + $0x2f0] ss:$12 sps:$4 sm:$0xff]   ;;  %v6295_v25 = vld [vmem:[%s7039_s12 + $0x468] ss:$12 sps:$4 sm:$0xff]  }
 0x5c4   : > { %v6299_v55 = vld [vmem:[%s7039_s12 + $0x230] ss:$12 sps:$4 sm:$0xff]  }
 0x5c5   : > { %4325 = vmatpush1.bf16.msra.mxu0 %v6225_v57  ;;  %5187 = vmatpush3.bf16.msra.mxu1 %v6229_v58  ;;  %v6301_v57 = vld [vmem:[%s7039_s12 + $0x308] ss:$12 sps:$4 sm:$0xff]   ;;  %v3278_v58 = vpack.c.bf16 %v7906_v1, %v7906_v1  ;;  %v6306_v1 = vld [vmem:[%s7039_s12 + $0x410] ss:$12 sps:$4 sm:$0xff]  }
 0x5c6   : > { %4326 = vmatprep.subr.bf16.mxu0 %v6232_v59  ;;  %5188 = vmatprep.subr.bf16.mxu1 %v6233_v60  ;;  %v6302_v59 = vld [vmem:[%s7039_s12 + $0x3e0] ss:$12 sps:$4 sm:$0xff]  }
 0x5c7   : > { %v6303_v60 = vld [vmem:[%s7039_s12 + $0x320] ss:$12 sps:$4 sm:$0xff]  }
 0x5c9   : > { %4327 = vmatpush1.bf16.msra.mxu0 %v6230_v9  ;;  %5189 = vmatpush3.bf16.msra.mxu1 %v6234_v3  ;;  %v6304_v9 = vld [vmem:[%s7039_s12 + $0x3f8] ss:$12 sps:$4 sm:$0xff]  }
 0x5ca   : > { %4328 = vmatprep.subr.bf16.mxu0 %v6237_v6  ;;  %5190 = vmatprep.subr.bf16.mxu1 %v6238_v62  ;;  %v6305_v3 = vld [vmem:[%s7039_s12 + $0x338] ss:$12 sps:$4 sm:$0xff]   ;;  %v6307_v6 = vld [vmem:[%s7039_s12 + $0x350] ss:$12 sps:$4 sm:$0xff]   ;;  %v6309_v62 = vld [vmem:[%s7039_s12 + $0x368] ss:$12 sps:$4 sm:$0xff]  }
 0x5cd   : > { %4329 = vmatpush1.bf16.msra.mxu0 %v6235_v63  ;;  %5191 = vmatpush3.bf16.msra.mxu1 %v6239_v2  ;;  %v6311_v63 = vld [vmem:[%s7039_s12 + $0x380] ss:$12 sps:$4 sm:$0xff]   ;;  %v6312_v2 = vld [vmem:[%s7039_s12 + $0x458] ss:$12 sps:$4 sm:$0xff]  }
 0x5ce   : > { %4330 = vmatprep.subr.bf16.mxu0 %v6242_v4  ;;  %5192 = vmatprep.subr.bf16.mxu1 %v6243_v7  ;;  %v6313_v4 = vld [vmem:[%s7039_s12 + $0x398] ss:$12 sps:$4 sm:$0xff]   ;;  %v6314_v7 = vld [vmem:[%s7039_s12 + $0x470] ss:$12 sps:$4 sm:$0xff]  }
 0x5d1   : > { %4331 = vmatpush1.bf16.msra.mxu0 %v6240_v30  ;;  %5193 = vmatpush3.bf16.msra.mxu1 %v6244_v17  ;;  %v6315_v30 = vld [vmem:[%s7039_s12 + $0x3b0] ss:$12 sps:$4 sm:$0xff]  }
 0x5d2   : > { %4332 = vmatprep.subr.bf16.mxu0 %v6247_v8  ;;  %5194 = vmatprep.subr.bf16.mxu1 %v6248_v22 }
 0x5d5   : > { %4333 = vmatpush1.bf16.msra.mxu0 %v6245_v15  ;;  %5195 = vmatpush3.bf16.msra.mxu1 %v6249_v10 }
 0x5d6   : > { %4334 = vmatprep.subr.bf16.mxu0 %v6252_v43  ;;  %5196 = vmatprep.subr.bf16.mxu1 %v6253_v11 }
 0x5d9   : > { %4335 = vmatpush1.bf16.msra.mxu0 %v6250_v12  ;;  %5197 = vmatpush3.bf16.msra.mxu1 %v6254_v16 }
 0x5da   : > { %4336 = vmatprep.subr.bf16.mxu0 %v6257_v18  ;;  %5198 = vmatprep.subr.bf16.mxu1 %v6258_v19 }
 0x5dd   : > { %4337 = vmatpush1.bf16.msra.mxu0 %v6255_v24  ;;  %5199 = vmatpush3.bf16.msra.mxu1 %v6259_v26 }
 0x5de   : > { %4338 = vmatprep.subr.bf16.mxu0 %v6262_v14  ;;  %5206 = vmatprep.subr.bf16.mxu1 %v6263_v20 }
 0x5e0   : > { %4396 = vmatmul.mubr.bf16.vlgmr.msra.gmra.mrb[4].mxu1 %v7911_v49  ;;  %v6293_v49 = vld [vmem:[%s7039_s12 + $0x2d8] ss:$12 sps:$4 sm:$0xff]  }
 0x5e1   : > { %4339 = vmatpush1.bf16.msra.mxu0 %v6260_v31  ;;  %5207 = vmatpush3.bf16.msra.mxu1 %v6264_v32 }
 0x5e2   : > { %4435 = vmatprep.mubr.bf16.mxu1 %v7908_v28  ;;  %4340 = vmatprep.subr.bf16.mxu0 %v6267_v34  ;;  %v6289_v28 = vld [vmem:[%s7039_s12 + $0x200] ss:$12 sps:$4 sm:$0xff]  }
 0x5e3   : > { %5208 = vmatprep.subr.bf16.mxu1 %v6268_v36 }
 0x5e5   : > { %4341 = vmatpush1.bf16.msra.mxu0 %v6265_v37  ;;  %5209 = vmatpush3.bf16.msra.mxu1 %v6269_v23 }
 0x5e6   : > { %4342 = vmatprep.subr.bf16.mxu0 %v6272_v39  ;;  %5210 = vmatprep.subr.bf16.mxu1 %v6273_v21 }
 0x5e9   : > { %4343 = vmatpush1.bf16.msra.mxu0 %v6270_v40  ;;  %5211 = vmatpush3.bf16.msra.mxu1 %v6274_v41 }
 0x5ea   : > { %4344 = vmatprep.subr.bf16.mxu0 %v6277_v13  ;;  %5212 = vmatprep.subr.bf16.mxu1 %v6278_v42 }
 0x5ed   : > { %4345 = vmatpush1.bf16.msra.mxu0 %v6275_v27  ;;  %5213 = vmatpush3.bf16.msra.mxu1 %v6279_v0 }
 0x5ee   : > { %4346 = vmatprep.subr.bf16.mxu0 %v6282_v44  ;;  %5214 = vmatprep.subr.bf16.mxu1 %v6283_v45  ;;  %v4483_v45 = vld [vmem:[#allocation3] sm:$0x3f] }
 0x5f1   : > { %4347 = vmatpush1.bf16.msra.mxu0 %v6280_v46  ;;  %5215 = vmatpush3.bf16.msra.mxu1 %v6284_v47 }
 0x5f2   : > { %4348 = vmatprep.subr.bf16.mxu0 %v6287_v35  ;;  %5216 = vmatprep.subr.bf16.mxu1 %v6288_v48 }
 0x5f5   : > { %4349 = vmatpush1.bf16.msra.mxu0 %v6285_v38  ;;  %5217 = vmatpush3.bf16.msra.mxu1 %v6289_v28 }
 0x5f6   : > { %4350 = vmatprep.subr.bf16.mxu0 %v6292_v5  ;;  %5218 = vmatprep.subr.bf16.mxu1 %v6293_v49 }
 0x5f9   : > { %4351 = vmatpush1.bf16.msra.mxu0 %v6290_v51  ;;  %5219 = vmatpush3.bf16.msra.mxu1 %v6294_v52 }
 0x5fa   : > { %4352 = vmatprep.subr.bf16.mxu0 %v6297_v53  ;;  %5220 = vmatprep.subr.bf16.mxu1 %v6298_v54 }
 0x5fd   : > { %4353 = vmatpush1.bf16.msra.mxu0 %v6295_v25  ;;  %5221 = vmatpush3.bf16.msra.mxu1 %v6299_v55 }
 0x5fe   : > { %5228 = vmatprep.subr.bf16.mxu1 %v6300_v56 }
 0x600   : > { %4355 = vmatmul.mubr.bf16.vlgmr.msra.gmra.mrb[0].mxu0 %v3278_v58  ;;  %4436 = vmatmul.mubr.bf16.vlgmr.msra.gmra.mrb[8].mxu1 %v7913_v50  ;;  %v6308_v50 = vld [vmem:[%s7039_s12 + $0x428] ss:$12 sps:$4 sm:$0xff]  }
 0x601   : > { %5229 = vmatpush3.bf16.msra.mxu1 %v6301_v57  ;;  %4475 = vmatprep.mubr.bf16.mxu1 %v7921_v33  ;;  %v6310_v33 = vld [vmem:[%s7039_s12 + $0x440] ss:$12 sps:$4 sm:$0xff]  }
 0x602   : > { %5230 = vmatprep.subr.bf16.mxu1 %v6302_v59 }
 0x605   : > { %5231 = vmatpush3.bf16.msra.mxu1 %v6303_v60 }
 0x606   : > { %5232 = vmatprep.subr.bf16.mxu1 %v6304_v9 }
 0x609   : > { %5233 = vmatpush3.bf16.msra.mxu1 %v6305_v3 }
 0x60a   : > { %5234 = vmatprep.subr.bf16.mxu1 %v6306_v1 }
 0x60d   : > { %5235 = vmatpush3.bf16.msra.mxu1 %v6307_v6 }
 0x60e   : > { %5236 = vmatprep.subr.bf16.mxu1 %v6308_v50 }
 0x611   : > { %5237 = vmatpush3.bf16.msra.mxu1 %v6309_v62 }
 0x612   : > { %5238 = vmatprep.subr.bf16.mxu1 %v6310_v33 }
 0x615   : > { %5239 = vmatpush3.bf16.msra.mxu1 %v6311_v63 }
 0x616   : > { %5240 = vmatprep.subr.bf16.mxu1 %v6312_v2 }
 0x619   : > { %5241 = vmatpush3.bf16.msra.mxu1 %v6313_v4 }
 0x61a   : > { %5242 = vmatprep.subr.bf16.mxu1 %v6314_v7 }
 0x61d   : > { %5243 = vmatpush3.bf16.msra.mxu1 %v6315_v30 }
 0x620   : > { %4476 = vmatmul.mubr.bf16.vlgmr.msra.gmra.mrb[12].mxu1 %v3278_v58 }
 0x693   : > { %v4274_v17 = vpop.f32.mrb[0].mxu1 }
 0x694   : > { %v4276_v8 = vpop.f32.mrb[1].mxu1 }
 0x695   : > { %v4278_v22 = vpop.f32.mrb[2].mxu1 }
 0x696   : > { %v4279_v15 = vpop.f32.mrb[3].mxu1 }
 0x6b3   : > { %v5200_v10 = vpop.f32.mrb[4].mxu1 }
 0x6b4   : > { %v5201_v43 = vpop.f32.mrb[5].mxu1 }
 0x6b5   : > { %v5202_v11 = vadd.f32 %v5201_v43, %v5200_v10  ;;  %v5203_v12 = vpop.f32.mrb[6].mxu1 }
 0x6b6   : > { %v5204_v16 = vpop.f32.mrb[7].mxu1 }
 0x6d3   : > { %v4356_v18 = vpop.f32.mrb[0].mxu0  ;;  %v5222_v19 = vpop.f32.mrb[8].mxu1 }
 0x6d4   : > { %v5514_v24 = vadd.f32 %v4356_v18, %v4274_v17  ;;  %v4358_v26 = vpop.f32.mrb[1].mxu0  ;;  %v5223_v14 = vpop.f32.mrb[9].mxu1 }
 0x6d5   : > { %v5515_v20 = vadd.f32 %v4358_v26, %v4276_v8  ;;  %v5224_v31 = vadd.f32 %v5223_v14, %v5222_v19  ;;  %v4360_v32 = vpop.f32.mrb[2].mxu0  ;;  %v5225_v34 = vpop.f32.mrb[10].mxu1 }
 0x6d6   : > { %v4361_v36 = vpop.f32.mrb[3].mxu0  ;;  %v5226_v37 = vpop.f32.mrb[11].mxu1 }
 0x6d7   : > { %v4487_v23 = vcombine.low %v5514_v24, %v5515_v20  ;;  %v4438_v39 = vadd.f32 %v5224_v31, %v5202_v11 }
 0x6d9   : > { %v4494_v0 = vrot.slane %v4487_v23, %v7895_v29 }
 0x6f3   : > { %v5244_v21 = vpop.f32.mrb[12].mxu1 }
 0x6f4   : > { %v5245_v40 = vpop.f32.mrb[13].mxu1 }
 0x6f5   : > { %v5246_v41 = vadd.f32 %v5245_v40, %v5244_v21  ;;  %v5247_v13 = vpop.f32.mrb[14].mxu1 }
 0x6f6   : > { %v5248_v42 = vpop.f32.mrb[15].mxu1 }
 0x6f7   : > { %v4478_v27 = vadd.f32 %v5246_v41, %v4438_v39 }
 0x6f9   : > { %v4501_v44 = vrot.slane %v4478_v27, %v7895_v29 }
 0x6fb   : > { %v4502_v46 = vcombine.low %v4494_v0, %v4501_v44  ;;  %4550 = sbr.rel (%p5179_p0) target bundleno = 1802 (0x70a), region = 100 }
 0x6fd   : > { %v4504_v47 = vadd.f32 %v4502_v46, %v4483_v45 }
 0x6ff   : > { %v4545_v35 = vadd.f32 %v7930_v61, %v4504_v47 }
 0x701   : > { %4546 = vst [vmem:[#allocation3] sm:$0x3f] %v4545_v35 }
 0x708   : > { %v4551_v48 = vld [vmem:[#allocation3] sm:$0x3f] }
 0x709   : > { %4552 = vst [vmem:[%s470_s28] sm:$0x3f] %v4551_v48 }
 0x70a PF: > { %s8167_s12 = sld [smem:[#allocation26_spill]]  ;;  %s8169_s20 = sld [smem:[#allocation28_spill]] }
 0x70b   : > { %s4568_s4 = sshll.u32 %s470_s28, 4  ;;  %s8170_s22 = sld [smem:[#allocation38_spill]]  ;;  %s4569_s4 = int_to_ptr.vmem [resolvable:$true] %s4568_s4 }
 0x70c   : > { %s4554_s13 = scalar_lea.sflag [#allocation6], %s468_s21  ;;  %s6516_s25 = scalar_lea.vmem %s4569_s4, 96 }
 0x70d   : > { %p6517_p3 = scmp.ne.s32.totalorder %s4569_s4, %s6516_s25  ;;  %s6666_s10 = smov [#allocation16]  }
 0x70e   : > { %s6520_s16 = sshll.u32 %s6666_s10, 4  ;;  %s6521_s16 = int_to_ptr.vmem [resolvable:$false] %s6520_s16 }
 0x70f   : > { %s6522_s30 = scalar_lea.vmem %s6521_s16, 192  ;;  %p6523_p8 = scmp.lt.s32.totalorder %s4569_s4, %s6521_s16 }
 0x710   : > { %s5183_s15 = smul.u32 96, %s8167_s12  ;;  %p8171_p13 = scmp.ne.s32.totalorder %s8169_s20, 0 }
 0x711   : > { %p6524_p12 = scmp.lt.s32.totalorder %s6522_s30, %s6516_s25 }
 0x712   : > { %s8020_s7 = scalar_lea.hbm %s8170_s22, %s5183_s15  ;;  %p6518_p9 = pnand %p6517_p3, %p8171_p13 }
 0x713   : > { %p6525_p4 = por %p6524_p12, %p6523_p8 }
 0x714   : > { %p6519_p5 = pneg %p6518_p9 }
 0x716   : > { %p6526_p6 = pnand %p6525_p4, %p6519_p5 }
 0x718   : > { %6529 = shalt.err (!%p6526_p6)
}
 0x719   : > { %s6530_s21 = scalar_lea.hbm %s8020_s7, 96  ;;  %s6534_s26 = scalar_lea.hbm %s8170_s22, 192 }
 0x71a   : > { %p6531_p7 = scmp.ne.s32.totalorder %s8020_s7, %s6530_s21  ;;  %p6535_p2 = scmp.lt.u32.totalorder %s8020_s7, %s8170_s22 }
 0x71b   : > { %p6536_p11 = scmp.lt.u32.totalorder %s6534_s26, %s6530_s21  ;;  %p6538_p3 = scmp.lt.u32.totalorder %s6530_s21, %s8020_s7 }
 0x71c   : > { %p6532_p10 = pnand %p6531_p7, %p8171_p13 }
 0x71d   : > { %p6537_p0 = por %p6536_p11, %p6535_p2 }
 0x71e   : > { %p6533_p1 = pneg %p6532_p10 }
 0x71f   : > { %p6539_p9 = por %p6538_p3, %p6537_p0 }
 0x721   : > { %p6540_p5 = pnand %p6539_p9, %p6533_p1 }
 0x723   : > { %6543 = shalt.err (!%p6540_p5)
}
 0x724   : > { %5551 = dma.vmem_to_hbm [thread:$0]  (%p8171_p13), %s4569_s4, 96, %s8020_s7, %s4554_s13  }
 0x725 PF: > { %s8172_s23 = sld [smem:[#allocation22_spill]]  ;;  %s8173_s15 = sld [smem:[#allocation29_spill]] }
 0x726   : > { %p5591_p8 = scmp.ge.s32.totalorder %s6650_s19, 2 }
 0x72b   : > { %s4580_s27 = sand.u32 1, %s8172_s23   ;;  %p8174_p12 = scmp.ne.s32.totalorder %s8173_s15, 0 }
 0x72c   : > { %s4581_s3 = scalar_lea.sflag [#allocation6], %s4580_s27 }
 0x72d   : > { %p5577_p4 = pnand %p5591_p8, %p8174_p12 }
 0x72f   : > { %6605 = dma.done.wait (!%p5577_p4), %s4581_s3, 96  }
 0x730   : > { %6607 = vsyncadd (!%p5577_p4), %s4581_s3, 4294967200  ;;  %s28_s19 = sadd.s32 1, %s6650_s19   ;;  %s8175_s30 = sld [smem:[#allocation23_spill]] }
 0x731   : > { %p25_p6 = scmp.ge.s32.totalorder %s28_s19, 10   ;;  %s8176_s12 = sld [smem:[#allocation24_spill]] }
 0x732   : > { %s8177_s20 = sld [smem:[#allocation32_spill]]  ;;  %s8178_s4 = sld [smem:[#allocation30_spill]] }
 0x733   : > { %s8179_s7 = sld [smem:[#allocation31_spill]]  ;;  %s8180_s10 = smov %s6618_s11 }
 0x734   : > { %s8181_s11 = smov %s6886_s5  ;;  %s8182_s13 = smov %s6630_s14 }
 0x735   : > { %s8184_s15 = smov %s6642_s17  ;;  %s8185_s16 = smov %s6646_s18 }
 0x736   :  { %27 = sbr.rel (!%p25_p6) target bundleno = 19 (0x13), region = 149 }
 0x738   : > { %s8183_s14 = smov %s8177_s20  ;;  %s8186_s17 = smov %s8178_s4 }
 0x739   : > { %s8187_s18 = smov %s8179_s7 }
 0x73d   :  { %4586 = vsyncpa [#allocation5], 1 }
 0x73e   :  { %4588 = vsyncpa [#allocation5 + $0x1], 1 }
 0x73f   :  { %4589 = vsyncpa [#allocation8], 1 }
 0x740   :  { %4590 = vsyncpa [#allocation11], 1 }
 0x741   :  { %4591 = vsyncpa [#allocation14], 1 }
 0x742   :  { %4593 = vsyncpa [#allocation14 + $0x1], 1 }
 0x743   :  { %4594 = vsyncpa [#allocation6], 1 }
 0x744   :  { %4596 = vsyncpa [#allocation6 + $0x1], 1 }

</bundles_post_ra>
